<compile_context>
chip_gen: v6e
topology: v6e:2x2x1
jax: 0.10.0
libtpu: 0.0.40
codegen_flags: <defaults>
</compile_context>

<pallas_src>
import numpy as np
import jax
import jax.numpy as jnp
from jax.experimental import pallas as pl
from jax.experimental.pallas import tpu as pltpu

# ---------------- config (stand-in for the PyTorch `config`) ----------------
PAD, UNK, SOS, EOS = 10, 11, 12, 13
VOCAB = 14            # len(config.num_sequence): digits 0-9 + PAD/UNK/SOS/EOS
EMB = 32              # config.embedding_dim
HID = 32              # config.hidden_size
NUM_LAYER = 1         # config.num_layer (dropout is a no-op for 1-layer GRU)
MAX_LEN = 8           # config.max_len
T_STEPS = MAX_LEN + 2
BATCH = 2

GG = 128              # one 128-lane group holding r|z|n gates at 32-lane offsets
VP = 128              # vocab padded to a full 128-lane group
WIDTH = GG + VP       # fused [gates | logits] matmul output width (256)
NEG = -1e30           # f32 bias for padded vocab lanes (masks softmax/argmax)


# --------------------------------- kernel -----------------------------------
def decoder_kernel(gi_tab_ref,     # (VP, GG)     bf16  Emb @ W_ih^T + b_ih, gate-packed
                   w_combo_ref,    # (HID, WIDTH) bf16  [W_hh^T | W_fc^T], packed
                   b_combo_ref,    # (1, WIDTH)   f32   [b_hh | b_fc], pad lanes 0 / -1e30
                   h0_ref,         # (B, HID)     f32   encoder hidden
                   gi_teacher_ref, # (T, B, GG)   f32   precomputed gi for teacher tokens
                   tf_ref,         # (T, 1, GG)   f32   teacher-forcing flags (0.0 / 1.0)
                   out_ref,        # (T, B, VP)   f32   log-softmax outputs (resident)
                   hT_ref):        # (B, HID)     f32   final hidden
    gi_tab = gi_tab_ref[...]                               # already bf16
    w_combo = w_combo_ref[...]                             # already bf16
    b_combo = b_combo_ref[...]                             # f32
    lane = jax.lax.broadcasted_iota(jnp.int32, (BATCH, VP), 1)

    h = h0_ref[...]                                        # (B, HID) f32
    sos_oh = (lane == SOS).astype(jnp.bfloat16)            # SOS start token one-hot
    gi = jnp.dot(sos_oh, gi_tab, preferred_element_type=jnp.float32)      # (B, GG)
    gh = (jnp.dot(h.astype(jnp.bfloat16), w_combo,
                  preferred_element_type=jnp.float32)[:, :GG]
          + b_combo[:, :GG])                               # (B, GG)

    for t in range(T_STEPS):                               # fully unrolled recurrence
        # ---- one GRU step (PyTorch gate order r | z | n), gates at 32-lane offsets ----
        r = jax.nn.sigmoid(gi[:, 0:HID] + gh[:, 0:HID])
        z = jax.nn.sigmoid(gi[:, HID:2 * HID] + gh[:, HID:2 * HID])
        n = jnp.tanh(gi[:, 2 * HID:3 * HID] + r * gh[:, 2 * HID:3 * HID])
        h = (1.0 - z) * n + z * h                          # (B, HID)

        # ---- fused (next-step hidden projection | this step's fc logits): 256 wide ----
        comb = jnp.dot(h.astype(jnp.bfloat16), w_combo,
                       preferred_element_type=jnp.float32) + b_combo      # (B, WIDTH)
        gh = comb[:, :GG]
        logits = comb[:, GG:]                              # (B, VP); pad lanes ~ -1e30

        m = jnp.max(logits, axis=-1, keepdims=True)
        lse = m + jnp.log(jnp.sum(jnp.exp(logits - m), axis=-1, keepdims=True))
        out_ref[t] = logits - lse                          # log_softmax, resident block

        # ---- next input token: teacher (tf==1) or first-argmax greedy (tf==0) ----
        # Dead-tail skip: the last step's selection / gi matmul is never consumed.
        if t < T_STEPS - 1:
            amin = jnp.min(jnp.where(logits >= m, lane, VP), axis=-1, keepdims=True)
            greedy_oh = (lane == amin).astype(jnp.bfloat16)    # exact first-argmax one-hot
            gi_greedy = jnp.dot(greedy_oh, gi_tab,
                                preferred_element_type=jnp.float32)       # (B, GG)
            tf_t = tf_ref[t]                                   # (1, GG), exactly 0.0 or 1.0
            gi = tf_t * gi_teacher_ref[t] + (1.0 - tf_t) * gi_greedy

    hT_ref[...] = h                                        # written once, after loop


# ------------------------- wrapper-side table building ------------------------
def _gi_table_full(params):
    emb, w_ih, _, b_ih, _, _, _ = params
    # embedding row -> GRU input projection, precomputed for every vocab id: (V, 3H)
    return emb @ w_ih.T + b_ih


def _build_tables(params):
    _, _, w_hh, _, b_hh, w_fc, b_fc = params
    gi_full = _gi_table_full(params)                                     # (V, 3H)
    # gates packed at 32-lane offsets (HID == 32, so this is the natural layout)
    gi_tab = jnp.zeros((VP, GG), jnp.float32).at[:VOCAB, :3 * HID].set(gi_full)
    w_combo = jnp.zeros((HID, WIDTH), jnp.float32)
    w_combo = w_combo.at[:, :3 * HID].set(w_hh.T)
    w_combo = w_combo.at[:, GG:GG + VOCAB].set(w_fc.T)
    b_combo = jnp.zeros((1, WIDTH), jnp.float32)
    b_combo = b_combo.at[0, :3 * HID].set(b_hh)
    b_combo = b_combo.at[0, GG:].set(NEG)                                # mask padded vocab lanes
    b_combo = b_combo.at[0, GG:GG + VOCAB].set(b_fc)
    # tables ship as bf16 (halves startup DMA, removes in-kernel cast sweeps);
    # bias (incl. -1e30 pad lanes) stays f32.
    return gi_tab.astype(jnp.bfloat16), w_combo.astype(jnp.bfloat16), b_combo


# --------------------------------- wrapper ----------------------------------
def decoder_forward(params, target, encoder_hidden, tf_flags):
    """target: (B, T) int32, encoder_hidden: (NUM_LAYER, B, H) f32, tf_flags: (T,) int32."""
    gi_tab, w_combo, b_combo = _build_tables(params)
    h0 = encoder_hidden[0]                                               # (B, HID)
    target_t = jnp.transpose(target).astype(jnp.int32)                   # (T, B)
    # teacher-token input projections, gathered from the (already bf16) table — exact
    gi_teacher = jnp.take(gi_tab, target_t, axis=0).astype(jnp.float32)  # (T, B, GG)
    tf3 = jnp.broadcast_to(tf_flags.astype(jnp.float32)[:, None, None],
                           (T_STEPS, 1, GG))                             # (T, 1, GG)

    vmem = pl.BlockSpec(memory_space=pltpu.MemorySpace.VMEM)             # whole array in VMEM
    out_p, h_last = pl.pallas_call(
        decoder_kernel,
        out_shape=(jax.ShapeDtypeStruct((T_STEPS, BATCH, VP), jnp.float32),
                   jax.ShapeDtypeStruct((BATCH, HID), jnp.float32)),
        in_specs=[vmem] * 6,
        out_specs=(vmem, vmem),
    )(gi_tab, w_combo, b_combo, h0, gi_teacher, tf3)

    decoder_outputs = jnp.transpose(out_p[:, :, :VOCAB], (1, 0, 2))      # (B, T, V)
    decoder_hidden = h_last[None]                                        # (NUM_LAYER, B, H)
    return decoder_outputs, decoder_hidden


# ----------------------------- pure-JAX reference ----------------------------
def _bf16_dot(a, b):
    return jnp.dot(a.astype(jnp.bfloat16), b.astype(jnp.bfloat16),
                   preferred_element_type=jnp.float32)


def decoder_reference(params, target, encoder_hidden, tf_flags):
    _, _, w_hh, _, b_hh, w_fc, b_fc = params
    # Embedding lookup followed by the GRU input projection is exactly a row
    # gather from the precomputed (Emb @ W_ih^T + b_ih) table.
    gi_full = _gi_table_full(params)                  # (V, 3H)
    h = encoder_hidden[0]
    idx = jnp.full((BATCH,), SOS, jnp.int32)
    tf_host = np.asarray(tf_flags)
    outs = []
    for i in range(T_STEPS):
        gi = gi_full[idx].astype(jnp.bfloat16).astype(jnp.float32)
        gh = _bf16_dot(h, w_hh.T) + b_hh
        r = jax.nn.sigmoid(gi[:, :HID] + gh[:, :HID])
        z = jax.nn.sigmoid(gi[:, HID:2 * HID] + gh[:, HID:2 * HID])
        n = jnp.tanh(gi[:, 2 * HID:] + r * gh[:, 2 * HID:])
        h = (1.0 - z) * n + z * h
        logits = _bf16_dot(h, w_fc.T) + b_fc
        outs.append(jax.nn.log_softmax(logits, axis=-1))
        greedy = jnp.argmax(logits, axis=-1).astype(jnp.int32)
        teacher = target[:, i].astype(jnp.int32)
        idx = teacher if tf_host[i] else greedy
    return jnp.stack(outs, axis=1), h[None]


# ----------------------------------- main ------------------------------------
if __name__ == "__main__":
    key = jax.random.PRNGKey(0)
    ks = jax.random.split(key, 9)
    s_gru = 1.0 / np.sqrt(HID)

    emb = jax.random.normal(ks[0], (VOCAB, EMB), jnp.float32)
    emb = emb.at[PAD].set(0.0)                          # padding_idx => zero row
    w_ih = jax.random.uniform(ks[1], (3 * HID, EMB), jnp.float32, -s_gru, s_gru)
    w_hh = jax.random.uniform(ks[2], (3 * HID, HID), jnp.float32, -s_gru, s_gru)
    b_ih = jax.random.uniform(ks[3], (3 * HID,), jnp.float32, -s_gru, s_gru)
    b_hh = jax.random.uniform(ks[4], (3 * HID,), jnp.float32, -s_gru, s_gru)
    w_fc = jax.random.uniform(ks[5], (VOCAB, HID), jnp.float32, -s_gru, s_gru)
    b_fc = jax.random.uniform(ks[6], (VOCAB,), jnp.float32, -s_gru, s_gru)
    params = (emb, w_ih, w_hh, b_ih, b_hh, w_fc, b_fc)

    # inputs
    target = jax.random.randint(ks[7], (BATCH, T_STEPS), 0, 10).astype(jnp.int32)
    encoder_hidden = jax.random.normal(ks[8], (NUM_LAYER, BATCH, HID), jnp.float32)

    # host-side teacher-forcing coin flips (deterministic stand-in for np.random.random() > 0.5)
    np.random.seed(0)
    tf_flags = jnp.asarray((np.random.random(T_STEPS) > 0.5).astype(np.int32))

    outs, h_last = decoder_forward(params, target, encoder_hidden, tf_flags)
    outs = jax.block_until_ready(outs)
    h_last = jax.block_until_ready(h_last)

    ref_outs, ref_h = decoder_reference(params, target, encoder_hidden, tf_flags)
    np.testing.assert_allclose(np.asarray(outs), np.asarray(ref_outs), atol=1e-2, rtol=1e-2)
    np.testing.assert_allclose(np.asarray(h_last), np.asarray(ref_h), atol=1e-2, rtol=1e-2)

    assert outs.shape == (BATCH, T_STEPS, VOCAB)
    assert h_last.shape == (NUM_LAYER, BATCH, HID)
    # TODO(synk): GRU dropout (config.drop_out) is a no-op for num_layers=1, matching PyTorch.
    print("KERNEL_OK")
</pallas_src>

<mosaic_0001>
module attributes {stable_mosaic.version = 11 : i64} {
  func.func @decoder_kernel(%arg0: memref<128x128xbf16, #tpu.memory_space<vmem>>, %arg1: memref<32x256xbf16, #tpu.memory_space<vmem>>, %arg2: memref<1x256xf32, #tpu.memory_space<vmem>>, %arg3: memref<2x32xf32, #tpu.memory_space<vmem>>, %arg4: memref<10x2x128xf32, #tpu.memory_space<vmem>>, %arg5: memref<10x1x128xf32, #tpu.memory_space<vmem>>, %arg6: memref<10x2x128xf32, #tpu.memory_space<vmem>>, %arg7: memref<2x32xf32, #tpu.memory_space<vmem>>) attributes {dimension_semantics = [], scalar_prefetch = 0 : i64, scratch_operands = 0 : i64, tpu.core_type = #tpu.core_type<tc>} {
    %c0 = arith.constant 0 : index
    %c0_0 = arith.constant 0 : index
    %0 = vector.load %arg0[%c0, %c0_0] : memref<128x128xbf16, #tpu.memory_space<vmem>>, vector<128x128xbf16>
    %c0_1 = arith.constant 0 : index
    %c0_2 = arith.constant 0 : index
    %1 = vector.load %arg1[%c0_1, %c0_2] : memref<32x256xbf16, #tpu.memory_space<vmem>>, vector<32x256xbf16>
    %c0_3 = arith.constant 0 : index
    %c0_4 = arith.constant 0 : index
    %2 = vector.load %arg2[%c0_3, %c0_4] : memref<1x256xf32, #tpu.memory_space<vmem>>, vector<1x256xf32>
    %3 = tpu.iota {dimensions = array<i32: 1>} : vector<2x128xi32>
    %c0_5 = arith.constant 0 : index
    %c0_6 = arith.constant 0 : index
    %4 = vector.load %arg3[%c0_5, %c0_6] : memref<2x32xf32, #tpu.memory_space<vmem>>, vector<2x32xf32>
    %c12_i32 = arith.constant 12 : i32
    %5 = vector.broadcast %c12_i32 : i32 to vector<2x128xi32>
    %6 = arith.cmpi eq, %3, %5 : vector<2x128xi32>
    %7 = arith.extui %6 : vector<2x128xi1> to vector<2x128xi32>
    %8 = arith.sitofp %7 : vector<2x128xi32> to vector<2x128xf32>
    %9 = arith.truncf %8 : vector<2x128xf32> to vector<2x128xbf16>
    %cst = arith.constant dense<0.000000e+00> : vector<2x128xf32>
    %10 = tpu.matmul %9, %0, %cst {dimension_numbers = #tpu.dot_dimension_numbers<[1], [0], [0], [1], [0, 0, 1, 1], [], []>} : vector<2x128xbf16>, vector<128x128xbf16>, vector<2x128xf32> -> vector<2x128xf32>
    %11 = arith.truncf %4 : vector<2x32xf32> to vector<2x32xbf16>
    %cst_7 = arith.constant dense<0.000000e+00> : vector<2x256xf32>
    %12 = tpu.matmul %11, %1, %cst_7 {dimension_numbers = #tpu.dot_dimension_numbers<[1], [0], [0], [1], [0, 0, 1, 1], [], []>} : vector<2x32xbf16>, vector<32x256xbf16>, vector<2x256xf32> -> vector<2x256xf32>
    %13 = vector.extract_strided_slice %12 {offsets = [0, 0], sizes = [2, 128], strides = [1, 1]} : vector<2x256xf32> to vector<2x128xf32>
    %14 = vector.extract_strided_slice %2 {offsets = [0, 0], sizes = [1, 128], strides = [1, 1]} : vector<1x256xf32> to vector<1x128xf32>
    %15 = vector.broadcast %14 : vector<1x128xf32> to vector<2x128xf32>
    %16 = arith.addf %13, %15 : vector<2x128xf32>
    %17 = vector.extract_strided_slice %10 {offsets = [0, 0], sizes = [2, 32], strides = [1, 1]} : vector<2x128xf32> to vector<2x32xf32>
    %18 = vector.extract_strided_slice %16 {offsets = [0, 0], sizes = [2, 32], strides = [1, 1]} : vector<2x128xf32> to vector<2x32xf32>
    %19 = arith.addf %17, %18 : vector<2x32xf32>
    %20 = arith.negf %19 : vector<2x32xf32>
    %21 = math.exp %20 : vector<2x32xf32>
    %cst_8 = arith.constant 1.000000e+00 : f32
    %22 = vector.broadcast %cst_8 : f32 to vector<2x32xf32>
    %23 = arith.addf %22, %21 : vector<2x32xf32>
    %24 = arith.divf %22, %23 : vector<2x32xf32>
    %25 = vector.extract_strided_slice %10 {offsets = [0, 32], sizes = [2, 32], strides = [1, 1]} : vector<2x128xf32> to vector<2x32xf32>
    %26 = vector.extract_strided_slice %16 {offsets = [0, 32], sizes = [2, 32], strides = [1, 1]} : vector<2x128xf32> to vector<2x32xf32>
    %27 = arith.addf %25, %26 : vector<2x32xf32>
    %28 = arith.negf %27 : vector<2x32xf32>
    %29 = math.exp %28 : vector<2x32xf32>
    %cst_9 = arith.constant 1.000000e+00 : f32
    %30 = vector.broadcast %cst_9 : f32 to vector<2x32xf32>
    %31 = arith.addf %30, %29 : vector<2x32xf32>
    %32 = arith.divf %30, %31 : vector<2x32xf32>
    %33 = vector.extract_strided_slice %10 {offsets = [0, 64], sizes = [2, 32], strides = [1, 1]} : vector<2x128xf32> to vector<2x32xf32>
    %34 = vector.extract_strided_slice %16 {offsets = [0, 64], sizes = [2, 32], strides = [1, 1]} : vector<2x128xf32> to vector<2x32xf32>
    %35 = arith.mulf %24, %34 : vector<2x32xf32>
    %36 = arith.addf %33, %35 : vector<2x32xf32>
    %37 = math.tanh %36 : vector<2x32xf32>
    %cst_10 = arith.constant 1.000000e+00 : f32
    %38 = vector.broadcast %cst_10 : f32 to vector<2x32xf32>
    %39 = arith.subf %38, %32 : vector<2x32xf32>
    %40 = arith.mulf %39, %37 : vector<2x32xf32>
    %41 = arith.mulf %32, %4 : vector<2x32xf32>
    %42 = arith.addf %40, %41 : vector<2x32xf32>
    %43 = arith.truncf %42 : vector<2x32xf32> to vector<2x32xbf16>
    %cst_11 = arith.constant dense<0.000000e+00> : vector<2x256xf32>
    %44 = tpu.matmul %43, %1, %cst_11 {dimension_numbers = #tpu.dot_dimension_numbers<[1], [0], [0], [1], [0, 0, 1, 1], [], []>} : vector<2x32xbf16>, vector<32x256xbf16>, vector<2x256xf32> -> vector<2x256xf32>
    %45 = vector.broadcast %2 : vector<1x256xf32> to vector<2x256xf32>
    %46 = arith.addf %44, %45 : vector<2x256xf32>
    %47 = vector.extract_strided_slice %46 {offsets = [0, 0], sizes = [2, 128], strides = [1, 1]} : vector<2x256xf32> to vector<2x128xf32>
    %48 = vector.extract_strided_slice %46 {offsets = [0, 128], sizes = [2, 128], strides = [1, 1]} : vector<2x256xf32> to vector<2x128xf32>
    %cst_12 = arith.constant dense<0xFF800000> : vector<2xf32>
    %49 = vector.multi_reduction <maximumf>, %48, %cst_12 [1] : vector<2x128xf32> to vector<2xf32>
    %50 = vector.shape_cast %49 : vector<2xf32> to vector<2x1xf32>
    %51 = vector.broadcast %50 : vector<2x1xf32> to vector<2x128xf32>
    %52 = arith.subf %48, %51 : vector<2x128xf32>
    %53 = math.exp %52 : vector<2x128xf32>
    %cst_13 = arith.constant dense<0.000000e+00> : vector<2xf32>
    %54 = vector.multi_reduction <add>, %53, %cst_13 [1] : vector<2x128xf32> to vector<2xf32>
    %55 = vector.shape_cast %54 : vector<2xf32> to vector<2x1xf32>
    %56 = math.log %55 : vector<2x1xf32>
    %57 = arith.addf %50, %56 : vector<2x1xf32>
    %58 = vector.broadcast %57 : vector<2x1xf32> to vector<2x128xf32>
    %59 = arith.subf %48, %58 : vector<2x128xf32>
    %c0_14 = arith.constant 0 : index
    %c0_15 = arith.constant 0 : index
    %c0_16 = arith.constant 0 : index
    %60 = vector.load %arg6[%c0_14, %c0_15, %c0_16] : memref<10x2x128xf32, #tpu.memory_space<vmem>>, vector<1x2x128xf32>
    %61 = vector.shape_cast %60 : vector<1x2x128xf32> to vector<2x128xf32>
    %62 = vector.shape_cast %59 : vector<2x128xf32> to vector<1x2x128xf32>
    tpu.vector_store %arg6[%c0_14, %c0_15, %c0_16], %62 {strides = array<i32>} : memref<10x2x128xf32, #tpu.memory_space<vmem>>, vector<1x2x128xf32>,
    %63 = vector.broadcast %50 : vector<2x1xf32> to vector<2x128xf32>
    %64 = arith.cmpf oge, %48, %63 : vector<2x128xf32>
    %c128_i32 = arith.constant 128 : i32
    %65 = vector.broadcast %c128_i32 : i32 to vector<2x128xi32>
    %66 = arith.select %64, %3, %65 : vector<2x128xi1>, vector<2x128xi32>
    %cst_17 = arith.constant dense<2147483647> : vector<2xi32>
    %67 = vector.multi_reduction <minsi>, %66, %cst_17 [1] : vector<2x128xi32> to vector<2xi32>
    %68 = vector.shape_cast %67 : vector<2xi32> to vector<2x1xi32>
    %69 = vector.broadcast %68 : vector<2x1xi32> to vector<2x128xi32>
    %70 = arith.cmpi eq, %3, %69 : vector<2x128xi32>
    %71 = arith.extui %70 : vector<2x128xi1> to vector<2x128xi32>
    %72 = arith.sitofp %71 : vector<2x128xi32> to vector<2x128xf32>
    %73 = arith.truncf %72 : vector<2x128xf32> to vector<2x128xbf16>
    %cst_18 = arith.constant dense<0.000000e+00> : vector<2x128xf32>
    %74 = tpu.matmul %73, %0, %cst_18 {dimension_numbers = #tpu.dot_dimension_numbers<[1], [0], [0], [1], [0, 0, 1, 1], [], []>} : vector<2x128xbf16>, vector<128x128xbf16>, vector<2x128xf32> -> vector<2x128xf32>
    %c0_19 = arith.constant 0 : index
    %c0_20 = arith.constant 0 : index
    %c0_21 = arith.constant 0 : index
    %75 = vector.load %arg5[%c0_19, %c0_20, %c0_21] : memref<10x1x128xf32, #tpu.memory_space<vmem>>, vector<1x1x128xf32>
    %76 = vector.shape_cast %75 : vector<1x1x128xf32> to vector<1x128xf32>
    %c0_22 = arith.constant 0 : index
    %c0_23 = arith.constant 0 : index
    %c0_24 = arith.constant 0 : index
    %77 = vector.load %arg4[%c0_22, %c0_23, %c0_24] : memref<10x2x128xf32, #tpu.memory_space<vmem>>, vector<1x2x128xf32>
    %78 = vector.shape_cast %77 : vector<1x2x128xf32> to vector<2x128xf32>
    %79 = vector.broadcast %76 : vector<1x128xf32> to vector<2x128xf32>
    %80 = arith.mulf %79, %78 : vector<2x128xf32>
    %cst_25 = arith.constant 1.000000e+00 : f32
    %81 = vector.broadcast %cst_25 : f32 to vector<1x128xf32>
    %82 = arith.subf %81, %76 : vector<1x128xf32>
    %83 = vector.broadcast %82 : vector<1x128xf32> to vector<2x128xf32>
    %84 = arith.mulf %83, %74 : vector<2x128xf32>
    %85 = arith.addf %80, %84 : vector<2x128xf32>
    %86 = vector.extract_strided_slice %85 {offsets = [0, 0], sizes = [2, 32], strides = [1, 1]} : vector<2x128xf32> to vector<2x32xf32>
    %87 = vector.extract_strided_slice %47 {offsets = [0, 0], sizes = [2, 32], strides = [1, 1]} : vector<2x128xf32> to vector<2x32xf32>
    %88 = arith.addf %86, %87 : vector<2x32xf32>
    %89 = arith.negf %88 : vector<2x32xf32>
    %90 = math.exp %89 : vector<2x32xf32>
    %cst_26 = arith.constant 1.000000e+00 : f32
    %91 = vector.broadcast %cst_26 : f32 to vector<2x32xf32>
    %92 = arith.addf %91, %90 : vector<2x32xf32>
    %93 = arith.divf %91, %92 : vector<2x32xf32>
    %94 = vector.extract_strided_slice %85 {offsets = [0, 32], sizes = [2, 32], strides = [1, 1]} : vector<2x128xf32> to vector<2x32xf32>
    %95 = vector.extract_strided_slice %47 {offsets = [0, 32], sizes = [2, 32], strides = [1, 1]} : vector<2x128xf32> to vector<2x32xf32>
    %96 = arith.addf %94, %95 : vector<2x32xf32>
    %97 = arith.negf %96 : vector<2x32xf32>
    %98 = math.exp %97 : vector<2x32xf32>
    %cst_27 = arith.constant 1.000000e+00 : f32
    %99 = vector.broadcast %cst_27 : f32 to vector<2x32xf32>
    %100 = arith.addf %99, %98 : vector<2x32xf32>
    %101 = arith.divf %99, %100 : vector<2x32xf32>
    %102 = vector.extract_strided_slice %85 {offsets = [0, 64], sizes = [2, 32], strides = [1, 1]} : vector<2x128xf32> to vector<2x32xf32>
    %103 = vector.extract_strided_slice %47 {offsets = [0, 64], sizes = [2, 32], strides = [1, 1]} : vector<2x128xf32> to vector<2x32xf32>
    %104 = arith.mulf %93, %103 : vector<2x32xf32>
    %105 = arith.addf %102, %104 : vector<2x32xf32>
    %106 = math.tanh %105 : vector<2x32xf32>
    %cst_28 = arith.constant 1.000000e+00 : f32
    %107 = vector.broadcast %cst_28 : f32 to vector<2x32xf32>
    %108 = arith.subf %107, %101 : vector<2x32xf32>
    %109 = arith.mulf %108, %106 : vector<2x32xf32>
    %110 = arith.mulf %101, %42 : vector<2x32xf32>
    %111 = arith.addf %109, %110 : vector<2x32xf32>
    %112 = arith.truncf %111 : vector<2x32xf32> to vector<2x32xbf16>
    %cst_29 = arith.constant dense<0.000000e+00> : vector<2x256xf32>
    %113 = tpu.matmul %112, %1, %cst_29 {dimension_numbers = #tpu.dot_dimension_numbers<[1], [0], [0], [1], [0, 0, 1, 1], [], []>} : vector<2x32xbf16>, vector<32x256xbf16>, vector<2x256xf32> -> vector<2x256xf32>
    %114 = vector.broadcast %2 : vector<1x256xf32> to vector<2x256xf32>
    %115 = arith.addf %113, %114 : vector<2x256xf32>
    %116 = vector.extract_strided_slice %115 {offsets = [0, 0], sizes = [2, 128], strides = [1, 1]} : vector<2x256xf32> to vector<2x128xf32>
    %117 = vector.extract_strided_slice %115 {offsets = [0, 128], sizes = [2, 128], strides = [1, 1]} : vector<2x256xf32> to vector<2x128xf32>
    %cst_30 = arith.constant dense<0xFF800000> : vector<2xf32>
    %118 = vector.multi_reduction <maximumf>, %117, %cst_30 [1] : vector<2x128xf32> to vector<2xf32>
    %119 = vector.shape_cast %118 : vector<2xf32> to vector<2x1xf32>
    %120 = vector.broadcast %119 : vector<2x1xf32> to vector<2x128xf32>
    %121 = arith.subf %117, %120 : vector<2x128xf32>
    %122 = math.exp %121 : vector<2x128xf32>
    %cst_31 = arith.constant dense<0.000000e+00> : vector<2xf32>
    %123 = vector.multi_reduction <add>, %122, %cst_31 [1] : vector<2x128xf32> to vector<2xf32>
    %124 = vector.shape_cast %123 : vector<2xf32> to vector<2x1xf32>
    %125 = math.log %124 : vector<2x1xf32>
    %126 = arith.addf %119, %125 : vector<2x1xf32>
    %127 = vector.broadcast %126 : vector<2x1xf32> to vector<2x128xf32>
    %128 = arith.subf %117, %127 : vector<2x128xf32>
    %c1 = arith.constant 1 : index
    %c0_32 = arith.constant 0 : index
    %c0_33 = arith.constant 0 : index
    %129 = vector.load %arg6[%c1, %c0_32, %c0_33] : memref<10x2x128xf32, #tpu.memory_space<vmem>>, vector<1x2x128xf32>
    %130 = vector.shape_cast %129 : vector<1x2x128xf32> to vector<2x128xf32>
    %131 = vector.shape_cast %128 : vector<2x128xf32> to vector<1x2x128xf32>
    tpu.vector_store %arg6[%c1, %c0_32, %c0_33], %131 {strides = array<i32>} : memref<10x2x128xf32, #tpu.memory_space<vmem>>, vector<1x2x128xf32>,
    %132 = vector.broadcast %119 : vector<2x1xf32> to vector<2x128xf32>
    %133 = arith.cmpf oge, %117, %132 : vector<2x128xf32>
    %c128_i32_34 = arith.constant 128 : i32
    %134 = vector.broadcast %c128_i32_34 : i32 to vector<2x128xi32>
    %135 = arith.select %133, %3, %134 : vector<2x128xi1>, vector<2x128xi32>
    %cst_35 = arith.constant dense<2147483647> : vector<2xi32>
    %136 = vector.multi_reduction <minsi>, %135, %cst_35 [1] : vector<2x128xi32> to vector<2xi32>
    %137 = vector.shape_cast %136 : vector<2xi32> to vector<2x1xi32>
    %138 = vector.broadcast %137 : vector<2x1xi32> to vector<2x128xi32>
    %139 = arith.cmpi eq, %3, %138 : vector<2x128xi32>
    %140 = arith.extui %139 : vector<2x128xi1> to vector<2x128xi32>
    %141 = arith.sitofp %140 : vector<2x128xi32> to vector<2x128xf32>
    %142 = arith.truncf %141 : vector<2x128xf32> to vector<2x128xbf16>
    %cst_36 = arith.constant dense<0.000000e+00> : vector<2x128xf32>
    %143 = tpu.matmul %142, %0, %cst_36 {dimension_numbers = #tpu.dot_dimension_numbers<[1], [0], [0], [1], [0, 0, 1, 1], [], []>} : vector<2x128xbf16>, vector<128x128xbf16>, vector<2x128xf32> -> vector<2x128xf32>
    %c1_37 = arith.constant 1 : index
    %c0_38 = arith.constant 0 : index
    %c0_39 = arith.constant 0 : index
    %144 = vector.load %arg5[%c1_37, %c0_38, %c0_39] : memref<10x1x128xf32, #tpu.memory_space<vmem>>, vector<1x1x128xf32>
    %145 = vector.shape_cast %144 : vector<1x1x128xf32> to vector<1x128xf32>
    %c1_40 = arith.constant 1 : index
    %c0_41 = arith.constant 0 : index
    %c0_42 = arith.constant 0 : index
    %146 = vector.load %arg4[%c1_40, %c0_41, %c0_42] : memref<10x2x128xf32, #tpu.memory_space<vmem>>, vector<1x2x128xf32>
    %147 = vector.shape_cast %146 : vector<1x2x128xf32> to vector<2x128xf32>
    %148 = vector.broadcast %145 : vector<1x128xf32> to vector<2x128xf32>
    %149 = arith.mulf %148, %147 : vector<2x128xf32>
    %cst_43 = arith.constant 1.000000e+00 : f32
    %150 = vector.broadcast %cst_43 : f32 to vector<1x128xf32>
    %151 = arith.subf %150, %145 : vector<1x128xf32>
    %152 = vector.broadcast %151 : vector<1x128xf32> to vector<2x128xf32>
    %153 = arith.mulf %152, %143 : vector<2x128xf32>
    %154 = arith.addf %149, %153 : vector<2x128xf32>
    %155 = vector.extract_strided_slice %154 {offsets = [0, 0], sizes = [2, 32], strides = [1, 1]} : vector<2x128xf32> to vector<2x32xf32>
    %156 = vector.extract_strided_slice %116 {offsets = [0, 0], sizes = [2, 32], strides = [1, 1]} : vector<2x128xf32> to vector<2x32xf32>
    %157 = arith.addf %155, %156 : vector<2x32xf32>
    %158 = arith.negf %157 : vector<2x32xf32>
    %159 = math.exp %158 : vector<2x32xf32>
    %cst_44 = arith.constant 1.000000e+00 : f32
    %160 = vector.broadcast %cst_44 : f32 to vector<2x32xf32>
    %161 = arith.addf %160, %159 : vector<2x32xf32>
    %162 = arith.divf %160, %161 : vector<2x32xf32>
    %163 = vector.extract_strided_slice %154 {offsets = [0, 32], sizes = [2, 32], strides = [1, 1]} : vector<2x128xf32> to vector<2x32xf32>
    %164 = vector.extract_strided_slice %116 {offsets = [0, 32], sizes = [2, 32], strides = [1, 1]} : vector<2x128xf32> to vector<2x32xf32>
    %165 = arith.addf %163, %164 : vector<2x32xf32>
    %166 = arith.negf %165 : vector<2x32xf32>
    %167 = math.exp %166 : vector<2x32xf32>
    %cst_45 = arith.constant 1.000000e+00 : f32
    %168 = vector.broadcast %cst_45 : f32 to vector<2x32xf32>
    %169 = arith.addf %168, %167 : vector<2x32xf32>
    %170 = arith.divf %168, %169 : vector<2x32xf32>
    %171 = vector.extract_strided_slice %154 {offsets = [0, 64], sizes = [2, 32], strides = [1, 1]} : vector<2x128xf32> to vector<2x32xf32>
    %172 = vector.extract_strided_slice %116 {offsets = [0, 64], sizes = [2, 32], strides = [1, 1]} : vector<2x128xf32> to vector<2x32xf32>
    %173 = arith.mulf %162, %172 : vector<2x32xf32>
    %174 = arith.addf %171, %173 : vector<2x32xf32>
    %175 = math.tanh %174 : vector<2x32xf32>
    %cst_46 = arith.constant 1.000000e+00 : f32
    %176 = vector.broadcast %cst_46 : f32 to vector<2x32xf32>
    %177 = arith.subf %176, %170 : vector<2x32xf32>
    %178 = arith.mulf %177, %175 : vector<2x32xf32>
    %179 = arith.mulf %170, %111 : vector<2x32xf32>
    %180 = arith.addf %178, %179 : vector<2x32xf32>
    %181 = arith.truncf %180 : vector<2x32xf32> to vector<2x32xbf16>
    %cst_47 = arith.constant dense<0.000000e+00> : vector<2x256xf32>
    %182 = tpu.matmul %181, %1, %cst_47 {dimension_numbers = #tpu.dot_dimension_numbers<[1], [0], [0], [1], [0, 0, 1, 1], [], []>} : vector<2x32xbf16>, vector<32x256xbf16>, vector<2x256xf32> -> vector<2x256xf32>
    %183 = vector.broadcast %2 : vector<1x256xf32> to vector<2x256xf32>
    %184 = arith.addf %182, %183 : vector<2x256xf32>
    %185 = vector.extract_strided_slice %184 {offsets = [0, 0], sizes = [2, 128], strides = [1, 1]} : vector<2x256xf32> to vector<2x128xf32>
    %186 = vector.extract_strided_slice %184 {offsets = [0, 128], sizes = [2, 128], strides = [1, 1]} : vector<2x256xf32> to vector<2x128xf32>
    %cst_48 = arith.constant dense<0xFF800000> : vector<2xf32>
    %187 = vector.multi_reduction <maximumf>, %186, %cst_48 [1] : vector<2x128xf32> to vector<2xf32>
    %188 = vector.shape_cast %187 : vector<2xf32> to vector<2x1xf32>
    %189 = vector.broadcast %188 : vector<2x1xf32> to vector<2x128xf32>
    %190 = arith.subf %186, %189 : vector<2x128xf32>
    %191 = math.exp %190 : vector<2x128xf32>
    %cst_49 = arith.constant dense<0.000000e+00> : vector<2xf32>
    %192 = vector.multi_reduction <add>, %191, %cst_49 [1] : vector<2x128xf32> to vector<2xf32>
    %193 = vector.shape_cast %192 : vector<2xf32> to vector<2x1xf32>
    %194 = math.log %193 : vector<2x1xf32>
    %195 = arith.addf %188, %194 : vector<2x1xf32>
    %196 = vector.broadcast %195 : vector<2x1xf32> to vector<2x128xf32>
    %197 = arith.subf %186, %196 : vector<2x128xf32>
    %c2 = arith.constant 2 : index
    %c0_50 = arith.constant 0 : index
    %c0_51 = arith.constant 0 : index
    %198 = vector.load %arg6[%c2, %c0_50, %c0_51] : memref<10x2x128xf32, #tpu.memory_space<vmem>>, vector<1x2x128xf32>
    %199 = vector.shape_cast %198 : vector<1x2x128xf32> to vector<2x128xf32>
    %200 = vector.shape_cast %197 : vector<2x128xf32> to vector<1x2x128xf32>
    tpu.vector_store %arg6[%c2, %c0_50, %c0_51], %200 {strides = array<i32>} : memref<10x2x128xf32, #tpu.memory_space<vmem>>, vector<1x2x128xf32>,
    %201 = vector.broadcast %188 : vector<2x1xf32> to vector<2x128xf32>
    %202 = arith.cmpf oge, %186, %201 : vector<2x128xf32>
    %c128_i32_52 = arith.constant 128 : i32
    %203 = vector.broadcast %c128_i32_52 : i32 to vector<2x128xi32>
    %204 = arith.select %202, %3, %203 : vector<2x128xi1>, vector<2x128xi32>
    %cst_53 = arith.constant dense<2147483647> : vector<2xi32>
    %205 = vector.multi_reduction <minsi>, %204, %cst_53 [1] : vector<2x128xi32> to vector<2xi32>
    %206 = vector.shape_cast %205 : vector<2xi32> to vector<2x1xi32>
    %207 = vector.broadcast %206 : vector<2x1xi32> to vector<2x128xi32>
    %208 = arith.cmpi eq, %3, %207 : vector<2x128xi32>
    %209 = arith.extui %208 : vector<2x128xi1> to vector<2x128xi32>
    %210 = arith.sitofp %209 : vector<2x128xi32> to vector<2x128xf32>
    %211 = arith.truncf %210 : vector<2x128xf32> to vector<2x128xbf16>
    %cst_54 = arith.constant dense<0.000000e+00> : vector<2x128xf32>
    %212 = tpu.matmul %211, %0, %cst_54 {dimension_numbers = #tpu.dot_dimension_numbers<[1], [0], [0], [1], [0, 0, 1, 1], [], []>} : vector<2x128xbf16>, vector<128x128xbf16>, vector<2x128xf32> -> vector<2x128xf32>
    %c2_55 = arith.constant 2 : index
    %c0_56 = arith.constant 0 : index
    %c0_57 = arith.constant 0 : index
    %213 = vector.load %arg5[%c2_55, %c0_56, %c0_57] : memref<10x1x128xf32, #tpu.memory_space<vmem>>, vector<1x1x128xf32>
    %214 = vector.shape_cast %213 : vector<1x1x128xf32> to vector<1x128xf32>
    %c2_58 = arith.constant 2 : index
    %c0_59 = arith.constant 0 : index
    %c0_60 = arith.constant 0 : index
    %215 = vector.load %arg4[%c2_58, %c0_59, %c0_60] : memref<10x2x128xf32, #tpu.memory_space<vmem>>, vector<1x2x128xf32>
    %216 = vector.shape_cast %215 : vector<1x2x128xf32> to vector<2x128xf32>
    %217 = vector.broadcast %214 : vector<1x128xf32> to vector<2x128xf32>
    %218 = arith.mulf %217, %216 : vector<2x128xf32>
    %cst_61 = arith.constant 1.000000e+00 : f32
    %219 = vector.broadcast %cst_61 : f32 to vector<1x128xf32>
    %220 = arith.subf %219, %214 : vector<1x128xf32>
    %221 = vector.broadcast %220 : vector<1x128xf32> to vector<2x128xf32>
    %222 = arith.mulf %221, %212 : vector<2x128xf32>
    %223 = arith.addf %218, %222 : vector<2x128xf32>
    %224 = vector.extract_strided_slice %223 {offsets = [0, 0], sizes = [2, 32], strides = [1, 1]} : vector<2x128xf32> to vector<2x32xf32>
    %225 = vector.extract_strided_slice %185 {offsets = [0, 0], sizes = [2, 32], strides = [1, 1]} : vector<2x128xf32> to vector<2x32xf32>
    %226 = arith.addf %224, %225 : vector<2x32xf32>
    %227 = arith.negf %226 : vector<2x32xf32>
    %228 = math.exp %227 : vector<2x32xf32>
    %cst_62 = arith.constant 1.000000e+00 : f32
    %229 = vector.broadcast %cst_62 : f32 to vector<2x32xf32>
    %230 = arith.addf %229, %228 : vector<2x32xf32>
    %231 = arith.divf %229, %230 : vector<2x32xf32>
    %232 = vector.extract_strided_slice %223 {offsets = [0, 32], sizes = [2, 32], strides = [1, 1]} : vector<2x128xf32> to vector<2x32xf32>
    %233 = vector.extract_strided_slice %185 {offsets = [0, 32], sizes = [2, 32], strides = [1, 1]} : vector<2x128xf32> to vector<2x32xf32>
    %234 = arith.addf %232, %233 : vector<2x32xf32>
    %235 = arith.negf %234 : vector<2x32xf32>
    %236 = math.exp %235 : vector<2x32xf32>
    %cst_63 = arith.constant 1.000000e+00 : f32
    %237 = vector.broadcast %cst_63 : f32 to vector<2x32xf32>
    %238 = arith.addf %237, %236 : vector<2x32xf32>
    %239 = arith.divf %237, %238 : vector<2x32xf32>
    %240 = vector.extract_strided_slice %223 {offsets = [0, 64], sizes = [2, 32], strides = [1, 1]} : vector<2x128xf32> to vector<2x32xf32>
    %241 = vector.extract_strided_slice %185 {offsets = [0, 64], sizes = [2, 32], strides = [1, 1]} : vector<2x128xf32> to vector<2x32xf32>
    %242 = arith.mulf %231, %241 : vector<2x32xf32>
    %243 = arith.addf %240, %242 : vector<2x32xf32>
    %244 = math.tanh %243 : vector<2x32xf32>
    %cst_64 = arith.constant 1.000000e+00 : f32
    %245 = vector.broadcast %cst_64 : f32 to vector<2x32xf32>
    %246 = arith.subf %245, %239 : vector<2x32xf32>
    %247 = arith.mulf %246, %244 : vector<2x32xf32>
    %248 = arith.mulf %239, %180 : vector<2x32xf32>
    %249 = arith.addf %247, %248 : vector<2x32xf32>
    %250 = arith.truncf %249 : vector<2x32xf32> to vector<2x32xbf16>
    %cst_65 = arith.constant dense<0.000000e+00> : vector<2x256xf32>
    %251 = tpu.matmul %250, %1, %cst_65 {dimension_numbers = #tpu.dot_dimension_numbers<[1], [0], [0], [1], [0, 0, 1, 1], [], []>} : vector<2x32xbf16>, vector<32x256xbf16>, vector<2x256xf32> -> vector<2x256xf32>
    %252 = vector.broadcast %2 : vector<1x256xf32> to vector<2x256xf32>
    %253 = arith.addf %251, %252 : vector<2x256xf32>
    %254 = vector.extract_strided_slice %253 {offsets = [0, 0], sizes = [2, 128], strides = [1, 1]} : vector<2x256xf32> to vector<2x128xf32>
    %255 = vector.extract_strided_slice %253 {offsets = [0, 128], sizes = [2, 128], strides = [1, 1]} : vector<2x256xf32> to vector<2x128xf32>
    %cst_66 = arith.constant dense<0xFF800000> : vector<2xf32>
    %256 = vector.multi_reduction <maximumf>, %255, %cst_66 [1] : vector<2x128xf32> to vector<2xf32>
    %257 = vector.shape_cast %256 : vector<2xf32> to vector<2x1xf32>
    %258 = vector.broadcast %257 : vector<2x1xf32> to vector<2x128xf32>
    %259 = arith.subf %255, %258 : vector<2x128xf32>
    %260 = math.exp %259 : vector<2x128xf32>
    %cst_67 = arith.constant dense<0.000000e+00> : vector<2xf32>
    %261 = vector.multi_reduction <add>, %260, %cst_67 [1] : vector<2x128xf32> to vector<2xf32>
    %262 = vector.shape_cast %261 : vector<2xf32> to vector<2x1xf32>
    %263 = math.log %262 : vector<2x1xf32>
    %264 = arith.addf %257, %263 : vector<2x1xf32>
    %265 = vector.broadcast %264 : vector<2x1xf32> to vector<2x128xf32>
    %266 = arith.subf %255, %265 : vector<2x128xf32>
    %c3 = arith.constant 3 : index
    %c0_68 = arith.constant 0 : index
    %c0_69 = arith.constant 0 : index
    %267 = vector.load %arg6[%c3, %c0_68, %c0_69] : memref<10x2x128xf32, #tpu.memory_space<vmem>>, vector<1x2x128xf32>
    %268 = vector.shape_cast %267 : vector<1x2x128xf32> to vector<2x128xf32>
    %269 = vector.shape_cast %266 : vector<2x128xf32> to vector<1x2x128xf32>
    tpu.vector_store %arg6[%c3, %c0_68, %c0_69], %269 {strides = array<i32>} : memref<10x2x128xf32, #tpu.memory_space<vmem>>, vector<1x2x128xf32>,
    %270 = vector.broadcast %257 : vector<2x1xf32> to vector<2x128xf32>
    %271 = arith.cmpf oge, %255, %270 : vector<2x128xf32>
    %c128_i32_70 = arith.constant 128 : i32
    %272 = vector.broadcast %c128_i32_70 : i32 to vector<2x128xi32>
    %273 = arith.select %271, %3, %272 : vector<2x128xi1>, vector<2x128xi32>
    %cst_71 = arith.constant dense<2147483647> : vector<2xi32>
    %274 = vector.multi_reduction <minsi>, %273, %cst_71 [1] : vector<2x128xi32> to vector<2xi32>
    %275 = vector.shape_cast %274 : vector<2xi32> to vector<2x1xi32>
    %276 = vector.broadcast %275 : vector<2x1xi32> to vector<2x128xi32>
    %277 = arith.cmpi eq, %3, %276 : vector<2x128xi32>
    %278 = arith.extui %277 : vector<2x128xi1> to vector<2x128xi32>
    %279 = arith.sitofp %278 : vector<2x128xi32> to vector<2x128xf32>
    %280 = arith.truncf %279 : vector<2x128xf32> to vector<2x128xbf16>
    %cst_72 = arith.constant dense<0.000000e+00> : vector<2x128xf32>
    %281 = tpu.matmul %280, %0, %cst_72 {dimension_numbers = #tpu.dot_dimension_numbers<[1], [0], [0], [1], [0, 0, 1, 1], [], []>} : vector<2x128xbf16>, vector<128x128xbf16>, vector<2x128xf32> -> vector<2x128xf32>
    %c3_73 = arith.constant 3 : index
    %c0_74 = arith.constant 0 : index
    %c0_75 = arith.constant 0 : index
    %282 = vector.load %arg5[%c3_73, %c0_74, %c0_75] : memref<10x1x128xf32, #tpu.memory_space<vmem>>, vector<1x1x128xf32>
    %283 = vector.shape_cast %282 : vector<1x1x128xf32> to vector<1x128xf32>
    %c3_76 = arith.constant 3 : index
    %c0_77 = arith.constant 0 : index
    %c0_78 = arith.constant 0 : index
    %284 = vector.load %arg4[%c3_76, %c0_77, %c0_78] : memref<10x2x128xf32, #tpu.memory_space<vmem>>, vector<1x2x128xf32>
    %285 = vector.shape_cast %284 : vector<1x2x128xf32> to vector<2x128xf32>
    %286 = vector.broadcast %283 : vector<1x128xf32> to vector<2x128xf32>
    %287 = arith.mulf %286, %285 : vector<2x128xf32>
    %cst_79 = arith.constant 1.000000e+00 : f32
    %288 = vector.broadcast %cst_79 : f32 to vector<1x128xf32>
    %289 = arith.subf %288, %283 : vector<1x128xf32>
    %290 = vector.broadcast %289 : vector<1x128xf32> to vector<2x128xf32>
    %291 = arith.mulf %290, %281 : vector<2x128xf32>
    %292 = arith.addf %287, %291 : vector<2x128xf32>
    %293 = vector.extract_strided_slice %292 {offsets = [0, 0], sizes = [2, 32], strides = [1, 1]} : vector<2x128xf32> to vector<2x32xf32>
    %294 = vector.extract_strided_slice %254 {offsets = [0, 0], sizes = [2, 32], strides = [1, 1]} : vector<2x128xf32> to vector<2x32xf32>
    %295 = arith.addf %293, %294 : vector<2x32xf32>
    %296 = arith.negf %295 : vector<2x32xf32>
    %297 = math.exp %296 : vector<2x32xf32>
    %cst_80 = arith.constant 1.000000e+00 : f32
    %298 = vector.broadcast %cst_80 : f32 to vector<2x32xf32>
    %299 = arith.addf %298, %297 : vector<2x32xf32>
    %300 = arith.divf %298, %299 : vector<2x32xf32>
    %301 = vector.extract_strided_slice %292 {offsets = [0, 32], sizes = [2, 32], strides = [1, 1]} : vector<2x128xf32> to vector<2x32xf32>
    %302 = vector.extract_strided_slice %254 {offsets = [0, 32], sizes = [2, 32], strides = [1, 1]} : vector<2x128xf32> to vector<2x32xf32>
    %303 = arith.addf %301, %302 : vector<2x32xf32>
    %304 = arith.negf %303 : vector<2x32xf32>
    %305 = math.exp %304 : vector<2x32xf32>
    %cst_81 = arith.constant 1.000000e+00 : f32
    %306 = vector.broadcast %cst_81 : f32 to vector<2x32xf32>
    %307 = arith.addf %306, %305 : vector<2x32xf32>
    %308 = arith.divf %306, %307 : vector<2x32xf32>
    %309 = vector.extract_strided_slice %292 {offsets = [0, 64], sizes = [2, 32], strides = [1, 1]} : vector<2x128xf32> to vector<2x32xf32>
    %310 = vector.extract_strided_slice %254 {offsets = [0, 64], sizes = [2, 32], strides = [1, 1]} : vector<2x128xf32> to vector<2x32xf32>
    %311 = arith.mulf %300, %310 : vector<2x32xf32>
    %312 = arith.addf %309, %311 : vector<2x32xf32>
    %313 = math.tanh %312 : vector<2x32xf32>
    %cst_82 = arith.constant 1.000000e+00 : f32
    %314 = vector.broadcast %cst_82 : f32 to vector<2x32xf32>
    %315 = arith.subf %314, %308 : vector<2x32xf32>
    %316 = arith.mulf %315, %313 : vector<2x32xf32>
    %317 = arith.mulf %308, %249 : vector<2x32xf32>
    %318 = arith.addf %316, %317 : vector<2x32xf32>
    %319 = arith.truncf %318 : vector<2x32xf32> to vector<2x32xbf16>
    %cst_83 = arith.constant dense<0.000000e+00> : vector<2x256xf32>
    %320 = tpu.matmul %319, %1, %cst_83 {dimension_numbers = #tpu.dot_dimension_numbers<[1], [0], [0], [1], [0, 0, 1, 1], [], []>} : vector<2x32xbf16>, vector<32x256xbf16>, vector<2x256xf32> -> vector<2x256xf32>
    %321 = vector.broadcast %2 : vector<1x256xf32> to vector<2x256xf32>
    %322 = arith.addf %320, %321 : vector<2x256xf32>
    %323 = vector.extract_strided_slice %322 {offsets = [0, 0], sizes = [2, 128], strides = [1, 1]} : vector<2x256xf32> to vector<2x128xf32>
    %324 = vector.extract_strided_slice %322 {offsets = [0, 128], sizes = [2, 128], strides = [1, 1]} : vector<2x256xf32> to vector<2x128xf32>
    %cst_84 = arith.constant dense<0xFF800000> : vector<2xf32>
    %325 = vector.multi_reduction <maximumf>, %324, %cst_84 [1] : vector<2x128xf32> to vector<2xf32>
    %326 = vector.shape_cast %325 : vector<2xf32> to vector<2x1xf32>
    %327 = vector.broadcast %326 : vector<2x1xf32> to vector<2x128xf32>
    %328 = arith.subf %324, %327 : vector<2x128xf32>
    %329 = math.exp %328 : vector<2x128xf32>
    %cst_85 = arith.constant dense<0.000000e+00> : vector<2xf32>
    %330 = vector.multi_reduction <add>, %329, %cst_85 [1] : vector<2x128xf32> to vector<2xf32>
    %331 = vector.shape_cast %330 : vector<2xf32> to vector<2x1xf32>
    %332 = math.log %331 : vector<2x1xf32>
    %333 = arith.addf %326, %332 : vector<2x1xf32>
    %334 = vector.broadcast %333 : vector<2x1xf32> to vector<2x128xf32>
    %335 = arith.subf %324, %334 : vector<2x128xf32>
    %c4 = arith.constant 4 : index
    %c0_86 = arith.constant 0 : index
    %c0_87 = arith.constant 0 : index
    %336 = vector.load %arg6[%c4, %c0_86, %c0_87] : memref<10x2x128xf32, #tpu.memory_space<vmem>>, vector<1x2x128xf32>
    %337 = vector.shape_cast %336 : vector<1x2x128xf32> to vector<2x128xf32>
    %338 = vector.shape_cast %335 : vector<2x128xf32> to vector<1x2x128xf32>
    tpu.vector_store %arg6[%c4, %c0_86, %c0_87], %338 {strides = array<i32>} : memref<10x2x128xf32, #tpu.memory_space<vmem>>, vector<1x2x128xf32>,
    %339 = vector.broadcast %326 : vector<2x1xf32> to vector<2x128xf32>
    %340 = arith.cmpf oge, %324, %339 : vector<2x128xf32>
    %c128_i32_88 = arith.constant 128 : i32
    %341 = vector.broadcast %c128_i32_88 : i32 to vector<2x128xi32>
    %342 = arith.select %340, %3, %341 : vector<2x128xi1>, vector<2x128xi32>
    %cst_89 = arith.constant dense<2147483647> : vector<2xi32>
    %343 = vector.multi_reduction <minsi>, %342, %cst_89 [1] : vector<2x128xi32> to vector<2xi32>
    %344 = vector.shape_cast %343 : vector<2xi32> to vector<2x1xi32>
    %345 = vector.broadcast %344 : vector<2x1xi32> to vector<2x128xi32>
    %346 = arith.cmpi eq, %3, %345 : vector<2x128xi32>
    %347 = arith.extui %346 : vector<2x128xi1> to vector<2x128xi32>
    %348 = arith.sitofp %347 : vector<2x128xi32> to vector<2x128xf32>
    %349 = arith.truncf %348 : vector<2x128xf32> to vector<2x128xbf16>
    %cst_90 = arith.constant dense<0.000000e+00> : vector<2x128xf32>
    %350 = tpu.matmul %349, %0, %cst_90 {dimension_numbers = #tpu.dot_dimension_numbers<[1], [0], [0], [1], [0, 0, 1, 1], [], []>} : vector<2x128xbf16>, vector<128x128xbf16>, vector<2x128xf32> -> vector<2x128xf32>
    %c4_91 = arith.constant 4 : index
    %c0_92 = arith.constant 0 : index
    %c0_93 = arith.constant 0 : index
    %351 = vector.load %arg5[%c4_91, %c0_92, %c0_93] : memref<10x1x128xf32, #tpu.memory_space<vmem>>, vector<1x1x128xf32>
    %352 = vector.shape_cast %351 : vector<1x1x128xf32> to vector<1x128xf32>
    %c4_94 = arith.constant 4 : index
    %c0_95 = arith.constant 0 : index
    %c0_96 = arith.constant 0 : index
    %353 = vector.load %arg4[%c4_94, %c0_95, %c0_96] : memref<10x2x128xf32, #tpu.memory_space<vmem>>, vector<1x2x128xf32>
    %354 = vector.shape_cast %353 : vector<1x2x128xf32> to vector<2x128xf32>
    %355 = vector.broadcast %352 : vector<1x128xf32> to vector<2x128xf32>
    %356 = arith.mulf %355, %354 : vector<2x128xf32>
    %cst_97 = arith.constant 1.000000e+00 : f32
    %357 = vector.broadcast %cst_97 : f32 to vector<1x128xf32>
    %358 = arith.subf %357, %352 : vector<1x128xf32>
    %359 = vector.broadcast %358 : vector<1x128xf32> to vector<2x128xf32>
    %360 = arith.mulf %359, %350 : vector<2x128xf32>
    %361 = arith.addf %356, %360 : vector<2x128xf32>
    %362 = vector.extract_strided_slice %361 {offsets = [0, 0], sizes = [2, 32], strides = [1, 1]} : vector<2x128xf32> to vector<2x32xf32>
    %363 = vector.extract_strided_slice %323 {offsets = [0, 0], sizes = [2, 32], strides = [1, 1]} : vector<2x128xf32> to vector<2x32xf32>
    %364 = arith.addf %362, %363 : vector<2x32xf32>
    %365 = arith.negf %364 : vector<2x32xf32>
    %366 = math.exp %365 : vector<2x32xf32>
    %cst_98 = arith.constant 1.000000e+00 : f32
    %367 = vector.broadcast %cst_98 : f32 to vector<2x32xf32>
    %368 = arith.addf %367, %366 : vector<2x32xf32>
    %369 = arith.divf %367, %368 : vector<2x32xf32>
    %370 = vector.extract_strided_slice %361 {offsets = [0, 32], sizes = [2, 32], strides = [1, 1]} : vector<2x128xf32> to vector<2x32xf32>
    %371 = vector.extract_strided_slice %323 {offsets = [0, 32], sizes = [2, 32], strides = [1, 1]} : vector<2x128xf32> to vector<2x32xf32>
    %372 = arith.addf %370, %371 : vector<2x32xf32>
    %373 = arith.negf %372 : vector<2x32xf32>
    %374 = math.exp %373 : vector<2x32xf32>
    %cst_99 = arith.constant 1.000000e+00 : f32
    %375 = vector.broadcast %cst_99 : f32 to vector<2x32xf32>
    %376 = arith.addf %375, %374 : vector<2x32xf32>
    %377 = arith.divf %375, %376 : vector<2x32xf32>
    %378 = vector.extract_strided_slice %361 {offsets = [0, 64], sizes = [2, 32], strides = [1, 1]} : vector<2x128xf32> to vector<2x32xf32>
    %379 = vector.extract_strided_slice %323 {offsets = [0, 64], sizes = [2, 32], strides = [1, 1]} : vector<2x128xf32> to vector<2x32xf32>
    %380 = arith.mulf %369, %379 : vector<2x32xf32>
    %381 = arith.addf %378, %380 : vector<2x32xf32>
    %382 = math.tanh %381 : vector<2x32xf32>
    %cst_100 = arith.constant 1.000000e+00 : f32
    %383 = vector.broadcast %cst_100 : f32 to vector<2x32xf32>
    %384 = arith.subf %383, %377 : vector<2x32xf32>
    %385 = arith.mulf %384, %382 : vector<2x32xf32>
    %386 = arith.mulf %377, %318 : vector<2x32xf32>
    %387 = arith.addf %385, %386 : vector<2x32xf32>
    %388 = arith.truncf %387 : vector<2x32xf32> to vector<2x32xbf16>
    %cst_101 = arith.constant dense<0.000000e+00> : vector<2x256xf32>
    %389 = tpu.matmul %388, %1, %cst_101 {dimension_numbers = #tpu.dot_dimension_numbers<[1], [0], [0], [1], [0, 0, 1, 1], [], []>} : vector<2x32xbf16>, vector<32x256xbf16>, vector<2x256xf32> -> vector<2x256xf32>
    %390 = vector.broadcast %2 : vector<1x256xf32> to vector<2x256xf32>
    %391 = arith.addf %389, %390 : vector<2x256xf32>
    %392 = vector.extract_strided_slice %391 {offsets = [0, 0], sizes = [2, 128], strides = [1, 1]} : vector<2x256xf32> to vector<2x128xf32>
    %393 = vector.extract_strided_slice %391 {offsets = [0, 128], sizes = [2, 128], strides = [1, 1]} : vector<2x256xf32> to vector<2x128xf32>
    %cst_102 = arith.constant dense<0xFF800000> : vector<2xf32>
    %394 = vector.multi_reduction <maximumf>, %393, %cst_102 [1] : vector<2x128xf32> to vector<2xf32>
    %395 = vector.shape_cast %394 : vector<2xf32> to vector<2x1xf32>
    %396 = vector.broadcast %395 : vector<2x1xf32> to vector<2x128xf32>
    %397 = arith.subf %393, %396 : vector<2x128xf32>
    %398 = math.exp %397 : vector<2x128xf32>
    %cst_103 = arith.constant dense<0.000000e+00> : vector<2xf32>
    %399 = vector.multi_reduction <add>, %398, %cst_103 [1] : vector<2x128xf32> to vector<2xf32>
    %400 = vector.shape_cast %399 : vector<2xf32> to vector<2x1xf32>
    %401 = math.log %400 : vector<2x1xf32>
    %402 = arith.addf %395, %401 : vector<2x1xf32>
    %403 = vector.broadcast %402 : vector<2x1xf32> to vector<2x128xf32>
    %404 = arith.subf %393, %403 : vector<2x128xf32>
    %c5 = arith.constant 5 : index
    %c0_104 = arith.constant 0 : index
    %c0_105 = arith.constant 0 : index
    %405 = vector.load %arg6[%c5, %c0_104, %c0_105] : memref<10x2x128xf32, #tpu.memory_space<vmem>>, vector<1x2x128xf32>
    %406 = vector.shape_cast %405 : vector<1x2x128xf32> to vector<2x128xf32>
    %407 = vector.shape_cast %404 : vector<2x128xf32> to vector<1x2x128xf32>
    tpu.vector_store %arg6[%c5, %c0_104, %c0_105], %407 {strides = array<i32>} : memref<10x2x128xf32, #tpu.memory_space<vmem>>, vector<1x2x128xf32>,
    %408 = vector.broadcast %395 : vector<2x1xf32> to vector<2x128xf32>
    %409 = arith.cmpf oge, %393, %408 : vector<2x128xf32>
    %c128_i32_106 = arith.constant 128 : i32
    %410 = vector.broadcast %c128_i32_106 : i32 to vector<2x128xi32>
    %411 = arith.select %409, %3, %410 : vector<2x128xi1>, vector<2x128xi32>
    %cst_107 = arith.constant dense<2147483647> : vector<2xi32>
    %412 = vector.multi_reduction <minsi>, %411, %cst_107 [1] : vector<2x128xi32> to vector<2xi32>
    %413 = vector.shape_cast %412 : vector<2xi32> to vector<2x1xi32>
    %414 = vector.broadcast %413 : vector<2x1xi32> to vector<2x128xi32>
    %415 = arith.cmpi eq, %3, %414 : vector<2x128xi32>
    %416 = arith.extui %415 : vector<2x128xi1> to vector<2x128xi32>
    %417 = arith.sitofp %416 : vector<2x128xi32> to vector<2x128xf32>
    %418 = arith.truncf %417 : vector<2x128xf32> to vector<2x128xbf16>
    %cst_108 = arith.constant dense<0.000000e+00> : vector<2x128xf32>
    %419 = tpu.matmul %418, %0, %cst_108 {dimension_numbers = #tpu.dot_dimension_numbers<[1], [0], [0], [1], [0, 0, 1, 1], [], []>} : vector<2x128xbf16>, vector<128x128xbf16>, vector<2x128xf32> -> vector<2x128xf32>
    %c5_109 = arith.constant 5 : index
    %c0_110 = arith.constant 0 : index
    %c0_111 = arith.constant 0 : index
    %420 = vector.load %arg5[%c5_109, %c0_110, %c0_111] : memref<10x1x128xf32, #tpu.memory_space<vmem>>, vector<1x1x128xf32>
    %421 = vector.shape_cast %420 : vector<1x1x128xf32> to vector<1x128xf32>
    %c5_112 = arith.constant 5 : index
    %c0_113 = arith.constant 0 : index
    %c0_114 = arith.constant 0 : index
    %422 = vector.load %arg4[%c5_112, %c0_113, %c0_114] : memref<10x2x128xf32, #tpu.memory_space<vmem>>, vector<1x2x128xf32>
    %423 = vector.shape_cast %422 : vector<1x2x128xf32> to vector<2x128xf32>
    %424 = vector.broadcast %421 : vector<1x128xf32> to vector<2x128xf32>
    %425 = arith.mulf %424, %423 : vector<2x128xf32>
    %cst_115 = arith.constant 1.000000e+00 : f32
    %426 = vector.broadcast %cst_115 : f32 to vector<1x128xf32>
    %427 = arith.subf %426, %421 : vector<1x128xf32>
    %428 = vector.broadcast %427 : vector<1x128xf32> to vector<2x128xf32>
    %429 = arith.mulf %428, %419 : vector<2x128xf32>
    %430 = arith.addf %425, %429 : vector<2x128xf32>
    %431 = vector.extract_strided_slice %430 {offsets = [0, 0], sizes = [2, 32], strides = [1, 1]} : vector<2x128xf32> to vector<2x32xf32>
    %432 = vector.extract_strided_slice %392 {offsets = [0, 0], sizes = [2, 32], strides = [1, 1]} : vector<2x128xf32> to vector<2x32xf32>
    %433 = arith.addf %431, %432 : vector<2x32xf32>
    %434 = arith.negf %433 : vector<2x32xf32>
    %435 = math.exp %434 : vector<2x32xf32>
    %cst_116 = arith.constant 1.000000e+00 : f32
    %436 = vector.broadcast %cst_116 : f32 to vector<2x32xf32>
    %437 = arith.addf %436, %435 : vector<2x32xf32>
    %438 = arith.divf %436, %437 : vector<2x32xf32>
    %439 = vector.extract_strided_slice %430 {offsets = [0, 32], sizes = [2, 32], strides = [1, 1]} : vector<2x128xf32> to vector<2x32xf32>
    %440 = vector.extract_strided_slice %392 {offsets = [0, 32], sizes = [2, 32], strides = [1, 1]} : vector<2x128xf32> to vector<2x32xf32>
    %441 = arith.addf %439, %440 : vector<2x32xf32>
    %442 = arith.negf %441 : vector<2x32xf32>
    %443 = math.exp %442 : vector<2x32xf32>
    %cst_117 = arith.constant 1.000000e+00 : f32
    %444 = vector.broadcast %cst_117 : f32 to vector<2x32xf32>
    %445 = arith.addf %444, %443 : vector<2x32xf32>
    %446 = arith.divf %444, %445 : vector<2x32xf32>
    %447 = vector.extract_strided_slice %430 {offsets = [0, 64], sizes = [2, 32], strides = [1, 1]} : vector<2x128xf32> to vector<2x32xf32>
    %448 = vector.extract_strided_slice %392 {offsets = [0, 64], sizes = [2, 32], strides = [1, 1]} : vector<2x128xf32> to vector<2x32xf32>
    %449 = arith.mulf %438, %448 : vector<2x32xf32>
    %450 = arith.addf %447, %449 : vector<2x32xf32>
    %451 = math.tanh %450 : vector<2x32xf32>
    %cst_118 = arith.constant 1.000000e+00 : f32
    %452 = vector.broadcast %cst_118 : f32 to vector<2x32xf32>
    %453 = arith.subf %452, %446 : vector<2x32xf32>
    %454 = arith.mulf %453, %451 : vector<2x32xf32>
    %455 = arith.mulf %446, %387 : vector<2x32xf32>
    %456 = arith.addf %454, %455 : vector<2x32xf32>
    %457 = arith.truncf %456 : vector<2x32xf32> to vector<2x32xbf16>
    %cst_119 = arith.constant dense<0.000000e+00> : vector<2x256xf32>
    %458 = tpu.matmul %457, %1, %cst_119 {dimension_numbers = #tpu.dot_dimension_numbers<[1], [0], [0], [1], [0, 0, 1, 1], [], []>} : vector<2x32xbf16>, vector<32x256xbf16>, vector<2x256xf32> -> vector<2x256xf32>
    %459 = vector.broadcast %2 : vector<1x256xf32> to vector<2x256xf32>
    %460 = arith.addf %458, %459 : vector<2x256xf32>
    %461 = vector.extract_strided_slice %460 {offsets = [0, 0], sizes = [2, 128], strides = [1, 1]} : vector<2x256xf32> to vector<2x128xf32>
    %462 = vector.extract_strided_slice %460 {offsets = [0, 128], sizes = [2, 128], strides = [1, 1]} : vector<2x256xf32> to vector<2x128xf32>
    %cst_120 = arith.constant dense<0xFF800000> : vector<2xf32>
    %463 = vector.multi_reduction <maximumf>, %462, %cst_120 [1] : vector<2x128xf32> to vector<2xf32>
    %464 = vector.shape_cast %463 : vector<2xf32> to vector<2x1xf32>
    %465 = vector.broadcast %464 : vector<2x1xf32> to vector<2x128xf32>
    %466 = arith.subf %462, %465 : vector<2x128xf32>
    %467 = math.exp %466 : vector<2x128xf32>
    %cst_121 = arith.constant dense<0.000000e+00> : vector<2xf32>
    %468 = vector.multi_reduction <add>, %467, %cst_121 [1] : vector<2x128xf32> to vector<2xf32>
    %469 = vector.shape_cast %468 : vector<2xf32> to vector<2x1xf32>
    %470 = math.log %469 : vector<2x1xf32>
    %471 = arith.addf %464, %470 : vector<2x1xf32>
    %472 = vector.broadcast %471 : vector<2x1xf32> to vector<2x128xf32>
    %473 = arith.subf %462, %472 : vector<2x128xf32>
    %c6 = arith.constant 6 : index
    %c0_122 = arith.constant 0 : index
    %c0_123 = arith.constant 0 : index
    %474 = vector.load %arg6[%c6, %c0_122, %c0_123] : memref<10x2x128xf32, #tpu.memory_space<vmem>>, vector<1x2x128xf32>
    %475 = vector.shape_cast %474 : vector<1x2x128xf32> to vector<2x128xf32>
    %476 = vector.shape_cast %473 : vector<2x128xf32> to vector<1x2x128xf32>
    tpu.vector_store %arg6[%c6, %c0_122, %c0_123], %476 {strides = array<i32>} : memref<10x2x128xf32, #tpu.memory_space<vmem>>, vector<1x2x128xf32>,
    %477 = vector.broadcast %464 : vector<2x1xf32> to vector<2x128xf32>
    %478 = arith.cmpf oge, %462, %477 : vector<2x128xf32>
    %c128_i32_124 = arith.constant 128 : i32
    %479 = vector.broadcast %c128_i32_124 : i32 to vector<2x128xi32>
    %480 = arith.select %478, %3, %479 : vector<2x128xi1>, vector<2x128xi32>
    %cst_125 = arith.constant dense<2147483647> : vector<2xi32>
    %481 = vector.multi_reduction <minsi>, %480, %cst_125 [1] : vector<2x128xi32> to vector<2xi32>
    %482 = vector.shape_cast %481 : vector<2xi32> to vector<2x1xi32>
    %483 = vector.broadcast %482 : vector<2x1xi32> to vector<2x128xi32>
    %484 = arith.cmpi eq, %3, %483 : vector<2x128xi32>
    %485 = arith.extui %484 : vector<2x128xi1> to vector<2x128xi32>
    %486 = arith.sitofp %485 : vector<2x128xi32> to vector<2x128xf32>
    %487 = arith.truncf %486 : vector<2x128xf32> to vector<2x128xbf16>
    %cst_126 = arith.constant dense<0.000000e+00> : vector<2x128xf32>
    %488 = tpu.matmul %487, %0, %cst_126 {dimension_numbers = #tpu.dot_dimension_numbers<[1], [0], [0], [1], [0, 0, 1, 1], [], []>} : vector<2x128xbf16>, vector<128x128xbf16>, vector<2x128xf32> -> vector<2x128xf32>
    %c6_127 = arith.constant 6 : index
    %c0_128 = arith.constant 0 : index
    %c0_129 = arith.constant 0 : index
    %489 = vector.load %arg5[%c6_127, %c0_128, %c0_129] : memref<10x1x128xf32, #tpu.memory_space<vmem>>, vector<1x1x128xf32>
    %490 = vector.shape_cast %489 : vector<1x1x128xf32> to vector<1x128xf32>
    %c6_130 = arith.constant 6 : index
    %c0_131 = arith.constant 0 : index
    %c0_132 = arith.constant 0 : index
    %491 = vector.load %arg4[%c6_130, %c0_131, %c0_132] : memref<10x2x128xf32, #tpu.memory_space<vmem>>, vector<1x2x128xf32>
    %492 = vector.shape_cast %491 : vector<1x2x128xf32> to vector<2x128xf32>
    %493 = vector.broadcast %490 : vector<1x128xf32> to vector<2x128xf32>
    %494 = arith.mulf %493, %492 : vector<2x128xf32>
    %cst_133 = arith.constant 1.000000e+00 : f32
    %495 = vector.broadcast %cst_133 : f32 to vector<1x128xf32>
    %496 = arith.subf %495, %490 : vector<1x128xf32>
    %497 = vector.broadcast %496 : vector<1x128xf32> to vector<2x128xf32>
    %498 = arith.mulf %497, %488 : vector<2x128xf32>
    %499 = arith.addf %494, %498 : vector<2x128xf32>
    %500 = vector.extract_strided_slice %499 {offsets = [0, 0], sizes = [2, 32], strides = [1, 1]} : vector<2x128xf32> to vector<2x32xf32>
    %501 = vector.extract_strided_slice %461 {offsets = [0, 0], sizes = [2, 32], strides = [1, 1]} : vector<2x128xf32> to vector<2x32xf32>
    %502 = arith.addf %500, %501 : vector<2x32xf32>
    %503 = arith.negf %502 : vector<2x32xf32>
    %504 = math.exp %503 : vector<2x32xf32>
    %cst_134 = arith.constant 1.000000e+00 : f32
    %505 = vector.broadcast %cst_134 : f32 to vector<2x32xf32>
    %506 = arith.addf %505, %504 : vector<2x32xf32>
    %507 = arith.divf %505, %506 : vector<2x32xf32>
    %508 = vector.extract_strided_slice %499 {offsets = [0, 32], sizes = [2, 32], strides = [1, 1]} : vector<2x128xf32> to vector<2x32xf32>
    %509 = vector.extract_strided_slice %461 {offsets = [0, 32], sizes = [2, 32], strides = [1, 1]} : vector<2x128xf32> to vector<2x32xf32>
    %510 = arith.addf %508, %509 : vector<2x32xf32>
    %511 = arith.negf %510 : vector<2x32xf32>
    %512 = math.exp %511 : vector<2x32xf32>
    %cst_135 = arith.constant 1.000000e+00 : f32
    %513 = vector.broadcast %cst_135 : f32 to vector<2x32xf32>
    %514 = arith.addf %513, %512 : vector<2x32xf32>
    %515 = arith.divf %513, %514 : vector<2x32xf32>
    %516 = vector.extract_strided_slice %499 {offsets = [0, 64], sizes = [2, 32], strides = [1, 1]} : vector<2x128xf32> to vector<2x32xf32>
    %517 = vector.extract_strided_slice %461 {offsets = [0, 64], sizes = [2, 32], strides = [1, 1]} : vector<2x128xf32> to vector<2x32xf32>
    %518 = arith.mulf %507, %517 : vector<2x32xf32>
    %519 = arith.addf %516, %518 : vector<2x32xf32>
    %520 = math.tanh %519 : vector<2x32xf32>
    %cst_136 = arith.constant 1.000000e+00 : f32
    %521 = vector.broadcast %cst_136 : f32 to vector<2x32xf32>
    %522 = arith.subf %521, %515 : vector<2x32xf32>
    %523 = arith.mulf %522, %520 : vector<2x32xf32>
    %524 = arith.mulf %515, %456 : vector<2x32xf32>
    %525 = arith.addf %523, %524 : vector<2x32xf32>
    %526 = arith.truncf %525 : vector<2x32xf32> to vector<2x32xbf16>
    %cst_137 = arith.constant dense<0.000000e+00> : vector<2x256xf32>
    %527 = tpu.matmul %526, %1, %cst_137 {dimension_numbers = #tpu.dot_dimension_numbers<[1], [0], [0], [1], [0, 0, 1, 1], [], []>} : vector<2x32xbf16>, vector<32x256xbf16>, vector<2x256xf32> -> vector<2x256xf32>
    %528 = vector.broadcast %2 : vector<1x256xf32> to vector<2x256xf32>
    %529 = arith.addf %527, %528 : vector<2x256xf32>
    %530 = vector.extract_strided_slice %529 {offsets = [0, 0], sizes = [2, 128], strides = [1, 1]} : vector<2x256xf32> to vector<2x128xf32>
    %531 = vector.extract_strided_slice %529 {offsets = [0, 128], sizes = [2, 128], strides = [1, 1]} : vector<2x256xf32> to vector<2x128xf32>
    %cst_138 = arith.constant dense<0xFF800000> : vector<2xf32>
    %532 = vector.multi_reduction <maximumf>, %531, %cst_138 [1] : vector<2x128xf32> to vector<2xf32>
    %533 = vector.shape_cast %532 : vector<2xf32> to vector<2x1xf32>
    %534 = vector.broadcast %533 : vector<2x1xf32> to vector<2x128xf32>
    %535 = arith.subf %531, %534 : vector<2x128xf32>
    %536 = math.exp %535 : vector<2x128xf32>
    %cst_139 = arith.constant dense<0.000000e+00> : vector<2xf32>
    %537 = vector.multi_reduction <add>, %536, %cst_139 [1] : vector<2x128xf32> to vector<2xf32>
    %538 = vector.shape_cast %537 : vector<2xf32> to vector<2x1xf32>
    %539 = math.log %538 : vector<2x1xf32>
    %540 = arith.addf %533, %539 : vector<2x1xf32>
    %541 = vector.broadcast %540 : vector<2x1xf32> to vector<2x128xf32>
    %542 = arith.subf %531, %541 : vector<2x128xf32>
    %c7 = arith.constant 7 : index
    %c0_140 = arith.constant 0 : index
    %c0_141 = arith.constant 0 : index
    %543 = vector.load %arg6[%c7, %c0_140, %c0_141] : memref<10x2x128xf32, #tpu.memory_space<vmem>>, vector<1x2x128xf32>
    %544 = vector.shape_cast %543 : vector<1x2x128xf32> to vector<2x128xf32>
    %545 = vector.shape_cast %542 : vector<2x128xf32> to vector<1x2x128xf32>
    tpu.vector_store %arg6[%c7, %c0_140, %c0_141], %545 {strides = array<i32>} : memref<10x2x128xf32, #tpu.memory_space<vmem>>, vector<1x2x128xf32>,
    %546 = vector.broadcast %533 : vector<2x1xf32> to vector<2x128xf32>
    %547 = arith.cmpf oge, %531, %546 : vector<2x128xf32>
    %c128_i32_142 = arith.constant 128 : i32
    %548 = vector.broadcast %c128_i32_142 : i32 to vector<2x128xi32>
    %549 = arith.select %547, %3, %548 : vector<2x128xi1>, vector<2x128xi32>
    %cst_143 = arith.constant dense<2147483647> : vector<2xi32>
    %550 = vector.multi_reduction <minsi>, %549, %cst_143 [1] : vector<2x128xi32> to vector<2xi32>
    %551 = vector.shape_cast %550 : vector<2xi32> to vector<2x1xi32>
    %552 = vector.broadcast %551 : vector<2x1xi32> to vector<2x128xi32>
    %553 = arith.cmpi eq, %3, %552 : vector<2x128xi32>
    %554 = arith.extui %553 : vector<2x128xi1> to vector<2x128xi32>
    %555 = arith.sitofp %554 : vector<2x128xi32> to vector<2x128xf32>
    %556 = arith.truncf %555 : vector<2x128xf32> to vector<2x128xbf16>
    %cst_144 = arith.constant dense<0.000000e+00> : vector<2x128xf32>
    %557 = tpu.matmul %556, %0, %cst_144 {dimension_numbers = #tpu.dot_dimension_numbers<[1], [0], [0], [1], [0, 0, 1, 1], [], []>} : vector<2x128xbf16>, vector<128x128xbf16>, vector<2x128xf32> -> vector<2x128xf32>
    %c7_145 = arith.constant 7 : index
    %c0_146 = arith.constant 0 : index
    %c0_147 = arith.constant 0 : index
    %558 = vector.load %arg5[%c7_145, %c0_146, %c0_147] : memref<10x1x128xf32, #tpu.memory_space<vmem>>, vector<1x1x128xf32>
    %559 = vector.shape_cast %558 : vector<1x1x128xf32> to vector<1x128xf32>
    %c7_148 = arith.constant 7 : index
    %c0_149 = arith.constant 0 : index
    %c0_150 = arith.constant 0 : index
    %560 = vector.load %arg4[%c7_148, %c0_149, %c0_150] : memref<10x2x128xf32, #tpu.memory_space<vmem>>, vector<1x2x128xf32>
    %561 = vector.shape_cast %560 : vector<1x2x128xf32> to vector<2x128xf32>
    %562 = vector.broadcast %559 : vector<1x128xf32> to vector<2x128xf32>
    %563 = arith.mulf %562, %561 : vector<2x128xf32>
    %cst_151 = arith.constant 1.000000e+00 : f32
    %564 = vector.broadcast %cst_151 : f32 to vector<1x128xf32>
    %565 = arith.subf %564, %559 : vector<1x128xf32>
    %566 = vector.broadcast %565 : vector<1x128xf32> to vector<2x128xf32>
    %567 = arith.mulf %566, %557 : vector<2x128xf32>
    %568 = arith.addf %563, %567 : vector<2x128xf32>
    %569 = vector.extract_strided_slice %568 {offsets = [0, 0], sizes = [2, 32], strides = [1, 1]} : vector<2x128xf32> to vector<2x32xf32>
    %570 = vector.extract_strided_slice %530 {offsets = [0, 0], sizes = [2, 32], strides = [1, 1]} : vector<2x128xf32> to vector<2x32xf32>
    %571 = arith.addf %569, %570 : vector<2x32xf32>
    %572 = arith.negf %571 : vector<2x32xf32>
    %573 = math.exp %572 : vector<2x32xf32>
    %cst_152 = arith.constant 1.000000e+00 : f32
    %574 = vector.broadcast %cst_152 : f32 to vector<2x32xf32>
    %575 = arith.addf %574, %573 : vector<2x32xf32>
    %576 = arith.divf %574, %575 : vector<2x32xf32>
    %577 = vector.extract_strided_slice %568 {offsets = [0, 32], sizes = [2, 32], strides = [1, 1]} : vector<2x128xf32> to vector<2x32xf32>
    %578 = vector.extract_strided_slice %530 {offsets = [0, 32], sizes = [2, 32], strides = [1, 1]} : vector<2x128xf32> to vector<2x32xf32>
    %579 = arith.addf %577, %578 : vector<2x32xf32>
    %580 = arith.negf %579 : vector<2x32xf32>
    %581 = math.exp %580 : vector<2x32xf32>
    %cst_153 = arith.constant 1.000000e+00 : f32
    %582 = vector.broadcast %cst_153 : f32 to vector<2x32xf32>
    %583 = arith.addf %582, %581 : vector<2x32xf32>
    %584 = arith.divf %582, %583 : vector<2x32xf32>
    %585 = vector.extract_strided_slice %568 {offsets = [0, 64], sizes = [2, 32], strides = [1, 1]} : vector<2x128xf32> to vector<2x32xf32>
    %586 = vector.extract_strided_slice %530 {offsets = [0, 64], sizes = [2, 32], strides = [1, 1]} : vector<2x128xf32> to vector<2x32xf32>
    %587 = arith.mulf %576, %586 : vector<2x32xf32>
    %588 = arith.addf %585, %587 : vector<2x32xf32>
    %589 = math.tanh %588 : vector<2x32xf32>
    %cst_154 = arith.constant 1.000000e+00 : f32
    %590 = vector.broadcast %cst_154 : f32 to vector<2x32xf32>
    %591 = arith.subf %590, %584 : vector<2x32xf32>
    %592 = arith.mulf %591, %589 : vector<2x32xf32>
    %593 = arith.mulf %584, %525 : vector<2x32xf32>
    %594 = arith.addf %592, %593 : vector<2x32xf32>
    %595 = arith.truncf %594 : vector<2x32xf32> to vector<2x32xbf16>
    %cst_155 = arith.constant dense<0.000000e+00> : vector<2x256xf32>
    %596 = tpu.matmul %595, %1, %cst_155 {dimension_numbers = #tpu.dot_dimension_numbers<[1], [0], [0], [1], [0, 0, 1, 1], [], []>} : vector<2x32xbf16>, vector<32x256xbf16>, vector<2x256xf32> -> vector<2x256xf32>
    %597 = vector.broadcast %2 : vector<1x256xf32> to vector<2x256xf32>
    %598 = arith.addf %596, %597 : vector<2x256xf32>
    %599 = vector.extract_strided_slice %598 {offsets = [0, 0], sizes = [2, 128], strides = [1, 1]} : vector<2x256xf32> to vector<2x128xf32>
    %600 = vector.extract_strided_slice %598 {offsets = [0, 128], sizes = [2, 128], strides = [1, 1]} : vector<2x256xf32> to vector<2x128xf32>
    %cst_156 = arith.constant dense<0xFF800000> : vector<2xf32>
    %601 = vector.multi_reduction <maximumf>, %600, %cst_156 [1] : vector<2x128xf32> to vector<2xf32>
    %602 = vector.shape_cast %601 : vector<2xf32> to vector<2x1xf32>
    %603 = vector.broadcast %602 : vector<2x1xf32> to vector<2x128xf32>
    %604 = arith.subf %600, %603 : vector<2x128xf32>
    %605 = math.exp %604 : vector<2x128xf32>
    %cst_157 = arith.constant dense<0.000000e+00> : vector<2xf32>
    %606 = vector.multi_reduction <add>, %605, %cst_157 [1] : vector<2x128xf32> to vector<2xf32>
    %607 = vector.shape_cast %606 : vector<2xf32> to vector<2x1xf32>
    %608 = math.log %607 : vector<2x1xf32>
    %609 = arith.addf %602, %608 : vector<2x1xf32>
    %610 = vector.broadcast %609 : vector<2x1xf32> to vector<2x128xf32>
    %611 = arith.subf %600, %610 : vector<2x128xf32>
    %c8 = arith.constant 8 : index
    %c0_158 = arith.constant 0 : index
    %c0_159 = arith.constant 0 : index
    %612 = vector.load %arg6[%c8, %c0_158, %c0_159] : memref<10x2x128xf32, #tpu.memory_space<vmem>>, vector<1x2x128xf32>
    %613 = vector.shape_cast %612 : vector<1x2x128xf32> to vector<2x128xf32>
    %614 = vector.shape_cast %611 : vector<2x128xf32> to vector<1x2x128xf32>
    tpu.vector_store %arg6[%c8, %c0_158, %c0_159], %614 {strides = array<i32>} : memref<10x2x128xf32, #tpu.memory_space<vmem>>, vector<1x2x128xf32>,
    %615 = vector.broadcast %602 : vector<2x1xf32> to vector<2x128xf32>
    %616 = arith.cmpf oge, %600, %615 : vector<2x128xf32>
    %c128_i32_160 = arith.constant 128 : i32
    %617 = vector.broadcast %c128_i32_160 : i32 to vector<2x128xi32>
    %618 = arith.select %616, %3, %617 : vector<2x128xi1>, vector<2x128xi32>
    %cst_161 = arith.constant dense<2147483647> : vector<2xi32>
    %619 = vector.multi_reduction <minsi>, %618, %cst_161 [1] : vector<2x128xi32> to vector<2xi32>
    %620 = vector.shape_cast %619 : vector<2xi32> to vector<2x1xi32>
    %621 = vector.broadcast %620 : vector<2x1xi32> to vector<2x128xi32>
    %622 = arith.cmpi eq, %3, %621 : vector<2x128xi32>
    %623 = arith.extui %622 : vector<2x128xi1> to vector<2x128xi32>
    %624 = arith.sitofp %623 : vector<2x128xi32> to vector<2x128xf32>
    %625 = arith.truncf %624 : vector<2x128xf32> to vector<2x128xbf16>
    %cst_162 = arith.constant dense<0.000000e+00> : vector<2x128xf32>
    %626 = tpu.matmul %625, %0, %cst_162 {dimension_numbers = #tpu.dot_dimension_numbers<[1], [0], [0], [1], [0, 0, 1, 1], [], []>} : vector<2x128xbf16>, vector<128x128xbf16>, vector<2x128xf32> -> vector<2x128xf32>
    %c8_163 = arith.constant 8 : index
    %c0_164 = arith.constant 0 : index
    %c0_165 = arith.constant 0 : index
    %627 = vector.load %arg5[%c8_163, %c0_164, %c0_165] : memref<10x1x128xf32, #tpu.memory_space<vmem>>, vector<1x1x128xf32>
    %628 = vector.shape_cast %627 : vector<1x1x128xf32> to vector<1x128xf32>
    %c8_166 = arith.constant 8 : index
    %c0_167 = arith.constant 0 : index
    %c0_168 = arith.constant 0 : index
    %629 = vector.load %arg4[%c8_166, %c0_167, %c0_168] : memref<10x2x128xf32, #tpu.memory_space<vmem>>, vector<1x2x128xf32>
    %630 = vector.shape_cast %629 : vector<1x2x128xf32> to vector<2x128xf32>
    %631 = vector.broadcast %628 : vector<1x128xf32> to vector<2x128xf32>
    %632 = arith.mulf %631, %630 : vector<2x128xf32>
    %cst_169 = arith.constant 1.000000e+00 : f32
    %633 = vector.broadcast %cst_169 : f32 to vector<1x128xf32>
    %634 = arith.subf %633, %628 : vector<1x128xf32>
    %635 = vector.broadcast %634 : vector<1x128xf32> to vector<2x128xf32>
    %636 = arith.mulf %635, %626 : vector<2x128xf32>
    %637 = arith.addf %632, %636 : vector<2x128xf32>
    %638 = vector.extract_strided_slice %637 {offsets = [0, 0], sizes = [2, 32], strides = [1, 1]} : vector<2x128xf32> to vector<2x32xf32>
    %639 = vector.extract_strided_slice %599 {offsets = [0, 0], sizes = [2, 32], strides = [1, 1]} : vector<2x128xf32> to vector<2x32xf32>
    %640 = arith.addf %638, %639 : vector<2x32xf32>
    %641 = arith.negf %640 : vector<2x32xf32>
    %642 = math.exp %641 : vector<2x32xf32>
    %cst_170 = arith.constant 1.000000e+00 : f32
    %643 = vector.broadcast %cst_170 : f32 to vector<2x32xf32>
    %644 = arith.addf %643, %642 : vector<2x32xf32>
    %645 = arith.divf %643, %644 : vector<2x32xf32>
    %646 = vector.extract_strided_slice %637 {offsets = [0, 32], sizes = [2, 32], strides = [1, 1]} : vector<2x128xf32> to vector<2x32xf32>
    %647 = vector.extract_strided_slice %599 {offsets = [0, 32], sizes = [2, 32], strides = [1, 1]} : vector<2x128xf32> to vector<2x32xf32>
    %648 = arith.addf %646, %647 : vector<2x32xf32>
    %649 = arith.negf %648 : vector<2x32xf32>
    %650 = math.exp %649 : vector<2x32xf32>
    %cst_171 = arith.constant 1.000000e+00 : f32
    %651 = vector.broadcast %cst_171 : f32 to vector<2x32xf32>
    %652 = arith.addf %651, %650 : vector<2x32xf32>
    %653 = arith.divf %651, %652 : vector<2x32xf32>
    %654 = vector.extract_strided_slice %637 {offsets = [0, 64], sizes = [2, 32], strides = [1, 1]} : vector<2x128xf32> to vector<2x32xf32>
    %655 = vector.extract_strided_slice %599 {offsets = [0, 64], sizes = [2, 32], strides = [1, 1]} : vector<2x128xf32> to vector<2x32xf32>
    %656 = arith.mulf %645, %655 : vector<2x32xf32>
    %657 = arith.addf %654, %656 : vector<2x32xf32>
    %658 = math.tanh %657 : vector<2x32xf32>
    %cst_172 = arith.constant 1.000000e+00 : f32
    %659 = vector.broadcast %cst_172 : f32 to vector<2x32xf32>
    %660 = arith.subf %659, %653 : vector<2x32xf32>
    %661 = arith.mulf %660, %658 : vector<2x32xf32>
    %662 = arith.mulf %653, %594 : vector<2x32xf32>
    %663 = arith.addf %661, %662 : vector<2x32xf32>
    %664 = arith.truncf %663 : vector<2x32xf32> to vector<2x32xbf16>
    %cst_173 = arith.constant dense<0.000000e+00> : vector<2x256xf32>
    %665 = tpu.matmul %664, %1, %cst_173 {dimension_numbers = #tpu.dot_dimension_numbers<[1], [0], [0], [1], [0, 0, 1, 1], [], []>} : vector<2x32xbf16>, vector<32x256xbf16>, vector<2x256xf32> -> vector<2x256xf32>
    %666 = vector.broadcast %2 : vector<1x256xf32> to vector<2x256xf32>
    %667 = arith.addf %665, %666 : vector<2x256xf32>
    %668 = vector.extract_strided_slice %667 {offsets = [0, 128], sizes = [2, 128], strides = [1, 1]} : vector<2x256xf32> to vector<2x128xf32>
    %cst_174 = arith.constant dense<0xFF800000> : vector<2xf32>
    %669 = vector.multi_reduction <maximumf>, %668, %cst_174 [1] : vector<2x128xf32> to vector<2xf32>
    %670 = vector.shape_cast %669 : vector<2xf32> to vector<2x1xf32>
    %671 = vector.broadcast %670 : vector<2x1xf32> to vector<2x128xf32>
    %672 = arith.subf %668, %671 : vector<2x128xf32>
    %673 = math.exp %672 : vector<2x128xf32>
    %cst_175 = arith.constant dense<0.000000e+00> : vector<2xf32>
    %674 = vector.multi_reduction <add>, %673, %cst_175 [1] : vector<2x128xf32> to vector<2xf32>
    %675 = vector.shape_cast %674 : vector<2xf32> to vector<2x1xf32>
    %676 = math.log %675 : vector<2x1xf32>
    %677 = arith.addf %670, %676 : vector<2x1xf32>
    %678 = vector.broadcast %677 : vector<2x1xf32> to vector<2x128xf32>
    %679 = arith.subf %668, %678 : vector<2x128xf32>
    %c9 = arith.constant 9 : index
    %c0_176 = arith.constant 0 : index
    %c0_177 = arith.constant 0 : index
    %680 = vector.load %arg6[%c9, %c0_176, %c0_177] : memref<10x2x128xf32, #tpu.memory_space<vmem>>, vector<1x2x128xf32>
    %681 = vector.shape_cast %680 : vector<1x2x128xf32> to vector<2x128xf32>
    %682 = vector.shape_cast %679 : vector<2x128xf32> to vector<1x2x128xf32>
    tpu.vector_store %arg6[%c9, %c0_176, %c0_177], %682 {strides = array<i32>} : memref<10x2x128xf32, #tpu.memory_space<vmem>>, vector<1x2x128xf32>,
    %c0_178 = arith.constant 0 : index
    %c0_179 = arith.constant 0 : index
    %683 = vector.load %arg7[%c0_178, %c0_179] : memref<2x32xf32, #tpu.memory_space<vmem>>, vector<2x32xf32>
    tpu.vector_store %arg7[%c0_178, %c0_179], %663 {strides = array<i32>} : memref<2x32xf32, #tpu.memory_space<vmem>>, vector<2x32xf32>,
    return
  }
}

</mosaic_0001>

<bundles_post_ra>
// kernel: tpu_custom_call.1
= control target key start
LH: loop header
LB: loop body
LE: loop exit
PB: predicated region body
PF: predicated region fallthrough
CT: control target
= control target key end

     0   :  { %13 = vsyncpa [#allocation3], 0  ;;  %s3254_s0 = inlined_call_operand.hbm [shape: bf16[128,128], index: 0, kind: input, shape index: {}]   ;;  %s3255_s1 = inlined_call_operand.hbm [shape: bf16[32,256], index: 1, kind: input, shape index: {}]   ;;  %s3256_s2 = inlined_call_operand.vmem [shape: f32[1,256], index: 2, kind: input, shape index: {}]   ;;  %s3257_s3 = inlined_call_operand.vmem [shape: f32[2,32], index: 3, kind: input, shape index: {}]   ;;  %s3258_s4 = inlined_call_operand.hbm [shape: f32[10,2,128], index: 4, kind: input, shape index: {}]   ;;  %s3259_s5 = inlined_call_operand.hbm [shape: f32[10,1,128], index: 5, kind: input, shape index: {}]   ;;  %s3260_s6 = inlined_call_operand.hbm [shape: f32[10,2,128], index: 6, kind: output, shape index: {0}]   ;;  %s3261_s7 = inlined_call_operand.hbm [shape: f32[2,32], index: 7, kind: output, shape index: {1}]  }
   0x1   :  { %14 = vsyncpa [#allocation6], 0 }
   0x2   :  { %15 = vsyncpa [#allocation9], 0 }
   0x3   :  { %16 = vsyncpa [#allocation4], 0 }
   0x4   :  { %17 = vsyncpa [#allocation12], 0  ;;  %s2563_s24 = smov [#allocation5]  }
   0x5   :  { %s35_s25 = sshll.u32 %s2563_s24, 4  ;;  %s36_s25 = int_to_ptr.vmem [resolvable:$true] %s35_s25 }
   0x6   :  { %s2441_s26 = scalar_lea.vmem %s36_s25, 512  ;;  %p2446_p1 = scmp.lt.s32.totalorder %s36_s25, %s36_s25 }
   0x7   :  { %p2442_p0 = scmp.ne.s32.totalorder %s36_s25, %s2441_s26  ;;  %p2447_p2 = scmp.lt.s32.totalorder %s2441_s26, %s2441_s26 }
   0x9   :  { %p2448_p3 = por %p2447_p2, %p2446_p1 }
   0xb   :  { %p2449_p4 = pnand %p2448_p3, %p2442_p0 }
   0xd   :  { %2452 = shalt.err (!%p2449_p4)
}
   0xe   :  { %s2564_s27 = smov 128   ;;  %s2565_s28 = smov 8  }
   0xf   :  { %41 = dma.hbm_to_vmem [thread:$0]  %s3255_s1, 512, %s36_s25, [#allocation6], %s2564_s27, %s2564_s27, %s2565_s28  }
  0x10   :  { %s2566_s8 = smov [#allocation2]  }
  0x11   :  { %s23_s9 = sshll.u32 %s2566_s8, 4  ;;  %s24_s9 = int_to_ptr.vmem [resolvable:$true] %s23_s9 }
  0x12   :  { %s2461_s10 = scalar_lea.vmem %s24_s9, 1024  ;;  %p2466_p6 = scmp.lt.s32.totalorder %s24_s9, %s24_s9 }
  0x13   :  { %p2462_p5 = scmp.ne.s32.totalorder %s24_s9, %s2461_s10  ;;  %p2467_p7 = scmp.lt.s32.totalorder %s2461_s10, %s2461_s10 }
  0x15   :  { %p2468_p8 = por %p2467_p7, %p2466_p6 }
  0x17   :  { %p2469_p9 = pnand %p2468_p8, %p2462_p5 }
  0x19   :  { %2472 = shalt.err (!%p2469_p9)
}
  0x1a   :  { %s2567_s11 = smov 64   ;;  %s2568_s12 = smov 4  }
  0x1b   :  { %29 = dma.hbm_to_vmem [thread:$0]  %s3254_s0, 1024, %s24_s9, [#allocation3], %s2567_s11, %s2567_s11, %s2568_s12  }
  0x1c   :  { %s2569_s15 = smov [#allocation7]  }
  0x1d   :  { %s51_s1 = sshll.u32 %s2569_s15, 4  ;;  %s52_s1 = int_to_ptr.vmem [resolvable:$true] %s51_s1 }
  0x1e   :  { %s2481_s16 = scalar_lea.vmem %s52_s1, 320  ;;  %p2486_p11 = scmp.lt.s32.totalorder %s52_s1, %s52_s1 }
  0x1f   :  { %p2482_p10 = scmp.ne.s32.totalorder %s52_s1, %s2481_s16  ;;  %p2487_p12 = scmp.lt.s32.totalorder %s2481_s16, %s2481_s16 }
  0x21   :  { %p2488_p13 = por %p2487_p12, %p2486_p11 }
  0x23   :  { %p2489_p0 = pnand %p2488_p13, %p2482_p10 }
  0x25   :  { %2492 = shalt.err (!%p2489_p0)
}
  0x26   :  { %s2570_s17 = smov 32   ;;  %s2571_s18 = smov 2  }
  0x27   :  { %57 = dma.hbm_to_vmem [thread:$0]  %s3258_s4, 320, %s52_s1, [#allocation6], %s2570_s17, %s2570_s17, %s2571_s18  }
  0x28   :  { %s2572_s0 = smov [#allocation8]  }
  0x29   :  { %s63_s21 = sshll.u32 %s2572_s0, 4  ;;  %s64_s21 = int_to_ptr.vmem [resolvable:$true] %s63_s21 }
  0x2a   :  { %s2501_s22 = scalar_lea.vmem %s64_s21, 160  ;;  %p2506_p2 = scmp.lt.s32.totalorder %s64_s21, %s64_s21 }
  0x2b   :  { %p2502_p1 = scmp.ne.s32.totalorder %s64_s21, %s2501_s22  ;;  %p2507_p3 = scmp.lt.s32.totalorder %s2501_s22, %s2501_s22 }
  0x2d   :  { %p2508_p4 = por %p2507_p3, %p2506_p2 }
  0x2f   :  { %p2509_p5 = pnand %p2508_p4, %p2502_p1 }
  0x31   :  { %2512 = shalt.err (!%p2509_p5)
}
  0x32   :  { %s2573_s23 = smov 16   ;;  %s2574_s24 = smov 1  }
  0x33   :  { %69 = dma.hbm_to_vmem [thread:$0]  %s3259_s5, 160, %s64_s21, [#allocation9], %s2573_s23, %s2573_s23, %s2574_s24  }
  0x34   :  { %2553 = dma.done.wait [#allocation3], 1024  }
  0x35   :  { %2554 = vsyncadd [#allocation3], 4294966272 }
  0x36   :  { %2555 = dma.done.wait [#allocation6], 832  }
  0x37   :  { %2556 = vsyncadd [#allocation6], 4294966464 }
  0x38   :  { %2557 = dma.done.wait [#allocation9], 160  }
  0x39   :  { %2558 = vsyncadd [#allocation9], 4294967136  ;;  %v2575_v0 = vmov 0.0   ;;  %v2576_v1 = vmov 0   ;;  %vm2577_vm0 = vmmov 0   ;;  %v2643_v2 = vld [vmem:[#allocation2 + $0x38] sm:$0xff]   ;;  %v104_v14 = vlaneseq }
  0x3a   :  { %2088 = vmatprep.subr.bf16.mxu0 %v2575_v0  ;;  %256 = vmatprep.mubr.bf16.mxu1 %v2576_v1  ;;  %v2645_v3 = vld [vmem:[#allocation5 + $0x14] ss:$8 sps:$4 sm:$0xff]   ;;  %v2648_v4 = vld [vmem:[#allocation5 + $0x10] ss:$8 sps:$4 sm:$0xff]   ;;  %v2655_v6 = vld [vmem:[#allocation5 + $0x4] ss:$8 sps:$4 sm:$0xff]  }
  0x3b   :  { %2104 = vmatprep.mubr.msk.bf16.mxu0 %vm2577_vm0, %v2575_v0  ;;  %2089 = vmatpush3.bf16.msra.mxu0 %v2643_v2  ;;  %v2652_v5 = vld [vmem:[#allocation2 + $0x30] sm:$0xff]   ;;  %v2657_v7 = vld [vmem:[#allocation5] ss:$8 sps:$4 sm:$0xff]   ;;  %vm220_vm1 = vcmask 261120   ;;  %v2682_v12 = vld [vmem:[#allocation2 + $0x18] sm:$0xff]   ;;  %v2695_v16 = vand.u32 127, %v104_v14 }
  0x3c   :  { %236 = vmatprep.subr.bf16.mxu1 %v2645_v3  ;;  %2090 = vmatprep.subr.bf16.mxu0 %v2575_v0  ;;  %v2662_v8 = vld [vmem:[%s3257_s3] sm:$0x3]  ;;  %v2666_v9 = vld [vmem:[#allocation2 + $0x28] sm:$0xff]   ;;  %v2688_v13 = vld [vmem:[#allocation2 + $0x10] sm:$0xff]   ;;  %v2578_v18 = vmov 1.0|1.0  }
  0x3d   :  { %237 = vmatpush1.bf16.msra.mxu1 %v2648_v4  ;;  %v199_v10 = vpack.c.bf16 %v2662_v8, %v2662_v8  ;;  %v2674_v11 = vld [vmem:[#allocation2 + $0x20] sm:$0xff]   ;;  %v2692_v15 = vld [vmem:[#allocation2 + $0x8] sm:$0xff]   ;;  %vm107_vm2 = vcmp.eq.s32.totalorder %v2695_v16, 12  ;;  %v266_v19 = vshrl.u32 %v104_v14, 7  ;;  %vm354_vm4 = vcmask 1041408   ;;  %s2580_s28 = smov [#allocation11]  }
  0x3e   :  { %238 = vmatprep.subr.bf16.mxu1 %v2655_v6  ;;  %v2698_v17 = vld [vmem:[#allocation2] sm:$0xff]   ;;  %vm1944_vm3 = vmpackc.low %vm107_vm2, %vm107_vm2  ;;  %s1920_s29 = sshll.u32 %s2580_s28, 4  ;;  %s1921_s29 = int_to_ptr.vmem [resolvable:$true] %s1920_s29 }
  0x3f   :  { %2091 = vmatpush3.bf16.msra.mxu0 %v2652_v5  ;;  %v2710_v20 = vsub.s32 0, %v266_v19  ;;  %v103_v21 = vld [vmem:[%s3256_s2] sm:$0x3]  ;;  %s2579_s2 = smov 96   ;;  %v304_v50 = vsub.s32 1, %v266_v19  ;;  %s2513_s30 = scalar_lea.vmem %s1921_s29, 32 }
  0x40   :  { %2092 = vmatprep.subr.bf16.mxu0 %v2575_v0  ;;  %p2514_p6 = scmp.ne.s32.totalorder %s1921_s29, %s2513_s30  ;;  %p2518_p7 = scmp.lt.s32.totalorder %s1921_s29, %s1921_s29 }
  0x41   :  { %239 = vmatpush1.bf16.msra.mxu1 %v2657_v7  ;;  %v2716_v22 = vrot.slane %v103_v21, %v2710_v20  ;;  %v2748_v51 = vrot.slane %v103_v21, %v304_v50  ;;  %p2519_p8 = scmp.lt.s32.totalorder %s2513_s30, %s2513_s30 }
  0x42   :  { %325 = vmatprep.subr.bf16.mxu1 %v2645_v3 }
  0x43   :  { %2093 = vmatpush3.bf16.msra.mxu0 %v2666_v9  ;;  %p2520_p9 = por %p2519_p8, %p2518_p7 }
  0x44   :  { %1950 = vmatmul.mubr.msk.bf16.vlgmr.msra.gmra.mxu1 %vm220_vm1, %v199_v10  ;;  %2094 = vmatprep.subr.bf16.mxu0 %v2575_v0 }
  0x45   :  { %326 = vmatpush1.bf16.msra.mxu1 %v2648_v4  ;;  %345 = vmatprep.mubr.bf16.mxu1 %v2576_v1  ;;  %p2521_p10 = pnand %p2520_p9, %p2514_p6 }
  0x46   :  { %327 = vmatprep.subr.bf16.mxu1 %v2655_v6 }
  0x47   :  { %2095 = vmatpush3.bf16.msra.mxu0 %v2674_v11 }
  0x48   :  { %2096 = vmatprep.subr.bf16.mxu0 %v2575_v0 }
  0x49   :  { %328 = vmatpush1.bf16.msra.mxu1 %v2657_v7 }
  0x4a   :  { %2108 = vmatprep.subr.bf16.mxu1 %v2575_v0 }
  0x4b   :  { %2097 = vmatpush3.bf16.msra.mxu0 %v2682_v12 }
  0x4c   :  { %2098 = vmatprep.subr.bf16.mxu0 %v2575_v0 }
  0x4f   :  { %2099 = vmatpush3.bf16.msra.mxu0 %v2688_v13 }
  0x50   :  { %2100 = vmatprep.subr.bf16.mxu0 %v2575_v0 }
  0x53   :  { %2101 = vmatpush3.bf16.msra.mxu0 %v2692_v15 }
  0x54   :  { %2102 = vmatprep.subr.bf16.mxu0 %v2575_v0 }
  0x57   :  { %2103 = vmatpush3.bf16.msra.mxu0 %v2698_v17 }
  0x58   :  { %493 = vmatprep.subr.bf16.mxu0 %v2645_v3 }
  0x5a   :  { %2105 = vmatmul.mubr.msk.bf16.vlgmr.msra.gmra.mxu0 %vm1944_vm3, %v2578_v18 }
  0x5b   :  { %494 = vmatpush1.bf16.msra.mxu0 %v2648_v4  ;;  %513 = vmatprep.mubr.bf16.mxu0 %v2576_v1 }
  0x5c   :  { %495 = vmatprep.subr.bf16.mxu0 %v2655_v6 }
  0x5f   :  { %496 = vmatpush1.bf16.msra.mxu0 %v2657_v7 }
  0x60   :  { %2128 = vmatprep.subr.bf16.mxu0 %v2575_v0 }
 0x104   :  { %v258_v23 = vpop.f32.mrf.mxu1 }
 0x105   :  { %v270_v24 = vadd.f32 %v2716_v22, %v258_v23 }
 0x106   :  { %v260_v25 = vpop.f32.mrf.mxu1 }
 0x107   :  { %279 = vrot.lane.b32.xlu0 %v270_v24, %s2567_s11 }
 0x108   :  { %v261_v26 = vpop.f32.mrf.mxu1 }
 0x10a   :  { %v262_v27 = vpop.f32.mrf.mxu1 }
 0x10b   :  { %v430_v27 = vld [vmem:[#allocation8] sm:$0x1] }
 0x11a   :  { %v193_v28 = vpop.f32.mrf.mxu0 }
 0x11b   :  { %v271_v32 = vadd.f32 %v270_v24, %v193_v28 }
 0x11c   :  { %v2106_v29 = vpop.f32.mrf.mxu0 }
 0x11d   :  { %v1951_v33 = vmul.f32 -1.442695, %v271_v32  ;;  %v436_v29 = vrot.slane %v430_v27, %v2710_v20 }
 0x11e   :  { %v196_v30 = vpop.f32.mrf.mxu0 }
 0x11f   :  { %2321 = vpow2.f32 %v1951_v33  ;;  %v431_v30 = vld [vmem:[#allocation7] sm:$0x3] }
 0x120   :  { %v2107_v31 = vpop.f32.mrf.mxu0  ;;  %v438_v32 = vmul.f32 %v436_v29, %v431_v30 }
 0x12c   :  { %v2322_v34 = vpop.eup %2321 }
 0x12d   :  { %v275_v35 = vadd.f32 1.0, %v2322_v34 }
 0x12f   :  { %2323 = vrcp.f32 %v275_v35 }
 0x13c   :  { %v2324_v36 = vpop.eup %2323 }
 0x13d   :  { %v289_v43 = vsub.f32 1.0, %v2324_v36 }
 0x179   :  { %v280_v37 = vpop.permute.xlu0 %279 }
 0x17a   :  { %v282_v38 = vmul.f32 %v2324_v36, %v280_v37 }
 0x17c   :  { %284 = vrot.lane.b32.xlu0 %v282_v38, %s2567_s11 }
 0x1ee   :  { %v285_v39 = vpop.permute.xlu0 %284 }
 0x1ef   :  { %v287_v40 = vadd.f32 %v285_v39, %v193_v28  ;;  %v439_v28 = vsub.f32 1.0, %v430_v27 }
 0x1f1   :  { %2325 = vtanh.f32 %v287_v40  ;;  %v444_v31 = vrot.slane %v439_v28, %v2710_v20 }
 0x1fe   :  { %v2326_v41 = vpop.eup %2325 }
 0x1ff   :  { %291 = vrot.lane.b32.xlu1 %v2326_v41, %s2579_s2 }
 0x203   :  { %296 = vrot.lane.b32.xlu1 %v2662_v8, %s2570_s17 }
 0x271   :  { %v292_v42 = vpop.permute.xlu1 %291 }
 0x272   :  { %v294_v45 = vmul.f32 %v292_v42, %v289_v43 }
 0x275   :  { %v297_v44 = vpop.permute.xlu1 %296 }
 0x276   :  { %v299_v46 = vmul.f32 %v2324_v36, %v297_v44 }
 0x278   :  { %v2724_v47 = vadd.f32 %v299_v46, %v294_v45 }
 0x27a   :  { %v301_v48 = vpack.c.bf16 %v2724_v47, %v2724_v47 }
 0x27c   :  { %308 = vrot.lane.b32.xlu0 %v301_v48, %s2579_s2 }
 0x2ee   :  { %v309_v49 = vpop.permute.xlu0 %308 }
 0x2ef   :  { %1952 = vmatmul.mubr.msk.bf16.vlgmr.msra.gmra.mxu1 %vm220_vm1, %v309_v49 }
 0x2f0   :  { %2109 = vmatpush3.bf16.msra.mxu1 %v2643_v2  ;;  %2124 = vmatprep.mubr.msk.bf16.mxu1 %vm2577_vm0, %v2575_v0 }
 0x2f1   :  { %2110 = vmatprep.subr.bf16.mxu1 %v2575_v0 }
 0x2f4   :  { %2111 = vmatpush3.bf16.msra.mxu1 %v2652_v5 }
 0x2f5   :  { %2112 = vmatprep.subr.bf16.mxu1 %v2575_v0 }
 0x2f8   :  { %2113 = vmatpush3.bf16.msra.mxu1 %v2666_v9 }
 0x2f9   :  { %2114 = vmatprep.subr.bf16.mxu1 %v2575_v0 }
 0x2fc   :  { %2115 = vmatpush3.bf16.msra.mxu1 %v2674_v11 }
 0x2fd   :  { %2116 = vmatprep.subr.bf16.mxu1 %v2575_v0 }
 0x300   :  { %2117 = vmatpush3.bf16.msra.mxu1 %v2682_v12 }
 0x301   :  { %2118 = vmatprep.subr.bf16.mxu1 %v2575_v0 }
 0x304   :  { %2119 = vmatpush3.bf16.msra.mxu1 %v2688_v13 }
 0x305   :  { %2120 = vmatprep.subr.bf16.mxu1 %v2575_v0 }
 0x308   :  { %2121 = vmatpush3.bf16.msra.mxu1 %v2692_v15 }
 0x309   :  { %2122 = vmatprep.subr.bf16.mxu1 %v2575_v0 }
 0x30c   :  { %2123 = vmatpush3.bf16.msra.mxu1 %v2698_v17 }
 0x30d   :  { %663 = vmatprep.subr.bf16.mxu1 %v2645_v3 }
 0x3af   :  { %v347_v52 = vpop.f32.mrf.mxu1 }
 0x3b0   :  { %v348_v58 = vadd.f32 %v347_v52, %v2716_v22 }
 0x3b1   :  { %v349_v53 = vpop.f32.mrf.mxu1 }
 0x3b2   :  { %v2751_v54 = vadd.f32 %v349_v53, %v2748_v51 }
 0x3b3   :  { %v351_v55 = vpop.f32.mrf.mxu1 }
 0x3b4   :  { %v355_v56 = vsel %vm354_vm4, %v2751_v54, -inf }
 0x3b5   :  { %v352_v57 = vpop.f32.mrf.mxu1  ;;  %356 = vmax.xlane.f32.xlu1 %v355_v56 }
 0x3c6   :  { %456 = vrot.lane.b32.xlu1 %v348_v58, %s2567_s11 }
 0x43e   :  { %v2757_v59 = vpop.xlane.xlu1 %356 }
 0x43f   :  { %vm369_vm5 = vcmp.ge.f32.partialorder %v2751_v54, %v2757_v59 }
 0x440   :  { %v370_v60 = vsel %vm369_vm5, %v2695_v16, 128 }
 0x441   :  { %v371_v61 = vsel %vm354_vm4, %v370_v60, 2147483647 }
 0x442   :  { %v373_v62 = vshra.s32 %v371_v61, 16  ;;  %v372_v8 = vand.u32 65535, %v371_v61  ;;  %v457_v44 = vpop.permute.xlu1 %456 }
 0x444   :  { %v375_v63 = vcvt.s32.f32 %v373_v62  ;;  %v374_v14 = vcvt.s32.f32 %v372_v8 }
 0x446   :  { %376 = vmin.xlane.f32.xlu0 %v375_v63 }
 0x4cf   :  { %v377_v10 = vpop.xlane.xlu0 %376 }
 0x4d0   :  { %vm378_vm6 = vcmp.eq.f32.partialorder %v375_v63, %v377_v10  ;;  %v383_v21 = vcvt.f32.s32 %v377_v10 }
 0x4d1   :  { %v379_v19 = vsel %vm378_vm6, %v374_v14, inf }
 0x4d2   :  { %380 = vmin.xlane.f32.xlu0 %v379_v19  ;;  %v384_v24 = vshll.u32 %v383_v21, 16 }
 0x55b   :  { %v381_v23 = vpop.xlane.xlu0 %380 }
 0x55c   :  { %v382_v25 = vcvt.f32.s32 %v381_v23 }
 0x55e   :  { %v385_v26 = vadd.s32 %v384_v24, %v382_v25 }
 0x560   :  { %vm386_vm7 = vcmp.eq.s32.totalorder %v2695_v16, %v385_v26 }
 0x561   :  { %vm1954_vm8 = vmpackc.low %vm386_vm7, %vm386_vm7 }
 0x562   :  { %2125 = vmatmul.mubr.msk.bf16.vlgmr.msra.gmra.mxu1 %vm1954_vm8, %v2578_v18 }
 0x563   :  { %664 = vmatpush1.bf16.msra.mxu1 %v2648_v4  ;;  %683 = vmatprep.mubr.bf16.mxu1 %v2576_v1 }
 0x564   :  { %665 = vmatprep.subr.bf16.mxu1 %v2655_v6 }
 0x567   :  { %666 = vmatpush1.bf16.msra.mxu1 %v2657_v7 }
 0x568   :  { %2148 = vmatprep.subr.bf16.mxu1 %v2575_v0 }
 0x622   :  { %v424_v33 = vpop.f32.mrf.mxu1 }
 0x623   :  { %v446_v34 = vmul.f32 %v444_v31, %v424_v33 }
 0x624   :  { %v2126_v35 = vpop.f32.mrf.mxu1 }
 0x625   :  { %v447_v36 = vadd.f32 %v446_v34, %v438_v32  ;;  %v599_v34 = vld [vmem:[#allocation8 + $0x1] sm:$0x1] }
 0x626   :  { %v427_v37 = vpop.f32.mrf.mxu1  ;;  %v609_v35 = vsub.f32 1.0, %v599_v34 }
 0x627   :  { %v448_v38 = vadd.f32 %v447_v36, %v348_v58  ;;  %v601_v37 = vld [vmem:[#allocation7 + $0x2] sm:$0x3] }
 0x628   :  { %v2127_v39 = vpop.f32.mrf.mxu1 }
 0x629   :  { %v1956_v40 = vmul.f32 -1.442695, %v448_v38  ;;  %v614_v38 = vrot.slane %v609_v35, %v2710_v20 }
 0x62b   :  { %2327 = vpow2.f32 %v1956_v40 }
 0x638   :  { %v2328_v41 = vpop.eup %2327 }
 0x639   :  { %v452_v42 = vadd.f32 1.0, %v2328_v41 }
 0x63b   :  { %2329 = vrcp.f32 %v452_v42 }
 0x648   :  { %v2330_v43 = vpop.eup %2329 }
 0x649   :  { %v459_v45 = vmul.f32 %v2330_v43, %v457_v44  ;;  %v466_v50 = vsub.f32 1.0, %v2330_v43  ;;  %v472_v53 = vmul.f32 %v2330_v43, %v2724_v47 }
 0x64b   :  { %461 = vrot.lane.b32.xlu0 %v459_v45, %s2567_s11 }
 0x6bd   :  { %v462_v46 = vpop.permute.xlu0 %461 }
 0x6be   :  { %v464_v48 = vadd.f32 %v462_v46, %v447_v36  ;;  %v606_v36 = vrot.slane %v599_v34, %v2710_v20 }
 0x6c0   :  { %2331 = vtanh.f32 %v464_v48  ;;  %v608_v39 = vmul.f32 %v606_v36, %v601_v37 }
 0x6cd   :  { %v2332_v49 = vpop.eup %2331 }
 0x6ce   :  { %468 = vrot.lane.b32.xlu1 %v2332_v49, %s2579_s2 }
 0x740   :  { %v469_v52 = vpop.permute.xlu1 %468 }
 0x741   :  { %v471_v55 = vmul.f32 %v469_v52, %v466_v50 }
 0x743   :  { %v2775_v56 = vadd.f32 %v472_v53, %v471_v55 }
 0x745   :  { %v474_v57 = vpack.c.bf16 %v2775_v56, %v2775_v56 }
 0x747   :  { %476 = vrot.lane.b32.xlu1 %v474_v57, %s2579_s2 }
 0x7b9   :  { %v477_v58 = vpop.permute.xlu1 %476 }
 0x7ba   :  { %1957 = vmatmul.mubr.msk.bf16.vlgmr.msra.gmra.mxu0 %vm220_vm1, %v477_v58 }
 0x7bb   :  { %2129 = vmatpush3.bf16.msra.mxu0 %v2643_v2  ;;  %2144 = vmatprep.mubr.msk.bf16.mxu0 %vm2577_vm0, %v2575_v0 }
 0x7bc   :  { %2130 = vmatprep.subr.bf16.mxu0 %v2575_v0 }
 0x7bf   :  { %2131 = vmatpush3.bf16.msra.mxu0 %v2652_v5 }
 0x7c0   :  { %2132 = vmatprep.subr.bf16.mxu0 %v2575_v0 }
 0x7c3   :  { %2133 = vmatpush3.bf16.msra.mxu0 %v2666_v9 }
 0x7c4   :  { %2134 = vmatprep.subr.bf16.mxu0 %v2575_v0 }
 0x7c7   :  { %2135 = vmatpush3.bf16.msra.mxu0 %v2674_v11 }
 0x7c8   :  { %2136 = vmatprep.subr.bf16.mxu0 %v2575_v0 }
 0x7cb   :  { %2137 = vmatpush3.bf16.msra.mxu0 %v2682_v12 }
 0x7cc   :  { %2138 = vmatprep.subr.bf16.mxu0 %v2575_v0 }
 0x7cf   :  { %2139 = vmatpush3.bf16.msra.mxu0 %v2688_v13 }
 0x7d0   :  { %2140 = vmatprep.subr.bf16.mxu0 %v2575_v0 }
 0x7d3   :  { %2141 = vmatpush3.bf16.msra.mxu0 %v2692_v15 }
 0x7d4   :  { %2142 = vmatprep.subr.bf16.mxu0 %v2575_v0 }
 0x7d7   :  { %2143 = vmatpush3.bf16.msra.mxu0 %v2698_v17 }
 0x7d8   :  { %833 = vmatprep.subr.bf16.mxu0 %v2645_v3 }
 0x87a   :  { %v515_v47 = vpop.f32.mrf.mxu0 }
 0x87b   :  { %v516_v28 = vadd.f32 %v515_v47, %v2716_v22 }
 0x87c   :  { %v517_v60 = vpop.f32.mrf.mxu0 }
 0x87d   :  { %v2800_v61 = vadd.f32 %v517_v60, %v2748_v51 }
 0x87e   :  { %v519_v62 = vpop.f32.mrf.mxu0 }
 0x87f   :  { %v522_v63 = vsel %vm354_vm4, %v2800_v61, -inf }
 0x880   :  { %v520_v8 = vpop.f32.mrf.mxu0  ;;  %523 = vmax.xlane.f32.xlu0 %v522_v63 }
 0x909   :  { %v2804_v10 = vpop.xlane.xlu0 %523 }
 0x90a   :  { %vm537_vm9 = vcmp.ge.f32.partialorder %v2800_v61, %v2804_v10 }
 0x90b   :  { %v538_v14 = vsel %vm537_vm9, %v2695_v16, 128 }
 0x90c   :  { %v539_v19 = vsel %vm354_vm4, %v538_v14, 2147483647 }
 0x90d   :  { %v541_v21 = vshra.s32 %v539_v19, 16  ;;  %v540_v24 = vand.u32 65535, %v539_v19 }
 0x90f   :  { %v543_v23 = vcvt.s32.f32 %v541_v21  ;;  %v542_v26 = vcvt.s32.f32 %v540_v24 }
 0x911   :  { %544 = vmin.xlane.f32.xlu1 %v543_v23 }
 0x99a   :  { %v545_v25 = vpop.xlane.xlu1 %544 }
 0x99b   :  { %vm546_vm10 = vcmp.eq.f32.partialorder %v543_v23, %v545_v25  ;;  %v551_v29 = vcvt.f32.s32 %v545_v25 }
 0x99c   :  { %v547_v27 = vsel %vm546_vm10, %v542_v26, inf }
 0x99d   :  { %548 = vmin.xlane.f32.xlu0 %v547_v27  ;;  %v552_v31 = vshll.u32 %v551_v29, 16 }
 0x9b3   :  { %626 = vrot.lane.b32.xlu0 %v516_v28, %s2567_s11 }
 0xa26   :  { %v549_v30 = vpop.xlane.xlu0 %548 }
 0xa27   :  { %v550_v32 = vcvt.f32.s32 %v549_v30 }
 0xa29   :  { %v553_v33 = vadd.s32 %v552_v31, %v550_v32 }
 0xa2a   :  { %v627_v53 = vpop.permute.xlu0 %626 }
 0xa2b   :  { %vm554_vm11 = vcmp.eq.s32.totalorder %v2695_v16, %v553_v33 }
 0xa2c   :  { %vm1959_vm12 = vmpackc.low %vm554_vm11, %vm554_vm11 }
 0xa2d   :  { %2145 = vmatmul.mubr.msk.bf16.vlgmr.msra.gmra.mxu0 %vm1959_vm12, %v2578_v18 }
 0xa2e   :  { %834 = vmatpush1.bf16.msra.mxu0 %v2648_v4  ;;  %853 = vmatprep.mubr.bf16.mxu0 %v2576_v1 }
 0xa2f   :  { %835 = vmatprep.subr.bf16.mxu0 %v2655_v6 }
 0xa32   :  { %836 = vmatpush1.bf16.msra.mxu0 %v2657_v7 }
 0xa33   :  { %2168 = vmatprep.subr.bf16.mxu0 %v2575_v0 }
 0xaed   :  { %v592_v40 = vpop.f32.mrf.mxu0 }
 0xaee   :  { %v616_v41 = vmul.f32 %v614_v38, %v592_v40 }
 0xaef   :  { %v2146_v42 = vpop.f32.mrf.mxu0 }
 0xaf0   :  { %v617_v43 = vadd.f32 %v616_v41, %v608_v39 }
 0xaf1   :  { %v595_v44 = vpop.f32.mrf.mxu0 }
 0xaf2   :  { %v618_v45 = vadd.f32 %v617_v43, %v516_v28 }
 0xaf3   :  { %v2147_v46 = vpop.f32.mrf.mxu0 }
 0xaf4   :  { %v1961_v48 = vmul.f32 -1.442695, %v618_v45  ;;  %v771_v46 = vld [vmem:[#allocation7 + $0x4] sm:$0x3] }
 0xaf6   :  { %2333 = vpow2.f32 %v1961_v48 }
 0xb03   :  { %v2334_v49 = vpop.eup %2333 }
 0xb04   :  { %v622_v50 = vadd.f32 1.0, %v2334_v49 }
 0xb06   :  { %2335 = vrcp.f32 %v622_v50 }
 0xb13   :  { %v2336_v52 = vpop.eup %2335 }
 0xb14   :  { %v629_v55 = vmul.f32 %v2336_v52, %v627_v53  ;;  %v636_v60 = vsub.f32 1.0, %v2336_v52  ;;  %v642_v63 = vmul.f32 %v2336_v52, %v2775_v56 }
 0xb16   :  { %631 = vrot.lane.b32.xlu1 %v629_v55, %s2567_s11 }
 0xb88   :  { %v632_v57 = vpop.permute.xlu1 %631 }
 0xb89   :  { %v634_v58 = vadd.f32 %v632_v57, %v617_v43  ;;  %v769_v43 = vld [vmem:[#allocation8 + $0x2] sm:$0x1] }
 0xb8a   :  { %v779_v44 = vsub.f32 1.0, %v769_v43  ;;  %v776_v45 = vrot.slane %v769_v43, %v2710_v20 }
 0xb8b   :  { %2337 = vtanh.f32 %v634_v58 }
 0xb8c   :  { %v784_v48 = vrot.slane %v779_v44, %v2710_v20  ;;  %v778_v49 = vmul.f32 %v776_v45, %v771_v46 }
 0xb98   :  { %v2338_v47 = vpop.eup %2337 }
 0xb99   :  { %638 = vrot.lane.b32.xlu1 %v2338_v47, %s2579_s2 }
 0xc0b   :  { %v639_v62 = vpop.permute.xlu1 %638 }
 0xc0c   :  { %v641_v8 = vmul.f32 %v639_v62, %v636_v60 }
 0xc0e   :  { %v2824_v14 = vadd.f32 %v642_v63, %v641_v8 }
 0xc10   :  { %v644_v19 = vpack.c.bf16 %v2824_v14, %v2824_v14 }
 0xc12   :  { %646 = vrot.lane.b32.xlu0 %v644_v19, %s2579_s2 }
 0xc84   :  { %v647_v21 = vpop.permute.xlu0 %646 }
 0xc85   :  { %1962 = vmatmul.mubr.msk.bf16.vlgmr.msra.gmra.mxu1 %vm220_vm1, %v647_v21 }
 0xc86   :  { %2149 = vmatpush3.bf16.msra.mxu1 %v2643_v2  ;;  %2164 = vmatprep.mubr.msk.bf16.mxu1 %vm2577_vm0, %v2575_v0 }
 0xc87   :  { %2150 = vmatprep.subr.bf16.mxu1 %v2575_v0 }
 0xc8a   :  { %2151 = vmatpush3.bf16.msra.mxu1 %v2652_v5 }
 0xc8b   :  { %2152 = vmatprep.subr.bf16.mxu1 %v2575_v0 }
 0xc8e   :  { %2153 = vmatpush3.bf16.msra.mxu1 %v2666_v9 }
 0xc8f   :  { %2154 = vmatprep.subr.bf16.mxu1 %v2575_v0 }
 0xc92   :  { %2155 = vmatpush3.bf16.msra.mxu1 %v2674_v11 }
 0xc93   :  { %2156 = vmatprep.subr.bf16.mxu1 %v2575_v0 }
 0xc96   :  { %2157 = vmatpush3.bf16.msra.mxu1 %v2682_v12 }
 0xc97   :  { %2158 = vmatprep.subr.bf16.mxu1 %v2575_v0 }
 0xc9a   :  { %2159 = vmatpush3.bf16.msra.mxu1 %v2688_v13 }
 0xc9b   :  { %2160 = vmatprep.subr.bf16.mxu1 %v2575_v0 }
 0xc9e   :  { %2161 = vmatpush3.bf16.msra.mxu1 %v2692_v15 }
 0xc9f   :  { %2162 = vmatprep.subr.bf16.mxu1 %v2575_v0 }
 0xca2   :  { %2163 = vmatpush3.bf16.msra.mxu1 %v2698_v17 }
 0xca3   :  { %1003 = vmatprep.subr.bf16.mxu1 %v2645_v3 }
 0xd45   :  { %v685_v56 = vpop.f32.mrf.mxu1 }
 0xd46   :  { %v686_v28 = vadd.f32 %v685_v56, %v2716_v22 }
 0xd47   :  { %v687_v23 = vpop.f32.mrf.mxu1 }
 0xd48   :  { %v2849_v24 = vadd.f32 %v687_v23, %v2748_v51 }
 0xd49   :  { %v689_v25 = vpop.f32.mrf.mxu1 }
 0xd4a   :  { %v692_v26 = vsel %vm354_vm4, %v2849_v24, -inf }
 0xd4b   :  { %v690_v27 = vpop.f32.mrf.mxu1  ;;  %693 = vmax.xlane.f32.xlu1 %v692_v26 }
 0xd5c   :  { %796 = vrot.lane.b32.xlu1 %v686_v28, %s2567_s11 }
 0xdd4   :  { %v2855_v29 = vpop.xlane.xlu1 %693 }
 0xdd5   :  { %vm707_vm13 = vcmp.ge.f32.partialorder %v2849_v24, %v2855_v29 }
 0xdd6   :  { %v708_v30 = vsel %vm707_vm13, %v2695_v16, 128 }
 0xdd7   :  { %v709_v31 = vsel %vm354_vm4, %v708_v30, 2147483647 }
 0xdd8   :  { %v711_v32 = vshra.s32 %v709_v31, 16  ;;  %v710_v34 = vand.u32 65535, %v709_v31  ;;  %v797_v19 = vpop.permute.xlu1 %796 }
 0xdda   :  { %v713_v33 = vcvt.s32.f32 %v711_v32  ;;  %v712_v36 = vcvt.s32.f32 %v710_v34 }
 0xddc   :  { %714 = vmin.xlane.f32.xlu0 %v713_v33 }
 0xe65   :  { %v715_v35 = vpop.xlane.xlu0 %714 }
 0xe66   :  { %vm716_vm14 = vcmp.eq.f32.partialorder %v713_v33, %v715_v35  ;;  %v721_v38 = vcvt.f32.s32 %v715_v35 }
 0xe67   :  { %v717_v37 = vsel %vm716_vm14, %v712_v36, inf }
 0xe68   :  { %718 = vmin.xlane.f32.xlu0 %v717_v37  ;;  %v722_v40 = vshll.u32 %v721_v38, 16 }
 0xef1   :  { %v719_v39 = vpop.xlane.xlu0 %718 }
 0xef2   :  { %v720_v41 = vcvt.f32.s32 %v719_v39 }
 0xef4   :  { %v723_v42 = vadd.s32 %v722_v40, %v720_v41 }
 0xef6   :  { %vm724_vm15 = vcmp.eq.s32.totalorder %v2695_v16, %v723_v42 }
 0xef7   :  { %vm1964_vm2 = vmpackc.low %vm724_vm15, %vm724_vm15 }
 0xef8   :  { %2165 = vmatmul.mubr.msk.bf16.vlgmr.msra.gmra.mxu1 %vm1964_vm2, %v2578_v18 }
 0xef9   :  { %1004 = vmatpush1.bf16.msra.mxu1 %v2648_v4  ;;  %1023 = vmatprep.mubr.bf16.mxu1 %v2576_v1 }
 0xefa   :  { %1005 = vmatprep.subr.bf16.mxu1 %v2655_v6 }
 0xefd   :  { %1006 = vmatpush1.bf16.msra.mxu1 %v2657_v7 }
 0xefe   :  { %2188 = vmatprep.subr.bf16.mxu1 %v2575_v0 }
 0xfb8   :  { %v762_v50 = vpop.f32.mrf.mxu1 }
 0xfb9   :  { %v786_v52 = vmul.f32 %v784_v48, %v762_v50 }
 0xfba   :  { %v2166_v53 = vpop.f32.mrf.mxu1 }
 0xfbb   :  { %v787_v55 = vadd.f32 %v786_v52, %v778_v49 }
 0xfbc   :  { %v765_v57 = vpop.f32.mrf.mxu1 }
 0xfbd   :  { %v788_v58 = vadd.f32 %v787_v55, %v686_v28 }
 0xfbe   :  { %v2167_v47 = vpop.f32.mrf.mxu1 }
 0xfbf   :  { %v1966_v60 = vmul.f32 -1.442695, %v788_v58  ;;  %v939_v58 = vld [vmem:[#allocation8 + $0x3] sm:$0x1] }
 0xfc0   :  { %v949_v47 = vsub.f32 1.0, %v939_v58 }
 0xfc1   :  { %2339 = vpow2.f32 %v1966_v60  ;;  %v946_v60 = vrot.slane %v939_v58, %v2710_v20 }
 0xfce   :  { %v2340_v62 = vpop.eup %2339 }
 0xfcf   :  { %v792_v63 = vadd.f32 1.0, %v2340_v62  ;;  %v941_v62 = vld [vmem:[#allocation7 + $0x6] sm:$0x3] }
 0xfd1   :  { %2341 = vrcp.f32 %v792_v63  ;;  %v954_v63 = vrot.slane %v949_v47, %v2710_v20 }
 0xfde   :  { %v2342_v8 = vpop.eup %2341 }
 0xfdf   :  { %v799_v21 = vmul.f32 %v2342_v8, %v797_v19  ;;  %v806_v26 = vsub.f32 1.0, %v2342_v8  ;;  %v812_v28 = vmul.f32 %v2342_v8, %v2824_v14  ;;  %v948_v8 = vmul.f32 %v946_v60, %v941_v62 }
 0xfe1   :  { %801 = vrot.lane.b32.xlu0 %v799_v21, %s2567_s11 }
0x1053   :  { %v802_v56 = vpop.permute.xlu0 %801 }
0x1054   :  { %v804_v23 = vadd.f32 %v802_v56, %v787_v55 }
0x1056   :  { %2343 = vtanh.f32 %v804_v23 }
0x1063   :  { %v2344_v25 = vpop.eup %2343 }
0x1064   :  { %808 = vrot.lane.b32.xlu1 %v2344_v25, %s2579_s2 }
0x10d6   :  { %v809_v27 = vpop.permute.xlu1 %808 }
0x10d7   :  { %v811_v30 = vmul.f32 %v809_v27, %v806_v26 }
0x10d9   :  { %v2873_v31 = vadd.f32 %v812_v28, %v811_v30 }
0x10db   :  { %v814_v32 = vpack.c.bf16 %v2873_v31, %v2873_v31 }
0x10dd   :  { %816 = vrot.lane.b32.xlu1 %v814_v32, %s2579_s2 }
0x114f   :  { %v817_v33 = vpop.permute.xlu1 %816 }
0x1150   :  { %1967 = vmatmul.mubr.msk.bf16.vlgmr.msra.gmra.mxu0 %vm220_vm1, %v817_v33 }
0x1151   :  { %2169 = vmatpush3.bf16.msra.mxu0 %v2643_v2  ;;  %2184 = vmatprep.mubr.msk.bf16.mxu0 %vm2577_vm0, %v2575_v0 }
0x1152   :  { %2170 = vmatprep.subr.bf16.mxu0 %v2575_v0 }
0x1155   :  { %2171 = vmatpush3.bf16.msra.mxu0 %v2652_v5 }
0x1156   :  { %2172 = vmatprep.subr.bf16.mxu0 %v2575_v0 }
0x1159   :  { %2173 = vmatpush3.bf16.msra.mxu0 %v2666_v9 }
0x115a   :  { %2174 = vmatprep.subr.bf16.mxu0 %v2575_v0 }
0x115d   :  { %2175 = vmatpush3.bf16.msra.mxu0 %v2674_v11 }
0x115e   :  { %2176 = vmatprep.subr.bf16.mxu0 %v2575_v0 }
0x1161   :  { %2177 = vmatpush3.bf16.msra.mxu0 %v2682_v12 }
0x1162   :  { %2178 = vmatprep.subr.bf16.mxu0 %v2575_v0 }
0x1165   :  { %2179 = vmatpush3.bf16.msra.mxu0 %v2688_v13 }
0x1166   :  { %2180 = vmatprep.subr.bf16.mxu0 %v2575_v0 }
0x1169   :  { %2181 = vmatpush3.bf16.msra.mxu0 %v2692_v15 }
0x116a   :  { %2182 = vmatprep.subr.bf16.mxu0 %v2575_v0 }
0x116d   :  { %2183 = vmatpush3.bf16.msra.mxu0 %v2698_v17 }
0x116e   :  { %1173 = vmatprep.subr.bf16.mxu0 %v2645_v3 }
0x1210   :  { %v855_v14 = vpop.f32.mrf.mxu0 }
0x1211   :  { %v856_v49 = vadd.f32 %v855_v14, %v2716_v22 }
0x1212   :  { %v857_v34 = vpop.f32.mrf.mxu0 }
0x1213   :  { %v2898_v35 = vadd.f32 %v857_v34, %v2748_v51 }
0x1214   :  { %v859_v36 = vpop.f32.mrf.mxu0 }
0x1215   :  { %v862_v37 = vsel %vm354_vm4, %v2898_v35, -inf }
0x1216   :  { %v860_v38 = vpop.f32.mrf.mxu0  ;;  %863 = vmax.xlane.f32.xlu0 %v862_v37 }
0x129f   :  { %v2902_v39 = vpop.xlane.xlu0 %863 }
0x12a0   :  { %vm877_vm3 = vcmp.ge.f32.partialorder %v2898_v35, %v2902_v39 }
0x12a1   :  { %v878_v40 = vsel %vm877_vm3, %v2695_v16, 128 }
0x12a2   :  { %v879_v41 = vsel %vm354_vm4, %v878_v40, 2147483647 }
0x12a3   :  { %v881_v42 = vshra.s32 %v879_v41, 16  ;;  %v880_v44 = vand.u32 65535, %v879_v41 }
0x12a5   :  { %v883_v43 = vcvt.s32.f32 %v881_v42  ;;  %v882_v46 = vcvt.s32.f32 %v880_v44 }
0x12a7   :  { %884 = vmin.xlane.f32.xlu1 %v883_v43 }
0x1330   :  { %v885_v45 = vpop.xlane.xlu1 %884 }
0x1331   :  { %vm886_vm5 = vcmp.eq.f32.partialorder %v883_v43, %v885_v45  ;;  %v891_v50 = vcvt.f32.s32 %v885_v45 }
0x1332   :  { %v887_v48 = vsel %vm886_vm5, %v882_v46, inf }
0x1333   :  { %888 = vmin.xlane.f32.xlu0 %v887_v48  ;;  %v892_v53 = vshll.u32 %v891_v50, 16 }
0x1349   :  { %966 = vrot.lane.b32.xlu0 %v856_v49, %s2567_s11 }
0x13bc   :  { %v889_v52 = vpop.xlane.xlu0 %888 }
0x13bd   :  { %v890_v55 = vcvt.f32.s32 %v889_v52 }
0x13bf   :  { %v893_v57 = vadd.s32 %v892_v53, %v890_v55 }
0x13c0   :  { %v967_v14 = vpop.permute.xlu0 %966 }
0x13c1   :  { %vm894_vm6 = vcmp.eq.s32.totalorder %v2695_v16, %v893_v57 }
0x13c2   :  { %vm1969_vm7 = vmpackc.low %vm894_vm6, %vm894_vm6 }
0x13c3   :  { %2185 = vmatmul.mubr.msk.bf16.vlgmr.msra.gmra.mxu0 %vm1969_vm7, %v2578_v18 }
0x13c4   :  { %1174 = vmatpush1.bf16.msra.mxu0 %v2648_v4  ;;  %1193 = vmatprep.mubr.bf16.mxu0 %v2576_v1 }
0x13c5   :  { %1175 = vmatprep.subr.bf16.mxu0 %v2655_v6 }
0x13c8   :  { %1176 = vmatpush1.bf16.msra.mxu0 %v2657_v7 }
0x13c9   :  { %2208 = vmatprep.subr.bf16.mxu0 %v2575_v0 }
0x1483   :  { %v932_v19 = vpop.f32.mrf.mxu0 }
0x1484   :  { %v956_v21 = vmul.f32 %v954_v63, %v932_v19  ;;  %v1109_v63 = vld [vmem:[#allocation8 + $0x4] sm:$0x1] }
0x1485   :  { %v2186_v56 = vpop.f32.mrf.mxu0  ;;  %v1116_v19 = vrot.slane %v1109_v63, %v2710_v20 }
0x1486   :  { %v957_v23 = vadd.f32 %v956_v21, %v948_v8  ;;  %v1119_v8 = vsub.f32 1.0, %v1109_v63  ;;  %v1111_v21 = vld [vmem:[#allocation7 + $0x8] sm:$0x3] }
0x1487   :  { %v935_v25 = vpop.f32.mrf.mxu0 }
0x1488   :  { %v958_v26 = vadd.f32 %v957_v23, %v856_v49  ;;  %v1124_v56 = vrot.slane %v1119_v8, %v2710_v20 }
0x1489   :  { %v2187_v27 = vpop.f32.mrf.mxu0 }
0x148a   :  { %v1971_v28 = vmul.f32 -1.442695, %v958_v26 }
0x148c   :  { %2345 = vpow2.f32 %v1971_v28 }
0x1499   :  { %v2346_v30 = vpop.eup %2345 }
0x149a   :  { %v962_v32 = vadd.f32 1.0, %v2346_v30 }
0x149c   :  { %2347 = vrcp.f32 %v962_v32 }
0x14a9   :  { %v2348_v33 = vpop.eup %2347 }
0x14aa   :  { %v969_v34 = vmul.f32 %v2348_v33, %v967_v14  ;;  %v976_v40 = vsub.f32 1.0, %v2348_v33  ;;  %v982_v42 = vmul.f32 %v2348_v33, %v2873_v31 }
0x14ac   :  { %971 = vrot.lane.b32.xlu1 %v969_v34, %s2567_s11 }
0x151e   :  { %v972_v36 = vpop.permute.xlu1 %971 }
0x151f   :  { %v974_v37 = vadd.f32 %v972_v36, %v957_v23  ;;  %v1118_v23 = vmul.f32 %v1116_v19, %v1111_v21 }
0x1521   :  { %2349 = vtanh.f32 %v974_v37 }
0x152e   :  { %v2350_v38 = vpop.eup %2349 }
0x152f   :  { %978 = vrot.lane.b32.xlu1 %v2350_v38, %s2579_s2 }
0x15a1   :  { %v979_v41 = vpop.permute.xlu1 %978 }
0x15a2   :  { %v981_v43 = vmul.f32 %v979_v41, %v976_v40 }
0x15a4   :  { %v2922_v44 = vadd.f32 %v982_v42, %v981_v43 }
0x15a6   :  { %v984_v45 = vpack.c.bf16 %v2922_v44, %v2922_v44 }
0x15a8   :  { %986 = vrot.lane.b32.xlu0 %v984_v45, %s2579_s2 }
0x161a   :  { %v987_v46 = vpop.permute.xlu0 %986 }
0x161b   :  { %1972 = vmatmul.mubr.msk.bf16.vlgmr.msra.gmra.mxu1 %vm220_vm1, %v987_v46 }
0x161c   :  { %2189 = vmatpush3.bf16.msra.mxu1 %v2643_v2  ;;  %2204 = vmatprep.mubr.msk.bf16.mxu1 %vm2577_vm0, %v2575_v0 }
0x161d   :  { %2190 = vmatprep.subr.bf16.mxu1 %v2575_v0 }
0x1620   :  { %2191 = vmatpush3.bf16.msra.mxu1 %v2652_v5 }
0x1621   :  { %2192 = vmatprep.subr.bf16.mxu1 %v2575_v0 }
0x1624   :  { %2193 = vmatpush3.bf16.msra.mxu1 %v2666_v9 }
0x1625   :  { %2194 = vmatprep.subr.bf16.mxu1 %v2575_v0 }
0x1628   :  { %2195 = vmatpush3.bf16.msra.mxu1 %v2674_v11 }
0x1629   :  { %2196 = vmatprep.subr.bf16.mxu1 %v2575_v0 }
0x162c   :  { %2197 = vmatpush3.bf16.msra.mxu1 %v2682_v12 }
0x162d   :  { %2198 = vmatprep.subr.bf16.mxu1 %v2575_v0 }
0x1630   :  { %2199 = vmatpush3.bf16.msra.mxu1 %v2688_v13 }
0x1631   :  { %2200 = vmatprep.subr.bf16.mxu1 %v2575_v0 }
0x1634   :  { %2201 = vmatpush3.bf16.msra.mxu1 %v2692_v15 }
0x1635   :  { %2202 = vmatprep.subr.bf16.mxu1 %v2575_v0 }
0x1638   :  { %2203 = vmatpush3.bf16.msra.mxu1 %v2698_v17 }
0x1639   :  { %1343 = vmatprep.subr.bf16.mxu1 %v2645_v3 }
0x16db   :  { %v1025_v2 = vpop.f32.mrf.mxu1 }
0x16dc   :  { %v1026_v31 = vadd.f32 %v1025_v2, %v2716_v22 }
0x16dd   :  { %v1027_v5 = vpop.f32.mrf.mxu1 }
0x16de   :  { %v2947_v9 = vadd.f32 %v1027_v5, %v2748_v51 }
0x16df   :  { %v1029_v11 = vpop.f32.mrf.mxu1 }
0x16e0   :  { %v1032_v12 = vsel %vm354_vm4, %v2947_v9, -inf  ;;  %v2977_v11 = vld [vmem:[#allocation2 + $0x38] sm:$0xff]  }
0x16e1   :  { %v1030_v13 = vpop.f32.mrf.mxu1  ;;  %1033 = vmax.xlane.f32.xlu1 %v1032_v12  ;;  %v2987_v12 = vld [vmem:[#allocation2 + $0x28] sm:$0xff]  }
0x16e2   :  { %v2991_v13 = vld [vmem:[#allocation2 + $0x20] sm:$0xff]  }
0x16f2   :  { %1136 = vrot.lane.b32.xlu1 %v1026_v31, %s2567_s11 }
0x176a   :  { %v2953_v15 = vpop.xlane.xlu1 %1033 }
0x176b   :  { %vm1047_vm8 = vcmp.ge.f32.partialorder %v2947_v9, %v2953_v15 }
0x176c   :  { %v1048_v3 = vsel %vm1047_vm8, %v2695_v16, 128 }
0x176d   :  { %v1049_v17 = vsel %vm354_vm4, %v1048_v3, 2147483647  ;;  %v2999_v3 = vld [vmem:[#allocation2 + $0x10] sm:$0xff]  }
0x176e   :  { %v1051_v48 = vshra.s32 %v1049_v17, 16  ;;  %v1050_v50 = vand.u32 65535, %v1049_v17  ;;  %v1137_v34 = vpop.permute.xlu1 %1136  ;;  %v3003_v17 = vld [vmem:[#allocation2 + $0x8] sm:$0xff]  }
0x1770   :  { %v1053_v49 = vcvt.s32.f32 %v1051_v48  ;;  %v1052_v53 = vcvt.s32.f32 %v1050_v50  ;;  %v3007_v48 = vld [vmem:[#allocation2] sm:$0xff]  }
0x1772   :  { %1054 = vmin.xlane.f32.xlu0 %v1053_v49 }
0x17fb   :  { %v1055_v52 = vpop.xlane.xlu0 %1054 }
0x17fc   :  { %vm1056_vm9 = vcmp.eq.f32.partialorder %v1053_v49, %v1055_v52  ;;  %v1061_v57 = vcvt.f32.s32 %v1055_v52  ;;  %v3010_v49 = vld [vmem:[#allocation5 + $0x14] ss:$8 sps:$4 sm:$0xff]  }
0x17fd   :  { %v1057_v55 = vsel %vm1056_vm9, %v1052_v53, inf }
0x17fe   :  { %1058 = vmin.xlane.f32.xlu0 %v1057_v55  ;;  %v1062_v47 = vshll.u32 %v1061_v57, 16 }
0x1887   :  { %v1059_v58 = vpop.xlane.xlu0 %1058 }
0x1888   :  { %v1060_v60 = vcvt.f32.s32 %v1059_v58 }
0x188a   :  { %v1063_v62 = vadd.s32 %v1062_v47, %v1060_v60 }
0x188c   :  { %vm1064_vm10 = vcmp.eq.s32.totalorder %v2695_v16, %v1063_v62 }
0x188d   :  { %vm1974_vm11 = vmpackc.low %vm1064_vm10, %vm1064_vm10 }
0x188e   :  { %2205 = vmatmul.mubr.msk.bf16.vlgmr.msra.gmra.mxu1 %vm1974_vm11, %v2578_v18 }
0x188f   :  { %1344 = vmatpush1.bf16.msra.mxu1 %v2648_v4  ;;  %1363 = vmatprep.mubr.bf16.mxu1 %v2576_v1 }
0x1890   :  { %1345 = vmatprep.subr.bf16.mxu1 %v2655_v6 }
0x1893   :  { %1346 = vmatpush1.bf16.msra.mxu1 %v2657_v7 }
0x1894   :  { %2228 = vmatprep.subr.bf16.mxu1 %v2575_v0 }
0x194e   :  { %v1102_v25 = vpop.f32.mrf.mxu1 }
0x194f   :  { %v1126_v26 = vmul.f32 %v1124_v56, %v1102_v25 }
0x1950   :  { %v2206_v27 = vpop.f32.mrf.mxu1 }
0x1951   :  { %v1127_v4 = vadd.f32 %v1126_v26, %v1118_v23 }
0x1952   :  { %v1105_v28 = vpop.f32.mrf.mxu1 }
0x1953   :  { %v1128_v30 = vadd.f32 %v1127_v4, %v1026_v31  ;;  %v2995_v31 = vld [vmem:[#allocation2 + $0x18] sm:$0xff]  }
0x1954   :  { %v2207_v32 = vpop.f32.mrf.mxu1 }
0x1955   :  { %v1976_v6 = vmul.f32 -1.442695, %v1128_v30  ;;  %v3028_v32 = vld [vmem:[#allocation5 + $0x10] ss:$8 sps:$4 sm:$0xff]  }
0x1957   :  { %2351 = vpow2.f32 %v1976_v6  ;;  %v3032_v6 = vld [vmem:[#allocation5 + $0x4] ss:$8 sps:$4 sm:$0xff]  }
0x1964   :  { %v2352_v7 = vpop.eup %2351 }
0x1965   :  { %v1132_v33 = vadd.f32 1.0, %v2352_v7  ;;  %v3035_v7 = vld [vmem:[#allocation5] ss:$8 sps:$4 sm:$0xff]  }
0x1967   :  { %2353 = vrcp.f32 %v1132_v33  ;;  %v1279_v33 = vld [vmem:[#allocation8 + $0x5] sm:$0x1] }
0x1974   :  { %v2354_v14 = vpop.eup %2353 }
0x1975   :  { %v1139_v36 = vmul.f32 %v2354_v14, %v1137_v34  ;;  %v1146_v41 = vsub.f32 1.0, %v2354_v14  ;;  %v1152_v43 = vmul.f32 %v2354_v14, %v2922_v44  ;;  %v2983_v44 = vld [vmem:[#allocation2 + $0x30] sm:$0xff]   ;;  %v1289_v14 = vsub.f32 1.0, %v1279_v33 }
0x1976   :  { %v1286_v34 = vrot.slane %v1279_v33, %v2710_v20 }
0x1977   :  { %1141 = vrot.lane.b32.xlu0 %v1139_v36, %s2567_s11  ;;  %v1281_v36 = vld [vmem:[#allocation7 + $0xa] sm:$0x3] }
0x19e9   :  { %v1142_v37 = vpop.permute.xlu0 %1141 }
0x19ea   :  { %v1144_v38 = vadd.f32 %v1142_v37, %v1127_v4  ;;  %v1294_v37 = vrot.slane %v1289_v14, %v2710_v20 }
0x19ec   :  { %2355 = vtanh.f32 %v1144_v38  ;;  %v1288_v38 = vmul.f32 %v1286_v34, %v1281_v36 }
0x19f9   :  { %v2356_v40 = vpop.eup %2355 }
0x19fa   :  { %1148 = vrot.lane.b32.xlu1 %v2356_v40, %s2579_s2 }
0x1a6c   :  { %v1149_v42 = vpop.permute.xlu1 %1148 }
0x1a6d   :  { %v1151_v45 = vmul.f32 %v1149_v42, %v1146_v41 }
0x1a6f   :  { %v2971_v46 = vadd.f32 %v1152_v43, %v1151_v45 }
0x1a71   :  { %v1154_v2 = vpack.c.bf16 %v2971_v46, %v2971_v46 }
0x1a73   :  { %1156 = vrot.lane.b32.xlu1 %v1154_v2, %s2579_s2 }
0x1ae5   :  { %v1157_v5 = vpop.permute.xlu1 %1156 }
0x1ae6   :  { %1977 = vmatmul.mubr.msk.bf16.vlgmr.msra.gmra.mxu0 %vm220_vm1, %v1157_v5 }
0x1ae7   :  { %2209 = vmatpush3.bf16.msra.mxu0 %v2977_v11  ;;  %2224 = vmatprep.mubr.msk.bf16.mxu0 %vm2577_vm0, %v2575_v0 }
0x1ae8   :  { %2210 = vmatprep.subr.bf16.mxu0 %v2575_v0 }
0x1aeb   :  { %2211 = vmatpush3.bf16.msra.mxu0 %v2983_v44 }
0x1aec   :  { %2212 = vmatprep.subr.bf16.mxu0 %v2575_v0 }
0x1aef   :  { %2213 = vmatpush3.bf16.msra.mxu0 %v2987_v12 }
0x1af0   :  { %2214 = vmatprep.subr.bf16.mxu0 %v2575_v0 }
0x1af3   :  { %2215 = vmatpush3.bf16.msra.mxu0 %v2991_v13 }
0x1af4   :  { %2216 = vmatprep.subr.bf16.mxu0 %v2575_v0 }
0x1af7   :  { %2217 = vmatpush3.bf16.msra.mxu0 %v2995_v31 }
0x1af8   :  { %2218 = vmatprep.subr.bf16.mxu0 %v2575_v0 }
0x1afb   :  { %2219 = vmatpush3.bf16.msra.mxu0 %v2999_v3 }
0x1afc   :  { %2220 = vmatprep.subr.bf16.mxu0 %v2575_v0 }
0x1aff   :  { %2221 = vmatpush3.bf16.msra.mxu0 %v3003_v17 }
0x1b00   :  { %2222 = vmatprep.subr.bf16.mxu0 %v2575_v0 }
0x1b03   :  { %2223 = vmatpush3.bf16.msra.mxu0 %v3007_v48 }
0x1b04   :  { %1513 = vmatprep.subr.bf16.mxu0 %v3010_v49 }
0x1ba6   :  { %v1195_v50 = vpop.f32.mrf.mxu0 }
0x1ba7   :  { %v1196_v25 = vadd.f32 %v1195_v50, %v2716_v22 }
0x1ba8   :  { %v1197_v52 = vpop.f32.mrf.mxu0 }
0x1ba9   :  { %v3014_v53 = vadd.f32 %v1197_v52, %v2748_v51 }
0x1baa   :  { %v1199_v55 = vpop.f32.mrf.mxu0 }
0x1bab   :  { %v1202_v57 = vsel %vm354_vm4, %v3014_v53, -inf }
0x1bac   :  { %v1200_v58 = vpop.f32.mrf.mxu0  ;;  %1203 = vmax.xlane.f32.xlu0 %v1202_v57 }
0x1c35   :  { %v3018_v47 = vpop.xlane.xlu0 %1203 }
0x1c36   :  { %vm1217_vm12 = vcmp.ge.f32.partialorder %v3014_v53, %v3018_v47 }
0x1c37   :  { %v1218_v60 = vsel %vm1217_vm12, %v2695_v16, 128 }
0x1c38   :  { %v1219_v62 = vsel %vm354_vm4, %v1218_v60, 2147483647 }
0x1c39   :  { %v1221_v63 = vshra.s32 %v1219_v62, 16  ;;  %v1220_v19 = vand.u32 65535, %v1219_v62 }
0x1c3b   :  { %v1223_v8 = vcvt.s32.f32 %v1221_v63  ;;  %v1222_v56 = vcvt.s32.f32 %v1220_v19 }
0x1c3d   :  { %1224 = vmin.xlane.f32.xlu1 %v1223_v8 }
0x1cc6   :  { %v1225_v21 = vpop.xlane.xlu1 %1224 }
0x1cc7   :  { %vm1226_vm13 = vcmp.eq.f32.partialorder %v1223_v8, %v1225_v21  ;;  %v1231_v26 = vcvt.f32.s32 %v1225_v21 }
0x1cc8   :  { %v1227_v23 = vsel %vm1226_vm13, %v1222_v56, inf }
0x1cc9   :  { %1228 = vmin.xlane.f32.xlu0 %v1227_v23  ;;  %v1232_v4 = vshll.u32 %v1231_v26, 16 }
0x1cdf   :  { %1306 = vrot.lane.b32.xlu0 %v1196_v25, %s2567_s11 }
0x1d52   :  { %v1229_v27 = vpop.xlane.xlu0 %1228 }
0x1d53   :  { %v1230_v28 = vcvt.f32.s32 %v1229_v27 }
0x1d55   :  { %v1233_v30 = vadd.s32 %v1232_v4, %v1230_v28 }
0x1d56   :  { %v1307_v58 = vpop.permute.xlu0 %1306 }
0x1d57   :  { %vm1234_vm14 = vcmp.eq.s32.totalorder %v2695_v16, %v1233_v30 }
0x1d58   :  { %vm1979_vm15 = vmpackc.low %vm1234_vm14, %vm1234_vm14 }
0x1d59   :  { %2225 = vmatmul.mubr.msk.bf16.vlgmr.msra.gmra.mxu0 %vm1979_vm15, %v2578_v18 }
0x1d5a   :  { %1514 = vmatpush1.bf16.msra.mxu0 %v3028_v32  ;;  %1533 = vmatprep.mubr.bf16.mxu0 %v2576_v1 }
0x1d5b   :  { %1515 = vmatprep.subr.bf16.mxu0 %v3032_v6 }
0x1d5e   :  { %1516 = vmatpush1.bf16.msra.mxu0 %v3035_v7 }
0x1d5f   :  { %2248 = vmatprep.subr.bf16.mxu0 %v2575_v0 }
0x1e19   :  { %v1272_v40 = vpop.f32.mrf.mxu0 }
0x1e1a   :  { %v1296_v41 = vmul.f32 %v1294_v37, %v1272_v40 }
0x1e1b   :  { %v2226_v42 = vpop.f32.mrf.mxu0 }
0x1e1c   :  { %v1297_v43 = vadd.f32 %v1296_v41, %v1288_v38 }
0x1e1d   :  { %v1275_v45 = vpop.f32.mrf.mxu0 }
0x1e1e   :  { %v1298_v2 = vadd.f32 %v1297_v43, %v1196_v25 }
0x1e1f   :  { %v2227_v5 = vpop.f32.mrf.mxu0 }
0x1e20   :  { %v1981_v50 = vmul.f32 -1.442695, %v1298_v2 }
0x1e22   :  { %2357 = vpow2.f32 %v1981_v50 }
0x1e2f   :  { %v2358_v52 = vpop.eup %2357 }
0x1e30   :  { %v1302_v55 = vadd.f32 1.0, %v2358_v52 }
0x1e32   :  { %2359 = vrcp.f32 %v1302_v55 }
0x1e3f   :  { %v2360_v57 = vpop.eup %2359 }
0x1e40   :  { %v1309_v60 = vmul.f32 %v2360_v57, %v1307_v58  ;;  %v1316_v19 = vsub.f32 1.0, %v2360_v57  ;;  %v1322_v56 = vmul.f32 %v2360_v57, %v2971_v46  ;;  %v1449_v58 = vld [vmem:[#allocation8 + $0x6] sm:$0x1] }
0x1e42   :  { %1311 = vrot.lane.b32.xlu1 %v1309_v60, %s2567_s11  ;;  %v1459_v60 = vsub.f32 1.0, %v1449_v58 }
0x1eb4   :  { %v1312_v62 = vpop.permute.xlu1 %1311 }
0x1eb5   :  { %v1314_v63 = vadd.f32 %v1312_v62, %v1297_v43  ;;  %v1456_v62 = vrot.slane %v1449_v58, %v2710_v20 }
0x1eb7   :  { %2361 = vtanh.f32 %v1314_v63  ;;  %v1451_v63 = vld [vmem:[#allocation7 + $0xc] sm:$0x3] }
0x1ec4   :  { %v2362_v8 = vpop.eup %2361 }
0x1ec5   :  { %1318 = vrot.lane.b32.xlu1 %v2362_v8, %s2579_s2  ;;  %v1464_v8 = vrot.slane %v1459_v60, %v2710_v20 }
0x1f37   :  { %v1319_v21 = vpop.permute.xlu1 %1318 }
0x1f38   :  { %v1321_v23 = vmul.f32 %v1319_v21, %v1316_v19  ;;  %v1458_v19 = vmul.f32 %v1456_v62, %v1451_v63 }
0x1f3a   :  { %v3044_v25 = vadd.f32 %v1322_v56, %v1321_v23 }
0x1f3c   :  { %v1324_v26 = vpack.c.bf16 %v3044_v25, %v3044_v25 }
0x1f3e   :  { %1326 = vrot.lane.b32.xlu0 %v1324_v26, %s2579_s2 }
0x1fb0   :  { %v1327_v27 = vpop.permute.xlu0 %1326 }
0x1fb1   :  { %1982 = vmatmul.mubr.msk.bf16.vlgmr.msra.gmra.mxu1 %vm220_vm1, %v1327_v27 }
0x1fb2   :  { %2229 = vmatpush3.bf16.msra.mxu1 %v2977_v11  ;;  %2244 = vmatprep.mubr.msk.bf16.mxu1 %vm2577_vm0, %v2575_v0 }
0x1fb3   :  { %2230 = vmatprep.subr.bf16.mxu1 %v2575_v0 }
0x1fb6   :  { %2231 = vmatpush3.bf16.msra.mxu1 %v2983_v44 }
0x1fb7   :  { %2232 = vmatprep.subr.bf16.mxu1 %v2575_v0 }
0x1fba   :  { %2233 = vmatpush3.bf16.msra.mxu1 %v2987_v12 }
0x1fbb   :  { %2234 = vmatprep.subr.bf16.mxu1 %v2575_v0 }
0x1fbe   :  { %2235 = vmatpush3.bf16.msra.mxu1 %v2991_v13 }
0x1fbf   :  { %2236 = vmatprep.subr.bf16.mxu1 %v2575_v0 }
0x1fc2   :  { %2237 = vmatpush3.bf16.msra.mxu1 %v2995_v31 }
0x1fc3   :  { %2238 = vmatprep.subr.bf16.mxu1 %v2575_v0 }
0x1fc6   :  { %2239 = vmatpush3.bf16.msra.mxu1 %v2999_v3 }
0x1fc7   :  { %2240 = vmatprep.subr.bf16.mxu1 %v2575_v0 }
0x1fca   :  { %2241 = vmatpush3.bf16.msra.mxu1 %v3003_v17 }
0x1fcb   :  { %2242 = vmatprep.subr.bf16.mxu1 %v2575_v0 }
0x1fce   :  { %2243 = vmatpush3.bf16.msra.mxu1 %v3007_v48 }
0x1fcf   :  { %1683 = vmatprep.subr.bf16.mxu1 %v3010_v49 }
0x2071   :  { %v1365_v46 = vpop.f32.mrf.mxu1 }
0x2072   :  { %v1366_v34 = vadd.f32 %v1365_v46, %v2716_v22 }
0x2073   :  { %v1367_v4 = vpop.f32.mrf.mxu1 }
0x2074   :  { %v3069_v28 = vadd.f32 %v1367_v4, %v2748_v51 }
0x2075   :  { %v1369_v30 = vpop.f32.mrf.mxu1 }
0x2076   :  { %v1372_v33 = vsel %vm354_vm4, %v3069_v28, -inf }
0x2077   :  { %v1370_v14 = vpop.f32.mrf.mxu1  ;;  %1373 = vmax.xlane.f32.xlu1 %v1372_v33 }
0x2088   :  { %1476 = vrot.lane.b32.xlu1 %v1366_v34, %s2567_s11 }
0x2100   :  { %v3075_v36 = vpop.xlane.xlu1 %1373 }
0x2101   :  { %vm1387_vm2 = vcmp.ge.f32.partialorder %v3069_v28, %v3075_v36 }
0x2102   :  { %v1388_v37 = vsel %vm1387_vm2, %v2695_v16, 128 }
0x2103   :  { %v1389_v38 = vsel %vm354_vm4, %v1388_v37, 2147483647 }
0x2104   :  { %v1391_v40 = vshra.s32 %v1389_v38, 16  ;;  %v1390_v42 = vand.u32 65535, %v1389_v38  ;;  %v1477_v38 = vpop.permute.xlu1 %1476 }
0x2106   :  { %v1393_v41 = vcvt.s32.f32 %v1391_v40  ;;  %v1392_v45 = vcvt.s32.f32 %v1390_v42 }
0x2108   :  { %1394 = vmin.xlane.f32.xlu0 %v1393_v41 }
0x2191   :  { %v1395_v43 = vpop.xlane.xlu0 %1394 }
0x2192   :  { %vm1396_vm3 = vcmp.eq.f32.partialorder %v1393_v41, %v1395_v43  ;;  %v1401_v5 = vcvt.f32.s32 %v1395_v43 }
0x2193   :  { %v1397_v2 = vsel %vm1396_vm3, %v1392_v45, inf }
0x2194   :  { %1398 = vmin.xlane.f32.xlu0 %v1397_v2  ;;  %v1402_v52 = vshll.u32 %v1401_v5, 16 }
0x221d   :  { %v1399_v50 = vpop.xlane.xlu0 %1398 }
0x221e   :  { %v1400_v55 = vcvt.f32.s32 %v1399_v50 }
0x2220   :  { %v1403_v57 = vadd.s32 %v1402_v52, %v1400_v55 }
0x2222   :  { %vm1404_vm5 = vcmp.eq.s32.totalorder %v2695_v16, %v1403_v57 }
0x2223   :  { %vm1984_vm6 = vmpackc.low %vm1404_vm5, %vm1404_vm5 }
0x2224   :  { %2245 = vmatmul.mubr.msk.bf16.vlgmr.msra.gmra.mxu1 %vm1984_vm6, %v2578_v18 }
0x2225   :  { %1684 = vmatpush1.bf16.msra.mxu1 %v3028_v32  ;;  %1703 = vmatprep.mubr.bf16.mxu1 %v2576_v1 }
0x2226   :  { %1685 = vmatprep.subr.bf16.mxu1 %v3032_v6 }
0x2229   :  { %1686 = vmatpush1.bf16.msra.mxu1 %v3035_v7 }
0x222a   :  { %2268 = vmatprep.subr.bf16.mxu1 %v2575_v0 }
0x22e4   :  { %v1442_v21 = vpop.f32.mrf.mxu1 }
0x22e5   :  { %v1466_v56 = vmul.f32 %v1464_v8, %v1442_v21 }
0x22e6   :  { %v2246_v23 = vpop.f32.mrf.mxu1 }
0x22e7   :  { %v1467_v26 = vadd.f32 %v1466_v56, %v1458_v19 }
0x22e8   :  { %v1445_v27 = vpop.f32.mrf.mxu1 }
0x22e9   :  { %v1468_v46 = vadd.f32 %v1467_v26, %v1366_v34 }
0x22ea   :  { %v2247_v4 = vpop.f32.mrf.mxu1 }
0x22eb   :  { %v1986_v30 = vmul.f32 -1.442695, %v1468_v46 }
0x22ed   :  { %2363 = vpow2.f32 %v1986_v30 }
0x22fa   :  { %v2364_v33 = vpop.eup %2363 }
0x22fb   :  { %v1472_v14 = vadd.f32 1.0, %v2364_v33 }
0x22fd   :  { %2365 = vrcp.f32 %v1472_v14 }
0x230a   :  { %v2366_v37 = vpop.eup %2365 }
0x230b   :  { %v1479_v40 = vmul.f32 %v2366_v37, %v1477_v38  ;;  %v1486_v45 = vsub.f32 1.0, %v2366_v37  ;;  %v1492_v34 = vmul.f32 %v2366_v37, %v3044_v25 }
0x230d   :  { %1481 = vrot.lane.b32.xlu0 %v1479_v40, %s2567_s11  ;;  %v1619_v40 = vld [vmem:[#allocation8 + $0x7] sm:$0x1] }
0x237f   :  { %v1482_v41 = vpop.permute.xlu0 %1481 }
0x2380   :  { %v1484_v42 = vadd.f32 %v1482_v41, %v1467_v26  ;;  %v1629_v41 = vsub.f32 1.0, %v1619_v40 }
0x2382   :  { %2367 = vtanh.f32 %v1484_v42  ;;  %v1626_v42 = vrot.slane %v1619_v40, %v2710_v20 }
0x238f   :  { %v2368_v43 = vpop.eup %2367 }
0x2390   :  { %1488 = vrot.lane.b32.xlu1 %v2368_v43, %s2579_s2  ;;  %v1621_v43 = vld [vmem:[#allocation7 + $0xe] sm:$0x3] }
0x2402   :  { %v1489_v2 = vpop.permute.xlu1 %1488 }
0x2403   :  { %v1491_v5 = vmul.f32 %v1489_v2, %v1486_v45  ;;  %v1634_v45 = vrot.slane %v1629_v41, %v2710_v20  ;;  %v1628_v2 = vmul.f32 %v1626_v42, %v1621_v43 }
0x2405   :  { %v3093_v50 = vadd.f32 %v1492_v34, %v1491_v5 }
0x2407   :  { %v1494_v52 = vpack.c.bf16 %v3093_v50, %v3093_v50 }
0x2409   :  { %1496 = vrot.lane.b32.xlu1 %v1494_v52, %s2579_s2 }
0x247b   :  { %v1497_v55 = vpop.permute.xlu1 %1496 }
0x247c   :  { %1987 = vmatmul.mubr.msk.bf16.vlgmr.msra.gmra.mxu0 %vm220_vm1, %v1497_v55 }
0x247d   :  { %2249 = vmatpush3.bf16.msra.mxu0 %v2977_v11  ;;  %2264 = vmatprep.mubr.msk.bf16.mxu0 %vm2577_vm0, %v2575_v0 }
0x247e   :  { %2250 = vmatprep.subr.bf16.mxu0 %v2575_v0 }
0x2481   :  { %2251 = vmatpush3.bf16.msra.mxu0 %v2983_v44 }
0x2482   :  { %2252 = vmatprep.subr.bf16.mxu0 %v2575_v0 }
0x2485   :  { %2253 = vmatpush3.bf16.msra.mxu0 %v2987_v12 }
0x2486   :  { %2254 = vmatprep.subr.bf16.mxu0 %v2575_v0 }
0x2489   :  { %2255 = vmatpush3.bf16.msra.mxu0 %v2991_v13 }
0x248a   :  { %2256 = vmatprep.subr.bf16.mxu0 %v2575_v0 }
0x248d   :  { %2257 = vmatpush3.bf16.msra.mxu0 %v2995_v31 }
0x248e   :  { %2258 = vmatprep.subr.bf16.mxu0 %v2575_v0 }
0x2491   :  { %2259 = vmatpush3.bf16.msra.mxu0 %v2999_v3 }
0x2492   :  { %2260 = vmatprep.subr.bf16.mxu0 %v2575_v0 }
0x2495   :  { %2261 = vmatpush3.bf16.msra.mxu0 %v3003_v17 }
0x2496   :  { %2262 = vmatprep.subr.bf16.mxu0 %v2575_v0 }
0x2499   :  { %2263 = vmatpush3.bf16.msra.mxu0 %v3007_v48 }
0x249a   :  { %1853 = vmatprep.subr.bf16.mxu0 %v3010_v49 }
0x253c   :  { %v1535_v25 = vpop.f32.mrf.mxu0 }
0x253d   :  { %v1536_v4 = vadd.f32 %v1535_v25, %v2716_v22 }
0x253e   :  { %v1537_v57 = vpop.f32.mrf.mxu0 }
0x253f   :  { %v3118_v58 = vadd.f32 %v1537_v57, %v2748_v51 }
0x2540   :  { %v1539_v60 = vpop.f32.mrf.mxu0 }
0x2541   :  { %v1542_v62 = vsel %vm354_vm4, %v3118_v58, -inf }
0x2542   :  { %v1540_v63 = vpop.f32.mrf.mxu0  ;;  %1543 = vmax.xlane.f32.xlu0 %v1542_v62 }
0x25cb   :  { %v3122_v8 = vpop.xlane.xlu0 %1543 }
0x25cc   :  { %vm1557_vm7 = vcmp.ge.f32.partialorder %v3118_v58, %v3122_v8 }
0x25cd   :  { %v1558_v19 = vsel %vm1557_vm7, %v2695_v16, 128 }
0x25ce   :  { %v1559_v49 = vsel %vm354_vm4, %v1558_v19, 2147483647 }
0x25cf   :  { %v1561_v21 = vshra.s32 %v1559_v49, 16  ;;  %v1560_v23 = vand.u32 65535, %v1559_v49 }
0x25d1   :  { %v1563_v56 = vcvt.s32.f32 %v1561_v21  ;;  %v1562_v27 = vcvt.s32.f32 %v1560_v23 }
0x25d3   :  { %1564 = vmin.xlane.f32.xlu1 %v1563_v56 }
0x265c   :  { %v1565_v26 = vpop.xlane.xlu1 %1564 }
0x265d   :  { %vm1566_vm8 = vcmp.eq.f32.partialorder %v1563_v56, %v1565_v26  ;;  %v1571_v30 = vcvt.f32.s32 %v1565_v26 }
0x265e   :  { %v1567_v46 = vsel %vm1566_vm8, %v1562_v27, inf }
0x265f   :  { %1568 = vmin.xlane.f32.xlu0 %v1567_v46  ;;  %v1572_v14 = vshll.u32 %v1571_v30, 16 }
0x2675   :  { %1646 = vrot.lane.b32.xlu0 %v1536_v4, %s2567_s11 }
0x26e8   :  { %v1569_v33 = vpop.xlane.xlu0 %1568 }
0x26e9   :  { %v1570_v37 = vcvt.f32.s32 %v1569_v33 }
0x26eb   :  { %v1573_v38 = vadd.s32 %v1572_v14, %v1570_v37 }
0x26ec   :  { %v1647_v62 = vpop.permute.xlu0 %1646 }
0x26ed   :  { %vm1574_vm9 = vcmp.eq.s32.totalorder %v2695_v16, %v1573_v38 }
0x26ee   :  { %vm1989_vm10 = vmpackc.low %vm1574_vm9, %vm1574_vm9 }
0x26ef   :  { %2265 = vmatmul.mubr.msk.bf16.vlgmr.msra.gmra.mxu0 %vm1989_vm10, %v2578_v18 }
0x26f0   :  { %1854 = vmatpush1.bf16.msra.mxu0 %v3028_v32  ;;  %1873 = vmatprep.mubr.bf16.mxu0 %v2576_v1 }
0x26f1   :  { %1855 = vmatprep.subr.bf16.mxu0 %v3032_v6 }
0x26f4   :  { %1856 = vmatpush1.bf16.msra.mxu0 %v3035_v7 }
0x27af   :  { %v1612_v34 = vpop.f32.mrf.mxu0 }
0x27b0   :  { %v1636_v5 = vmul.f32 %v1634_v45, %v1612_v34  ;;  %v1789_v34 = vld [vmem:[#allocation8 + $0x8] sm:$0x1] }
0x27b1   :  { %v2266_v52 = vpop.f32.mrf.mxu0 }
0x27b2   :  { %v1637_v55 = vadd.f32 %v1636_v5, %v1628_v2  ;;  %v1799_v5 = vsub.f32 1.0, %v1789_v34  ;;  %v1796_v52 = vrot.slane %v1789_v34, %v2710_v20 }
0x27b3   :  { %v1615_v25 = vpop.f32.mrf.mxu0 }
0x27b4   :  { %v1638_v32 = vadd.f32 %v1637_v55, %v1536_v4  ;;  %v1804_v25 = vrot.slane %v1799_v5, %v2710_v20 }
0x27b5   :  { %v2267_v57 = vpop.f32.mrf.mxu0 }
0x27b6   :  { %v1991_v1 = vmul.f32 -1.442695, %v1638_v32 }
0x27b8   :  { %2369 = vpow2.f32 %v1991_v1 }
0x27c5   :  { %v2370_v6 = vpop.eup %2369 }
0x27c6   :  { %v1642_v60 = vadd.f32 1.0, %v2370_v6 }
0x27c8   :  { %2371 = vrcp.f32 %v1642_v60 }
0x27d5   :  { %v2372_v7 = vpop.eup %2371 }
0x27d6   :  { %v1649_v63 = vmul.f32 %v2372_v7, %v1647_v62  ;;  %v1656_v56 = vsub.f32 1.0, %v2372_v7  ;;  %v1662_v26 = vmul.f32 %v2372_v7, %v3093_v50 }
0x27d8   :  { %1651 = vrot.lane.b32.xlu1 %v1649_v63, %s2567_s11 }
0x284a   :  { %v1652_v19 = vpop.permute.xlu1 %1651 }
0x284b   :  { %v1654_v49 = vadd.f32 %v1652_v19, %v1637_v55  ;;  %v1791_v55 = vld [vmem:[#allocation7 + $0x10] sm:$0x3] }
0x284c   :  { %v1798_v32 = vmul.f32 %v1796_v52, %v1791_v55 }
0x284d   :  { %2373 = vtanh.f32 %v1654_v49 }
0x285a   :  { %v2374_v21 = vpop.eup %2373 }
0x285b   :  { %1658 = vrot.lane.b32.xlu1 %v2374_v21, %s2579_s2 }
0x28cd   :  { %v1659_v23 = vpop.permute.xlu1 %1658 }
0x28ce   :  { %v1661_v27 = vmul.f32 %v1659_v23, %v1656_v56 }
0x28d0   :  { %v3141_v46 = vadd.f32 %v1662_v26, %v1661_v27 }
0x28d2   :  { %v1664_v4 = vpack.c.bf16 %v3141_v46, %v3141_v46 }
0x28d4   :  { %1666 = vrot.lane.b32.xlu0 %v1664_v4, %s2579_s2 }
0x2946   :  { %v1667_v30 = vpop.permute.xlu0 %1666 }
0x2947   :  { %1992 = vmatmul.mubr.msk.bf16.vlgmr.msra.gmra.mxu1 %vm220_vm1, %v1667_v30 }
0x2948   :  { %2269 = vmatpush3.bf16.msra.mxu1 %v2977_v11  ;;  %2284 = vmatprep.mubr.msk.bf16.mxu1 %vm2577_vm0, %v2575_v0 }
0x2949   :  { %2270 = vmatprep.subr.bf16.mxu1 %v2575_v0 }
0x294c   :  { %2271 = vmatpush3.bf16.msra.mxu1 %v2983_v44 }
0x294d   :  { %2272 = vmatprep.subr.bf16.mxu1 %v2575_v0 }
0x2950   :  { %2273 = vmatpush3.bf16.msra.mxu1 %v2987_v12 }
0x2951   :  { %2274 = vmatprep.subr.bf16.mxu1 %v2575_v0 }
0x2954   :  { %2275 = vmatpush3.bf16.msra.mxu1 %v2991_v13 }
0x2955   :  { %2276 = vmatprep.subr.bf16.mxu1 %v2575_v0 }
0x2958   :  { %2277 = vmatpush3.bf16.msra.mxu1 %v2995_v31 }
0x2959   :  { %2278 = vmatprep.subr.bf16.mxu1 %v2575_v0 }
0x295c   :  { %2279 = vmatpush3.bf16.msra.mxu1 %v2999_v3 }
0x295d   :  { %2280 = vmatprep.subr.bf16.mxu1 %v2575_v0 }
0x2960   :  { %2281 = vmatpush3.bf16.msra.mxu1 %v3003_v17 }
0x2961   :  { %2282 = vmatprep.subr.bf16.mxu1 %v2575_v0 }
0x2964   :  { %2283 = vmatpush3.bf16.msra.mxu1 %v3007_v48 }
0x2a07   :  { %v1705_v11 = vpop.f32.mrf.mxu1 }
0x2a08   :  { %v1706_v3 = vadd.f32 %v1705_v11, %v2716_v22 }
0x2a09   :  { %v1707_v44 = vpop.f32.mrf.mxu1 }
0x2a0a   :  { %v3165_v12 = vadd.f32 %v1707_v44, %v2748_v51 }
0x2a0b   :  { %v1709_v13 = vpop.f32.mrf.mxu1 }
0x2a0c   :  { %v1712_v31 = vsel %vm354_vm4, %v3165_v12, -inf }
0x2a0d   :  { %v1710_v50 = vpop.f32.mrf.mxu1  ;;  %1713 = vmax.xlane.f32.xlu1 %v1712_v31  ;;  %v358_v31 = vsub.f32 %v2751_v54, %v2757_v59 }
0x2a0f   :  { %v359_v50 = vmul.f32 1.442695, %v358_v31 }
0x2a1e   :  { %1816 = vrot.lane.b32.xlu1 %v1706_v3, %s2567_s11 }
0x2a96   :  { %v3171_v17 = vpop.xlane.xlu1 %1713 }
0x2a97   :  { %vm1727_vm0 = vcmp.ge.f32.partialorder %v3165_v12, %v3171_v17 }
0x2a98   :  { %v1728_v0 = vsel %vm1727_vm0, %v2695_v16, 128 }
0x2a99   :  { %v1729_v48 = vsel %vm354_vm4, %v1728_v0, 2147483647 }
0x2a9a   :  { %v1731_v33 = vshra.s32 %v1729_v48, 16  ;;  %v1730_v37 = vand.u32 65535, %v1729_v48  ;;  %v1817_v21 = vpop.permute.xlu1 %1816 }
0x2a9c   :  { %v1733_v14 = vcvt.s32.f32 %v1731_v33  ;;  %v1732_v40 = vcvt.s32.f32 %v1730_v37  ;;  %v1545_v33 = vsub.f32 %v3118_v58, %v3122_v8 }
0x2a9e   :  { %1734 = vmin.xlane.f32.xlu0 %v1733_v14 }
0x2b27   :  { %v1735_v38 = vpop.xlane.xlu0 %1734 }
0x2b28   :  { %vm1736_vm11 = vcmp.eq.f32.partialorder %v1733_v14, %v1735_v38  ;;  %v1741_v22 = vcvt.f32.s32 %v1735_v38  ;;  %v1546_v14 = vmul.f32 1.442695, %v1545_v33 }
0x2b29   :  { %v1737_v41 = vsel %vm1736_vm11, %v1732_v40, inf }
0x2b2a   :  { %1738 = vmin.xlane.f32.xlu0 %v1737_v41  ;;  %v1742_v43 = vshll.u32 %v1741_v22, 16 }
0x2bb3   :  { %v1739_v42 = vpop.xlane.xlu0 %1738 }
0x2bb4   :  { %v1740_v45 = vcvt.f32.s32 %v1739_v42 }
0x2bb6   :  { %v1743_v2 = vadd.s32 %v1742_v43, %v1740_v45 }
0x2bb8   :  { %vm1744_vm12 = vcmp.eq.s32.totalorder %v2695_v16, %v1743_v2 }
0x2bb9   :  { %vm1994_vm13 = vmpackc.low %vm1744_vm12, %vm1744_vm12 }
0x2bba   :  { %2285 = vmatmul.mubr.msk.bf16.vlgmr.msra.gmra.mxu1 %vm1994_vm13, %v2578_v18 }
0x2c7a   :  { %v1782_v57 = vpop.f32.mrf.mxu1 }
0x2c7b   :  { %v1806_v1 = vmul.f32 %v1804_v25, %v1782_v57 }
0x2c7c   :  { %v2286_v6 = vpop.f32.mrf.mxu1 }
0x2c7d   :  { %v1807_v60 = vadd.f32 %v1806_v1, %v1798_v32 }
0x2c7e   :  { %v1785_v7 = vpop.f32.mrf.mxu1 }
0x2c7f   :  { %v1808_v62 = vadd.f32 %v1807_v60, %v1706_v3  ;;  %v865_v3 = vsub.f32 %v2898_v35, %v2902_v39 }
0x2c80   :  { %v2287_v63 = vpop.f32.mrf.mxu1 }
0x2c81   :  { %v1996_v19 = vmul.f32 -1.442695, %v1808_v62  ;;  %v866_v0 = vmul.f32 1.442695, %v865_v3 }
0x2c83   :  { %2375 = vpow2.f32 %v1996_v19 }
0x2c90   :  { %v2376_v16 = vpop.eup %2375 }
0x2c91   :  { %v1812_v49 = vadd.f32 1.0, %v2376_v16 }
0x2c93   :  { %2377 = vrcp.f32 %v1812_v49 }
0x2ca0   :  { %v2378_v18 = vpop.eup %2377 }
0x2ca1   :  { %v1819_v56 = vmul.f32 %v2378_v18, %v1817_v21  ;;  %v1826_v27 = vsub.f32 1.0, %v2378_v18  ;;  %v1832_v30 = vmul.f32 %v2378_v18, %v3141_v46  ;;  %v1205_v46 = vsub.f32 %v3014_v53, %v3018_v47 }
0x2ca3   :  { %1821 = vrot.lane.b32.xlu0 %v1819_v56, %s2567_s11  ;;  %v1206_v48 = vmul.f32 1.442695, %v1205_v46 }
0x2d15   :  { %v1822_v23 = vpop.permute.xlu0 %1821 }
0x2d16   :  { %v1824_v20 = vadd.f32 %v1822_v23, %v1807_v60 }
0x2d18   :  { %2379 = vtanh.f32 %v1824_v20 }
0x2d19   :  { %2381 = vpow2.f32 %v359_v50 }
0x2d1a   :  { %2383 = vpow2.f32 %v866_v0 }
0x2d1b   :  { %2385 = vpow2.f32 %v1206_v48 }
0x2d1c   :  { %2387 = vpow2.f32 %v1546_v14 }
0x2d25   :  { %v2380_v26 = vpop.eup %2379 }
0x2d26   :  { %1828 = vrot.lane.b32.xlu1 %v2380_v26, %s2579_s2  ;;  %v2382_v37 = vpop.eup %2381  ;;  %v1715_v26 = vsub.f32 %v3165_v12, %v3171_v17 }
0x2d27   :  { %v361_v38 = vsel %vm354_vm4, %v2382_v37, 0.0  ;;  %v2384_v40 = vpop.eup %2383 }
0x2d28   :  { %v868_v41 = vsel %vm354_vm4, %v2384_v40, 0.0  ;;  %v2386_v22 = vpop.eup %2385 }
0x2d29   :  { %v1208_v42 = vsel %vm354_vm4, %v2386_v22, 0.0  ;;  %v2388_v43 = vpop.eup %2387 }
0x2d2a   :  { %v1548_v45 = vsel %vm354_vm4, %v2388_v43, 0.0 }
0x2d98   :  { %v1829_v4 = vpop.permute.xlu1 %1828 }
0x2d99   :  { %v1831_v11 = vmul.f32 %v1829_v4, %v1826_v27 }
0x2d9b   :  { %v3184_v44 = vadd.f32 %v1832_v30, %v1831_v11  ;;  %v1716_v11 = vmul.f32 1.442695, %v1715_v26 }
0x2d9d   :  { %v1834_v13 = vpack.c.bf16 %v3184_v44, %v3184_v44 }
0x2d9f   :  { %1836 = vrot.lane.b32.xlu1 %v1834_v13, %s2579_s2 }
0x2dc3   :  { %362 = vadd.xlane.f32.xlu1 %v361_v38 }
0x2dc7   :  { %869 = vadd.xlane.f32.xlu1 %v868_v41 }
0x2dcb   :  { %1209 = vadd.xlane.f32.xlu1 %v1208_v42 }
0x2dcf   :  { %1549 = vadd.xlane.f32.xlu1 %v1548_v45 }
0x2e11   :  { %v1837_v2 = vpop.permute.xlu1 %1836 }
0x2e12   :  { %1997 = vmatmul.mubr.msk.bf16.vlgmr.msra.gmra.mxu0 %vm220_vm1, %v1837_v2  ;;  %vm1900_vm1 = vcmask 254976  }
0x2e4c   :  { %v363_v34 = vpop.xlane.xlu1 %362 }
0x2e4d   :  { %2389 = vlog2.f32 %v363_v34 }
0x2e50   :  { %v870_v5 = vpop.xlane.xlu1 %869 }
0x2e51   :  { %2391 = vlog2.f32 %v870_v5 }
0x2e54   :  { %v1210_v52 = vpop.xlane.xlu1 %1209 }
0x2e55   :  { %2393 = vlog2.f32 %v1210_v52 }
0x2e58   :  { %v1550_v55 = vpop.xlane.xlu1 %1549 }
0x2e59   :  { %2395 = vlog2.f32 %v1550_v55 }
0x2e5a   :  { %v2390_v25 = vpop.eup %2389 }
0x2e5b   :  { %v365_v32 = vmul.f32 0.6931472, %v2390_v25 }
0x2e5d   :  { %v366_v57 = vadd.f32 %v365_v32, %v2757_v59 }
0x2e5e   :  { %v2392_v1 = vpop.eup %2391 }
0x2e5f   :  { %v367_v6 = vsub.f32 %v2751_v54, %v366_v57  ;;  %v872_v60 = vmul.f32 0.6931472, %v2392_v1 }
0x2e61   :  { %368 = vst [vmem:[#allocation10] sm:$0x3] %v367_v6  ;;  %v873_v7 = vadd.f32 %v872_v60, %v2902_v39  ;;  %v525_v39 = vsub.f32 %v2800_v61, %v2804_v10 }
0x2e62   :  { %v2394_v62 = vpop.eup %2393 }
0x2e63   :  { %v874_v63 = vsub.f32 %v2898_v35, %v873_v7  ;;  %v1212_v19 = vmul.f32 0.6931472, %v2394_v62  ;;  %v526_v56 = vmul.f32 1.442695, %v525_v39  ;;  %v695_v35 = vsub.f32 %v2849_v24, %v2855_v29 }
0x2e65   :  { %876 = vst [vmem:[#allocation10 + $0x6] sm:$0x3] %v874_v63  ;;  %v1213_v16 = vadd.f32 %v1212_v19, %v3018_v47  ;;  %2397 = vpow2.f32 %v526_v56  ;;  %v696_v23 = vmul.f32 1.442695, %v695_v35  ;;  %v1035_v47 = vsub.f32 %v2947_v9, %v2953_v15 }
0x2e66   :  { %v2396_v49 = vpop.eup %2395 }
0x2e67   :  { %v1214_v18 = vsub.f32 %v3014_v53, %v1213_v16  ;;  %v1552_v21 = vmul.f32 0.6931472, %v2396_v49  ;;  %2399 = vpow2.f32 %v696_v23  ;;  %v1036_v53 = vmul.f32 1.442695, %v1035_v47 }
0x2e69   :  { %1216 = vst [vmem:[#allocation10 + $0xa] sm:$0x3] %v1214_v18  ;;  %v1553_v59 = vadd.f32 %v1552_v21, %v3122_v8  ;;  %v1375_v8 = vsub.f32 %v3069_v28, %v3075_v36  ;;  %2401 = vpow2.f32 %v1036_v53 }
0x2e6b   :  { %v1554_v54 = vsub.f32 %v3118_v58, %v1553_v59  ;;  %v1376_v58 = vmul.f32 1.442695, %v1375_v8 }
0x2e6d   :  { %1556 = vst [vmem:[#allocation10 + $0xe] sm:$0x3] %v1554_v54  ;;  %2403 = vpow2.f32 %v1376_v58 }
0x2e6e   :  { %2405 = vpow2.f32 %v1716_v11 }
0x2e72   :  { %v2398_v31 = vpop.eup %2397 }
0x2e73   :  { %v528_v3 = vsel %vm354_vm4, %v2398_v31, 0.0 }
0x2e74   :  { %v2400_v0 = vpop.eup %2399 }
0x2e75   :  { %v698_v46 = vsel %vm354_vm4, %v2400_v0, 0.0 }
0x2e76   :  { %v2402_v48 = vpop.eup %2401 }
0x2e7a   :  { %v2404_v33 = vpop.eup %2403 }
0x2e7b   :  { %v1378_v14 = vsel %vm354_vm4, %v2404_v33, 0.0  ;;  %v2406_v37 = vpop.eup %2405 }
0x2e7c   :  { %v1718_v38 = vsel %vm354_vm4, %v2406_v37, 0.0 }
0x2ed2   :  { %v1875_v20 = vpop.f32.mrf.mxu0 }
0x2ed4   :  { %v1876_v27 = vpop.f32.mrf.mxu0 }
0x2ed5   :  { %v3221_v4 = vadd.f32 %v1876_v27, %v2748_v51  ;;  %v1038_v51 = vsel %vm354_vm4, %v2402_v48, 0.0 }
0x2ed6   :  { %v1878_v30 = vpop.f32.mrf.mxu0 }
0x2ed7   :  { %v1881_v13 = vsel %vm354_vm4, %v3221_v4, -inf }
0x2ed8   :  { %v1879_v50 = vpop.f32.mrf.mxu0  ;;  %1882 = vmax.xlane.f32.xlu0 %v1881_v13 }
0x2edc   :  { %529 = vadd.xlane.f32.xlu0 %v528_v3 }
0x2ee0   :  { %699 = vadd.xlane.f32.xlu0 %v698_v46 }
0x2ee4   :  { %1039 = vadd.xlane.f32.xlu0 %v1038_v51 }
0x2ee8   :  { %1379 = vadd.xlane.f32.xlu0 %v1378_v14 }
0x2eec   :  { %1719 = vadd.xlane.f32.xlu0 %v1718_v38 }
0x2f02   :  { %1897 = vrot.lane.b32.xlu0 %v3184_v44, %s2579_s2 }
0x2f61   :  { %v1883_v40 = vpop.xlane.xlu0 %1882 }
0x2f62   :  { %v1884_v41 = vsub.f32 %v3221_v4, %v1883_v40 }
0x2f64   :  { %v1885_v22 = vmul.f32 1.442695, %v1884_v41 }
0x2f65   :  { %v530_v42 = vpop.xlane.xlu0 %529 }
0x2f66   :  { %2407 = vpow2.f32 %v1885_v22 }
0x2f67   :  { %2409 = vlog2.f32 %v530_v42 }
0x2f69   :  { %v700_v43 = vpop.xlane.xlu0 %699 }
0x2f6a   :  { %2411 = vlog2.f32 %v700_v43 }
0x2f6d   :  { %v1040_v45 = vpop.xlane.xlu0 %1039 }
0x2f6e   :  { %2413 = vlog2.f32 %v1040_v45 }
0x2f71   :  { %v1380_v2 = vpop.xlane.xlu0 %1379 }
0x2f72   :  { %2415 = vlog2.f32 %v1380_v2 }
0x2f73   :  { %v2408_v34 = vpop.eup %2407 }
0x2f74   :  { %v2410_v5 = vpop.eup %2409  ;;  %v1887_v52 = vsel %vm354_vm4, %v2408_v34, 0.0 }
0x2f75   :  { %v532_v55 = vmul.f32 0.6931472, %v2410_v5  ;;  %1888 = vadd.xlane.f32.xlu1 %v1887_v52  ;;  %v1720_v44 = vpop.xlane.xlu0 %1719 }
0x2f76   :  { %2417 = vlog2.f32 %v1720_v44 }
0x2f77   :  { %v2412_v25 = vpop.eup %2411  ;;  %v533_v32 = vadd.f32 %v532_v55, %v2804_v10 }
0x2f78   :  { %v702_v57 = vmul.f32 0.6931472, %v2412_v25 }
0x2f79   :  { %v534_v1 = vsub.f32 %v2800_v61, %v533_v32  ;;  %v1898_v6 = vpop.permute.xlu0 %1897 }
0x2f7a   :  { %v703_v60 = vadd.f32 %v702_v57, %v2855_v29  ;;  %1901 = vst.msk [vmem:[#allocation11] sm:$0x3] %vm1900_vm1, %v1898_v6 }
0x2f7b   :  { %v2414_v7 = vpop.eup %2413  ;;  %536 = vst [vmem:[#allocation10 + $0x2] sm:$0x3] %v534_v1 }
0x2f7c   :  { %v704_v62 = vsub.f32 %v2849_v24, %v703_v60  ;;  %v1042_v63 = vmul.f32 0.6931472, %v2414_v7 }
0x2f7e   :  { %706 = vst [vmem:[#allocation10 + $0x4] sm:$0x3] %v704_v62  ;;  %v1043_v19 = vadd.f32 %v1042_v63, %v2953_v15 }
0x2f7f   :  { %v2416_v16 = vpop.eup %2415 }
0x2f80   :  { %v1044_v49 = vsub.f32 %v2947_v9, %v1043_v19  ;;  %v1382_v10 = vmul.f32 0.6931472, %v2416_v16 }
0x2f82   :  { %1046 = vst [vmem:[#allocation10 + $0x8] sm:$0x3] %v1044_v49  ;;  %v1383_v18 = vadd.f32 %v1382_v10, %v3075_v36 }
0x2f83   :  { %v2418_v61 = vpop.eup %2417 }
0x2f84   :  { %v1384_v21 = vsub.f32 %v3069_v28, %v1383_v18  ;;  %v1722_v29 = vmul.f32 0.6931472, %v2418_v61 }
0x2f86   :  { %1386 = vst [vmem:[#allocation10 + $0xc] sm:$0x3] %v1384_v21  ;;  %v1723_v59 = vadd.f32 %v1722_v29, %v3171_v17 }
0x2f88   :  { %v1724_v24 = vsub.f32 %v3165_v12, %v1723_v59 }
0x2f8a   :  { %1726 = vst [vmem:[#allocation10 + $0x10] sm:$0x3] %v1724_v24 }
0x2f8b   :  { %2524 = shalt.err (!%p2521_p10)
}
0x2f8c   :  { %1923 = dma.vmem_to_hbm [thread:$0]  %s1921_s29, 32, %s3261_s7, [#allocation12]  }
0x2f8d   :  { %s2581_s10 = smov [#allocation10]  }
0x2f8e   :  { %s1907_s11 = sshll.u32 %s2581_s10, 4  ;;  %s1908_s11 = int_to_ptr.vmem [resolvable:$true] %s1907_s11 }
0x2f8f   :  { %s2533_s12 = scalar_lea.vmem %s1908_s11, 320  ;;  %p2538_p12 = scmp.lt.s32.totalorder %s1908_s11, %s1908_s11 }
0x2f90   :  { %p2534_p11 = scmp.ne.s32.totalorder %s1908_s11, %s2533_s12  ;;  %p2539_p13 = scmp.lt.s32.totalorder %s2533_s12, %s2533_s12 }
0x2f92   :  { %p2540_p0 = por %p2539_p13, %p2538_p12 }
0x2f94   :  { %p2541_p1 = pnand %p2540_p0, %p2534_p11 }
0x2ffe   :  { %v1889_v9 = vpop.xlane.xlu1 %1888 }
0x2fff   :  { %2419 = vlog2.f32 %v1889_v9 }
0x300c   :  { %v2420_v15 = vpop.eup %2419 }
0x300d   :  { %v1891_v28 = vmul.f32 0.6931472, %v2420_v15 }
0x300f   :  { %v1892_v36 = vadd.f32 %v1891_v28, %v1883_v40 }
0x3011   :  { %v1893_v12 = vsub.f32 %v3221_v4, %v1892_v36 }
0x3013   :  { %1895 = vst [vmem:[#allocation10 + $0x12] sm:$0x3] %v1893_v12 }
0x3014   :  { %2544 = shalt.err (!%p2541_p1)
}
0x3015   :  { %1913 = dma.vmem_to_hbm [thread:$0]  %s1908_s11, 320, %s3260_s6, [#allocation4], %s2570_s17, %s2570_s17, %s2571_s18  }
0x3016   :  { %2559 = dma.done.wait [#allocation4], 320  }
0x3017   :  { %2560 = vsyncadd [#allocation4], 4294966976 }
0x3018   :  { %2561 = dma.done.wait [#allocation12], 32  }
0x3019   :  { %2562 = vsyncadd [#allocation12], 4294967264 }
0x301a   :  { %1930 = vsyncpa [#allocation3], 1 }
0x301b   :  { %1931 = vsyncpa [#allocation6], 1 }
0x301c   :  { %1932 = vsyncpa [#allocation9], 1 }
0x301d   :  { %1933 = vsyncpa [#allocation4], 1 }
0x301e   :  { %1934 = vsyncpa [#allocation12], 1 }

</bundles_post_ra>
